<compile_context>
chip_gen: v5e
topology: v5e:2x2
jax: 0.10.0
libtpu: 0.0.40
codegen_flags: <defaults>
</compile_context>

<pallas_src>
import functools

import jax
import jax.numpy as jnp
from jax.experimental import pallas as pl
from jax.experimental.pallas import tpu as pltpu

NEURONS = 32                        # NeuronsPerLayer
NUM_LAYERS = 5                      # NumLayer
FEAT_IN = 6
CAT_W = NEURONS * (NUM_LAYERS + 1)  # 192: width after the DenseBlock concat

# per-feature input scaling, exactly as in ODEFunc.calDeriv
SCALE = jnp.array([1000.0, 1000.0, 10.0, 1000.0, 1000.0, 10.0], jnp.float32)
CHIRAL_X_SIGN = jnp.array([1.0, -1.0, -1.0, 1.0, -1.0, -1.0], jnp.float32)
CHIRAL_Y_SIGN = jnp.array([-1.0, 1.0, -1.0, -1.0, 1.0, -1.0], jnp.float32)


# ----------------------------------------------------------------------------------
# Pallas kernel: fused forward + analytic input-gradient of the energy MLP
#   E(row) = w2 . (DenseBlock(W1 x + b1))^2 + b2      (b2 drops out of the gradient)
# Transposed (channels-on-sublanes, rows-on-lanes) formulation:
#   * one f32 MXU dot per DenseBlock layer forward  (32, 32*(i+1)) @ (32*(i+1), TR)
#   * one f32 MXU dot per layer backward            (32*(i+1), 32) @ (32, TR)
#   * the concat activation lives in a (192, TR) VMEM scratch; backward re-derives the
#     softplus derivative from it via sigmoid(f) = 1 - exp(-softplus(f)), so no extra
#     per-layer activation buffers stay live across the fwd+bwd span
# ----------------------------------------------------------------------------------
def _energy_input_grad_kernel(xT_ref, w1_ref, w1t_ref, bias_ref, w2x2_ref,
                              wd_ref, wdt_ref, gxT_ref, cat_ref):
    f32 = jnp.float32
    xT = xT_ref[...].astype(f32)                                          # (6, TR)

    # ---------------- forward ----------------
    h = jnp.dot(w1_ref[...], xT, preferred_element_type=f32) + bias_ref[0]   # (32, TR)
    cat_ref[0:NEURONS, :] = h
    for i in range(NUM_LAYERS):
        w = NEURONS * (i + 1)
        f = (jnp.dot(wd_ref[i, :, 0:w], cat_ref[0:w, :], preferred_element_type=f32)
             + bias_ref[i + 1])                                           # (32, TR)
        e = jnp.exp(-jnp.abs(f))
        z = jnp.maximum(f, 0.0) + jnp.log(1.0 + e)                        # stable softplus
        cat_ref[w:w + NEURONS, :] = z                                     # sublane-aligned

    # ---------------- backward: d sum(out) / d x ----------------
    # out_row = sum_k w2[k] * cat[k]^2 + b2  =>  d/d cat = (2*w2) * cat   (2 folded on host)
    g_cat = cat_ref[...] * w2x2_ref[...]                                  # (192, TR)
    for i in range(NUM_LAYERS - 1, -1, -1):
        w = NEURONS * (i + 1)
        z = cat_ref[w:w + NEURONS, :]                                     # softplus(f)
        sig = 1.0 - jnp.exp(-z)                                           # = sigmoid(f)
        g_f = g_cat[w:w + NEURONS, :] * sig                               # (32, TR)
        g_cat = g_cat[0:w, :] + jnp.dot(wdt_ref[i, 0:w, :], g_f,
                                        preferred_element_type=f32)
    # lane-dense output store: (6, TR)
    gxT_ref[...] = jnp.dot(w1t_ref[...], g_cat, preferred_element_type=f32)


def _round_up(x, m):
    return ((x + m - 1) // m) * m


def energy_input_grad(XT, params):
    """XT: (6, R) scaled feature slab (feature-major).

    Returns (6, R): gradient of the summed net output w.r.t. the feature rows."""
    XT = XT.astype(jnp.float32)
    R = XT.shape[1]

    LANE_ALIGN = 256      # full-lane (2x128) groups: no masked vst, MXU-width aligned
    TILE_LARGE = 512      # 512-row tiles for large R (multiple of 256; sweepable to 1024)

    r_aligned = _round_up(R, LANE_ALIGN)
    if r_aligned <= LANE_ALIGN:
        # tiny problem: one full 256-lane tile (lane padding keeps every vreg full-width)
        tile_rows, n_tiles = LANE_ALIGN, 1
    elif r_aligned <= 2 * TILE_LARGE * 2:
        # mid-size: two balanced 256-aligned tiles so both v7x TensorCores get work
        # (one extra ~0.35us grid step on single-TC v5e/v6e is noise at this size)
        tile_rows, n_tiles = _round_up(pl.cdiv(r_aligned, 2), LANE_ALIGN), 2
    else:
        # large: 512-row tiles; padding waste <= 511 rows.  (Padding the tile count to
        # an even number would not shorten the v7x critical path and only adds serial
        # work on v5e/v6e, so the count is left as-is.)
        tile_rows = TILE_LARGE
        n_tiles = pl.cdiv(r_aligned, tile_rows)
    Rpad = int(n_tiles) * int(tile_rows)
    if Rpad != R:
        XT = jnp.pad(XT, ((0, 0), (0, Rpad - R)))

    weights = [params["w1"], params["w1t"], params["bias"], params["w2x2"],
               params["wd"], params["wdt"]]

    def full_spec(a):
        return pl.BlockSpec(a.shape, lambda i, _nd=a.ndim: (0,) * _nd)

    outT = pl.pallas_call(
        _energy_input_grad_kernel,
        out_shape=jax.ShapeDtypeStruct((FEAT_IN, Rpad), jnp.float32),
        grid=(int(n_tiles),),
        in_specs=[pl.BlockSpec((FEAT_IN, int(tile_rows)), lambda i: (0, i))]
                + [full_spec(a) for a in weights],
        out_specs=pl.BlockSpec((FEAT_IN, int(tile_rows)), lambda i: (0, i)),
        scratch_shapes=[pltpu.VMEM((CAT_W, int(tile_rows)), jnp.float32)],
        compiler_params=pltpu.CompilerParams(dimension_semantics=("parallel",)),
    )(XT, *weights)

    return outT if Rpad == R else outT[:, :R]


# ----------------------------------------------------------------------------------
# Geometric preprocessing, feature-major (plain JAX glue; differentiated with jax.vjp).
# TODO(synk): `trans.removeRigidBodyMotion` / chiral transforms source is not shipped
# with the module; implemented as the standard rigid-motion removal into the
# center-bar frame plus mirror symmetries.
# ----------------------------------------------------------------------------------
def _col(v, ndim):
    return v.reshape((v.shape[0],) + (1,) * (ndim - 1))


def remove_rigid_body_motion_T(yT):
    # yT: (9, ...) = [x_prev, y_prev, a_prev, x_c, y_c, a_c, x_next, y_next, a_next]
    xp_, yp_, ap_ = yT[0], yT[1], yT[2]
    xc, yc, ac = yT[3], yT[4], yT[5]
    xn, yn, an = yT[6], yT[7], yT[8]
    c, s = jnp.cos(ac), jnp.sin(ac)
    xi1 = c * (xp_ - xc) + s * (yp_ - yc)
    eta1 = -s * (xp_ - xc) + c * (yp_ - yc)
    th1 = ap_ - ac
    xi2 = c * (xn - xc) + s * (yn - yc)
    eta2 = -s * (xn - xc) + c * (yn - yc)
    th2 = an - ac
    return jnp.stack([xi1, eta1, th1, xi2, eta2, th2], axis=0)            # (6, ...)


def chiral_x_T(x):   # mirror about the local x-axis
    return x * _col(CHIRAL_X_SIGN, x.ndim)


def chiral_y_T(x):   # mirror about the local y-axis (reverses prev/next ordering)
    flipped = jnp.concatenate([x[3:6], x[0:3]], axis=0)
    return flipped * _col(CHIRAL_Y_SIGN, x.ndim)


def chiral_xy_T(x):
    return chiral_x_T(chiral_y_T(x))


# ----------------------------------------------------------------------------------
# ODEFunc.forward  (boundaries = (1, 1), the module default)
# ----------------------------------------------------------------------------------
def ode_func_forward(y, params):
    y = y.astype(jnp.float32)
    yp = y[..., 1:-1, 0:3]     # only yp carries gradient (matches requires_grad_ in torch)
    ypp = y[..., 0:-2, 0:3]
    ypa = y[..., 2:, 0:3]

    def features_T(yp_):
        yinput = jnp.concatenate([ypp, yp_, ypa], axis=-1)                # (..., M, 9)
        yT = jnp.moveaxis(yinput, -1, 0)                                  # (9, ..., M) small
        x6 = remove_rigid_body_motion_T(yT)                               # (6, ..., M)
        aug = jnp.stack([x6, chiral_x_T(x6), chiral_y_T(x6), chiral_xy_T(x6)], axis=1)
        return aug * _col(SCALE, aug.ndim)                                # (6, 4, ..., M)

    X, vjp_fn = jax.vjp(features_T, yp)
    R = X.size // FEAT_IN
    gXT = energy_input_grad(X.reshape(FEAT_IN, R), params)                # (6, R)
    (grad_yp,) = vjp_fn(gXT.reshape(X.shape))                             # (..., M, 3)

    aug0 = jnp.zeros_like(grad_yp[..., 0:1, :])
    return jnp.concatenate([aug0, grad_yp, aug0], axis=-2)                # (..., N, 3)


# ----------------------------------------------------------------------------------
# ODEPhys.forward  (boundaries = (1, 1); other boundary branches not implemented)
# ----------------------------------------------------------------------------------
def ode_phys_forward(t, y, params):
    del t
    y = y.astype(jnp.float32)
    m = 0.0025
    J = 0.5 * m * 0.033 ** 2
    g = 9.8

    grad = ode_func_forward(y, params)                                    # (..., N, 3)

    coeff1 = jnp.zeros((6, 6), jnp.float32).at[3:, :3].set(jnp.eye(3, dtype=jnp.float32))
    coeff2 = jnp.zeros((6, 6), jnp.float32).at[0:3, 3:].set(
        -jnp.diag(jnp.array([1.0 / m, 1.0 / m, 1.0 / J], jnp.float32)))
    g_vec = jnp.array([0.0, 0.0, 0.0, 0.0, -g, 0.0], jnp.float32)
    gravity = jnp.zeros_like(y).at[..., 1:-1, :].set(g_vec)               # boundaries (1,1)

    grad6 = jnp.concatenate([grad, jnp.zeros_like(grad)], axis=-1)        # (..., N, 6)
    return y @ coeff1 + grad6 @ coeff2 + gravity


# ----------------------------------------------------------------------------------
# Deterministic parameter init matching nn.init.normal_(std=0.01) / constant_(0.01).
# Per-layer DenseBlock weights are zero-padded and stacked into two slabs so the
# pallas_call has 7 operands instead of 16.  Everything stays f32 (MXU-valid on all
# generations; fixes the BF16xBF16=F32 dot failure and the bf16 precision cap).
# TODO(synk): snn.DenseBlock source is unavailable; assumed Linear(32*(i+1), 32) per
# layer with softplus activation and dense (concat) connectivity.
# ----------------------------------------------------------------------------------
def init_params(key):
    std = 0.01
    keys = jax.random.split(key, NUM_LAYERS + 2)
    w1 = std * jax.random.normal(keys[0], (NEURONS, FEAT_IN), jnp.float32)
    wds = [std * jax.random.normal(keys[1 + i], (NEURONS, NEURONS * (i + 1)), jnp.float32)
           for i in range(NUM_LAYERS)]
    w2 = std * jax.random.normal(keys[-1], (1, CAT_W), jnp.float32)
    wd_slab = jnp.stack([jnp.pad(w, ((0, 0), (0, CAT_W - w.shape[1]))) for w in wds])     # (5, 32, 192)
    wdt_slab = jnp.stack([jnp.pad(w.T, ((0, CAT_W - w.shape[1]), (0, 0))) for w in wds])  # (5, 192, 32)
    bias = jnp.full((NUM_LAYERS + 1, NEURONS, 1), 0.01, jnp.float32)      # b1 + 5 layer biases
    # b2 (const 0.01) does not affect the returned gradient, so it is not passed in.
    return dict(
        w1=w1,                                       # (32, 6)   forward W1 @ x^T
        w1t=w1.T,                                    # (6, 32)   final output dot
        bias=bias,                                   # (6, 32, 1) column biases (lane bcast)
        w2x2=(2.0 * w2).reshape(CAT_W, 1),           # 2*w2 folded on host
        wd=wd_slab,                                  # (5, 32, 192) zero-padded
        wdt=wdt_slab,                                # (5, 192, 32) zero-padded
    )


# Pure-JAX oracle for the fused kernel (per-row energy -> autodiff input gradient).
def _energy_input_grad_ref(Xrows, params):
    w1 = params["w1"]
    bias = params["bias"][..., 0]                    # (6, 32)
    wd = params["wd"]
    w2x2 = params["w2x2"][:, 0]                      # (192,)

    def energy(x):
        cat = w1 @ x + bias[0]
        for i in range(NUM_LAYERS):
            w = NEURONS * (i + 1)
            f = wd[i, :, :w] @ cat + bias[i + 1]
            cat = jnp.concatenate([cat, jax.nn.softplus(f)], axis=0)
        return 0.5 * jnp.sum(w2x2 * cat * cat)       # = w2 . cat^2   (b2 dropped)

    return jax.vmap(jax.grad(energy))(Xrows)


if __name__ == "__main__":
    key = jax.random.PRNGKey(0)
    pkey, ykey, xkey = jax.random.split(key, 3)
    params = init_params(pkey)

    # --- kernel correctness check against the pure-JAX oracle (f32, generous tol) ---
    Xtest = 5.0 * jax.random.normal(xkey, (64, FEAT_IN), jnp.float32)
    g_kern = energy_input_grad(Xtest.T, params).T
    g_ref = _energy_input_grad_ref(Xtest, params)
    jax.block_until_ready(g_kern)
    assert g_kern.shape == g_ref.shape
    assert bool(jnp.allclose(g_kern, g_ref, rtol=2e-3, atol=1e-6))

    # --- full ODEPhys forward at a small, module-consistent shape ---
    B, N = 2, 10                                     # batch, number of slinky bars
    y = 0.1 * jax.random.normal(ykey, (B, N, 6), jnp.float32)

    fwd = jax.jit(functools.partial(ode_phys_forward, params=params))
    acc = fwd(0.0, y)
    jax.block_until_ready(acc)
    assert acc.shape == (B, N, 6)
    assert bool(jnp.all(jnp.isfinite(acc)))
    print("KERNEL_OK")
</pallas_src>

<mosaic_0001>
module attributes {stable_mosaic.version = 11 : i64} {
  func.func @_energy_input_grad_kernel(%arg0: i32, %arg1: memref<6x256xf32, #tpu.memory_space<vmem>>, %arg2: memref<32x6xf32, #tpu.memory_space<vmem>>, %arg3: memref<6x32xf32, #tpu.memory_space<vmem>>, %arg4: memref<6x32x1xf32, #tpu.memory_space<vmem>>, %arg5: memref<192x1xf32, #tpu.memory_space<vmem>>, %arg6: memref<5x32x192xf32, #tpu.memory_space<vmem>>, %arg7: memref<5x192x32xf32, #tpu.memory_space<vmem>>, %arg8: memref<6x256xf32, #tpu.memory_space<vmem>>, %arg9: memref<192x256xf32, #tpu.memory_space<vmem>>) attributes {dimension_semantics = [#tpu.dimension_semantics<parallel>], iteration_bounds = array<i64: 1>, scalar_prefetch = 0 : i64, scratch_operands = 1 : i64, tpu.core_type = #tpu.core_type<tc>, window_params = [{transform_indices = @transform_0, window_bounds = array<i64: 6, 256>}, {pipeline_mode = #tpu.pipeline_mode<synchronous>, transform_indices = @transform_1, window_bounds = array<i64: 32, 6>}, {pipeline_mode = #tpu.pipeline_mode<synchronous>, transform_indices = @transform_2, window_bounds = array<i64: 6, 32>}, {pipeline_mode = #tpu.pipeline_mode<synchronous>, transform_indices = @transform_3, window_bounds = array<i64: 6, 32, 1>}, {pipeline_mode = #tpu.pipeline_mode<synchronous>, transform_indices = @transform_4, window_bounds = array<i64: 192, 1>}, {pipeline_mode = #tpu.pipeline_mode<synchronous>, transform_indices = @transform_5, window_bounds = array<i64: 5, 32, 192>}, {pipeline_mode = #tpu.pipeline_mode<synchronous>, transform_indices = @transform_6, window_bounds = array<i64: 5, 192, 32>}, {transform_indices = @transform_7, window_bounds = array<i64: 6, 256>}]} {
    %c0 = arith.constant 0 : index
    %c0_0 = arith.constant 0 : index
    %0 = vector.load %arg1[%c0, %c0_0] : memref<6x256xf32, #tpu.memory_space<vmem>>, vector<6x256xf32>
    %c0_1 = arith.constant 0 : index
    %c0_2 = arith.constant 0 : index
    %1 = vector.load %arg2[%c0_1, %c0_2] : memref<32x6xf32, #tpu.memory_space<vmem>>, vector<32x6xf32>
    %cst = arith.constant dense<0.000000e+00> : vector<32x256xf32>
    %2 = tpu.matmul %1, %0, %cst {dimension_numbers = #tpu.dot_dimension_numbers<[1], [0], [0], [1], [0, 0, 1, 1], [], []>} : vector<32x6xf32>, vector<6x256xf32>, vector<32x256xf32> -> vector<32x256xf32>
    %c0_3 = arith.constant 0 : index
    %c0_4 = arith.constant 0 : index
    %c0_5 = arith.constant 0 : index
    %3 = vector.load %arg4[%c0_3, %c0_4, %c0_5] : memref<6x32x1xf32, #tpu.memory_space<vmem>>, vector<1x32x1xf32>
    %4 = vector.shape_cast %3 : vector<1x32x1xf32> to vector<32x1xf32>
    %5 = vector.broadcast %4 : vector<32x1xf32> to vector<32x256xf32>
    %6 = arith.addf %2, %5 : vector<32x256xf32>
    %c0_6 = arith.constant 0 : index
    %c0_7 = arith.constant 0 : index
    %7 = vector.load %arg9[%c0_6, %c0_7] : memref<192x256xf32, #tpu.memory_space<vmem>>, vector<32x256xf32>
    tpu.vector_store %arg9[%c0_6, %c0_7], %6 {strides = array<i32>} : memref<192x256xf32, #tpu.memory_space<vmem>>, vector<32x256xf32>,
    %c0_8 = arith.constant 0 : index
    %c0_9 = arith.constant 0 : index
    %c0_10 = arith.constant 0 : index
    %8 = vector.load %arg6[%c0_8, %c0_9, %c0_10] : memref<5x32x192xf32, #tpu.memory_space<vmem>>, vector<1x32x32xf32>
    %9 = vector.shape_cast %8 : vector<1x32x32xf32> to vector<32x32xf32>
    %c0_11 = arith.constant 0 : index
    %c0_12 = arith.constant 0 : index
    %10 = vector.load %arg9[%c0_11, %c0_12] : memref<192x256xf32, #tpu.memory_space<vmem>>, vector<32x256xf32>
    %cst_13 = arith.constant dense<0.000000e+00> : vector<32x256xf32>
    %11 = tpu.matmul %9, %10, %cst_13 {dimension_numbers = #tpu.dot_dimension_numbers<[1], [0], [0], [1], [0, 0, 1, 1], [], []>} : vector<32x32xf32>, vector<32x256xf32>, vector<32x256xf32> -> vector<32x256xf32>
    %c1 = arith.constant 1 : index
    %c0_14 = arith.constant 0 : index
    %c0_15 = arith.constant 0 : index
    %12 = vector.load %arg4[%c1, %c0_14, %c0_15] : memref<6x32x1xf32, #tpu.memory_space<vmem>>, vector<1x32x1xf32>
    %13 = vector.shape_cast %12 : vector<1x32x1xf32> to vector<32x1xf32>
    %14 = vector.broadcast %13 : vector<32x1xf32> to vector<32x256xf32>
    %15 = arith.addf %11, %14 : vector<32x256xf32>
    %16 = math.absf %15 : vector<32x256xf32>
    %cst_16 = arith.constant 0.000000e+00 : f32
    %17 = vector.broadcast %cst_16 : f32 to vector<32x256xf32>
    %18 = arith.subf %17, %16 : vector<32x256xf32>
    %19 = math.exp %18 : vector<32x256xf32>
    %cst_17 = arith.constant 0.000000e+00 : f32
    %20 = vector.broadcast %cst_17 : f32 to vector<32x256xf32>
    %21 = arith.maximumf %15, %20 : vector<32x256xf32>
    %cst_18 = arith.constant 1.000000e+00 : f32
    %22 = vector.broadcast %cst_18 : f32 to vector<32x256xf32>
    %23 = arith.addf %22, %19 : vector<32x256xf32>
    %24 = math.log %23 : vector<32x256xf32>
    %25 = arith.addf %21, %24 : vector<32x256xf32>
    %c32 = arith.constant 32 : index
    %c0_19 = arith.constant 0 : index
    %26 = vector.load %arg9[%c32, %c0_19] : memref<192x256xf32, #tpu.memory_space<vmem>>, vector<32x256xf32>
    tpu.vector_store %arg9[%c32, %c0_19], %25 {strides = array<i32>} : memref<192x256xf32, #tpu.memory_space<vmem>>, vector<32x256xf32>,
    %c1_20 = arith.constant 1 : index
    %c0_21 = arith.constant 0 : index
    %c0_22 = arith.constant 0 : index
    %27 = vector.load %arg6[%c1_20, %c0_21, %c0_22] : memref<5x32x192xf32, #tpu.memory_space<vmem>>, vector<1x32x64xf32>
    %28 = vector.shape_cast %27 : vector<1x32x64xf32> to vector<32x64xf32>
    %c0_23 = arith.constant 0 : index
    %c0_24 = arith.constant 0 : index
    %29 = vector.load %arg9[%c0_23, %c0_24] : memref<192x256xf32, #tpu.memory_space<vmem>>, vector<64x256xf32>
    %cst_25 = arith.constant dense<0.000000e+00> : vector<32x256xf32>
    %30 = tpu.matmul %28, %29, %cst_25 {dimension_numbers = #tpu.dot_dimension_numbers<[1], [0], [0], [1], [0, 0, 1, 1], [], []>} : vector<32x64xf32>, vector<64x256xf32>, vector<32x256xf32> -> vector<32x256xf32>
    %c2 = arith.constant 2 : index
    %c0_26 = arith.constant 0 : index
    %c0_27 = arith.constant 0 : index
    %31 = vector.load %arg4[%c2, %c0_26, %c0_27] : memref<6x32x1xf32, #tpu.memory_space<vmem>>, vector<1x32x1xf32>
    %32 = vector.shape_cast %31 : vector<1x32x1xf32> to vector<32x1xf32>
    %33 = vector.broadcast %32 : vector<32x1xf32> to vector<32x256xf32>
    %34 = arith.addf %30, %33 : vector<32x256xf32>
    %35 = math.absf %34 : vector<32x256xf32>
    %cst_28 = arith.constant 0.000000e+00 : f32
    %36 = vector.broadcast %cst_28 : f32 to vector<32x256xf32>
    %37 = arith.subf %36, %35 : vector<32x256xf32>
    %38 = math.exp %37 : vector<32x256xf32>
    %cst_29 = arith.constant 0.000000e+00 : f32
    %39 = vector.broadcast %cst_29 : f32 to vector<32x256xf32>
    %40 = arith.maximumf %34, %39 : vector<32x256xf32>
    %cst_30 = arith.constant 1.000000e+00 : f32
    %41 = vector.broadcast %cst_30 : f32 to vector<32x256xf32>
    %42 = arith.addf %41, %38 : vector<32x256xf32>
    %43 = math.log %42 : vector<32x256xf32>
    %44 = arith.addf %40, %43 : vector<32x256xf32>
    %c64 = arith.constant 64 : index
    %c0_31 = arith.constant 0 : index
    %45 = vector.load %arg9[%c64, %c0_31] : memref<192x256xf32, #tpu.memory_space<vmem>>, vector<32x256xf32>
    tpu.vector_store %arg9[%c64, %c0_31], %44 {strides = array<i32>} : memref<192x256xf32, #tpu.memory_space<vmem>>, vector<32x256xf32>,
    %c2_32 = arith.constant 2 : index
    %c0_33 = arith.constant 0 : index
    %c0_34 = arith.constant 0 : index
    %46 = vector.load %arg6[%c2_32, %c0_33, %c0_34] : memref<5x32x192xf32, #tpu.memory_space<vmem>>, vector<1x32x96xf32>
    %47 = vector.shape_cast %46 : vector<1x32x96xf32> to vector<32x96xf32>
    %c0_35 = arith.constant 0 : index
    %c0_36 = arith.constant 0 : index
    %48 = vector.load %arg9[%c0_35, %c0_36] : memref<192x256xf32, #tpu.memory_space<vmem>>, vector<96x256xf32>
    %cst_37 = arith.constant dense<0.000000e+00> : vector<32x256xf32>
    %49 = tpu.matmul %47, %48, %cst_37 {dimension_numbers = #tpu.dot_dimension_numbers<[1], [0], [0], [1], [0, 0, 1, 1], [], []>} : vector<32x96xf32>, vector<96x256xf32>, vector<32x256xf32> -> vector<32x256xf32>
    %c3 = arith.constant 3 : index
    %c0_38 = arith.constant 0 : index
    %c0_39 = arith.constant 0 : index
    %50 = vector.load %arg4[%c3, %c0_38, %c0_39] : memref<6x32x1xf32, #tpu.memory_space<vmem>>, vector<1x32x1xf32>
    %51 = vector.shape_cast %50 : vector<1x32x1xf32> to vector<32x1xf32>
    %52 = vector.broadcast %51 : vector<32x1xf32> to vector<32x256xf32>
    %53 = arith.addf %49, %52 : vector<32x256xf32>
    %54 = math.absf %53 : vector<32x256xf32>
    %cst_40 = arith.constant 0.000000e+00 : f32
    %55 = vector.broadcast %cst_40 : f32 to vector<32x256xf32>
    %56 = arith.subf %55, %54 : vector<32x256xf32>
    %57 = math.exp %56 : vector<32x256xf32>
    %cst_41 = arith.constant 0.000000e+00 : f32
    %58 = vector.broadcast %cst_41 : f32 to vector<32x256xf32>
    %59 = arith.maximumf %53, %58 : vector<32x256xf32>
    %cst_42 = arith.constant 1.000000e+00 : f32
    %60 = vector.broadcast %cst_42 : f32 to vector<32x256xf32>
    %61 = arith.addf %60, %57 : vector<32x256xf32>
    %62 = math.log %61 : vector<32x256xf32>
    %63 = arith.addf %59, %62 : vector<32x256xf32>
    %c96 = arith.constant 96 : index
    %c0_43 = arith.constant 0 : index
    %64 = vector.load %arg9[%c96, %c0_43] : memref<192x256xf32, #tpu.memory_space<vmem>>, vector<32x256xf32>
    tpu.vector_store %arg9[%c96, %c0_43], %63 {strides = array<i32>} : memref<192x256xf32, #tpu.memory_space<vmem>>, vector<32x256xf32>,
    %c3_44 = arith.constant 3 : index
    %c0_45 = arith.constant 0 : index
    %c0_46 = arith.constant 0 : index
    %65 = vector.load %arg6[%c3_44, %c0_45, %c0_46] : memref<5x32x192xf32, #tpu.memory_space<vmem>>, vector<1x32x128xf32>
    %66 = vector.shape_cast %65 : vector<1x32x128xf32> to vector<32x128xf32>
    %c0_47 = arith.constant 0 : index
    %c0_48 = arith.constant 0 : index
    %67 = vector.load %arg9[%c0_47, %c0_48] : memref<192x256xf32, #tpu.memory_space<vmem>>, vector<128x256xf32>
    %cst_49 = arith.constant dense<0.000000e+00> : vector<32x256xf32>
    %68 = tpu.matmul %66, %67, %cst_49 {dimension_numbers = #tpu.dot_dimension_numbers<[1], [0], [0], [1], [0, 0, 1, 1], [], []>} : vector<32x128xf32>, vector<128x256xf32>, vector<32x256xf32> -> vector<32x256xf32>
    %c4 = arith.constant 4 : index
    %c0_50 = arith.constant 0 : index
    %c0_51 = arith.constant 0 : index
    %69 = vector.load %arg4[%c4, %c0_50, %c0_51] : memref<6x32x1xf32, #tpu.memory_space<vmem>>, vector<1x32x1xf32>
    %70 = vector.shape_cast %69 : vector<1x32x1xf32> to vector<32x1xf32>
    %71 = vector.broadcast %70 : vector<32x1xf32> to vector<32x256xf32>
    %72 = arith.addf %68, %71 : vector<32x256xf32>
    %73 = math.absf %72 : vector<32x256xf32>
    %cst_52 = arith.constant 0.000000e+00 : f32
    %74 = vector.broadcast %cst_52 : f32 to vector<32x256xf32>
    %75 = arith.subf %74, %73 : vector<32x256xf32>
    %76 = math.exp %75 : vector<32x256xf32>
    %cst_53 = arith.constant 0.000000e+00 : f32
    %77 = vector.broadcast %cst_53 : f32 to vector<32x256xf32>
    %78 = arith.maximumf %72, %77 : vector<32x256xf32>
    %cst_54 = arith.constant 1.000000e+00 : f32
    %79 = vector.broadcast %cst_54 : f32 to vector<32x256xf32>
    %80 = arith.addf %79, %76 : vector<32x256xf32>
    %81 = math.log %80 : vector<32x256xf32>
    %82 = arith.addf %78, %81 : vector<32x256xf32>
    %c128 = arith.constant 128 : index
    %c0_55 = arith.constant 0 : index
    %83 = vector.load %arg9[%c128, %c0_55] : memref<192x256xf32, #tpu.memory_space<vmem>>, vector<32x256xf32>
    tpu.vector_store %arg9[%c128, %c0_55], %82 {strides = array<i32>} : memref<192x256xf32, #tpu.memory_space<vmem>>, vector<32x256xf32>,
    %c4_56 = arith.constant 4 : index
    %c0_57 = arith.constant 0 : index
    %c0_58 = arith.constant 0 : index
    %84 = vector.load %arg6[%c4_56, %c0_57, %c0_58] : memref<5x32x192xf32, #tpu.memory_space<vmem>>, vector<1x32x160xf32>
    %85 = vector.shape_cast %84 : vector<1x32x160xf32> to vector<32x160xf32>
    %c0_59 = arith.constant 0 : index
    %c0_60 = arith.constant 0 : index
    %86 = vector.load %arg9[%c0_59, %c0_60] : memref<192x256xf32, #tpu.memory_space<vmem>>, vector<160x256xf32>
    %cst_61 = arith.constant dense<0.000000e+00> : vector<32x256xf32>
    %87 = tpu.matmul %85, %86, %cst_61 {dimension_numbers = #tpu.dot_dimension_numbers<[1], [0], [0], [1], [0, 0, 1, 1], [], []>} : vector<32x160xf32>, vector<160x256xf32>, vector<32x256xf32> -> vector<32x256xf32>
    %c5 = arith.constant 5 : index
    %c0_62 = arith.constant 0 : index
    %c0_63 = arith.constant 0 : index
    %88 = vector.load %arg4[%c5, %c0_62, %c0_63] : memref<6x32x1xf32, #tpu.memory_space<vmem>>, vector<1x32x1xf32>
    %89 = vector.shape_cast %88 : vector<1x32x1xf32> to vector<32x1xf32>
    %90 = vector.broadcast %89 : vector<32x1xf32> to vector<32x256xf32>
    %91 = arith.addf %87, %90 : vector<32x256xf32>
    %92 = math.absf %91 : vector<32x256xf32>
    %cst_64 = arith.constant 0.000000e+00 : f32
    %93 = vector.broadcast %cst_64 : f32 to vector<32x256xf32>
    %94 = arith.subf %93, %92 : vector<32x256xf32>
    %95 = math.exp %94 : vector<32x256xf32>
    %cst_65 = arith.constant 0.000000e+00 : f32
    %96 = vector.broadcast %cst_65 : f32 to vector<32x256xf32>
    %97 = arith.maximumf %91, %96 : vector<32x256xf32>
    %cst_66 = arith.constant 1.000000e+00 : f32
    %98 = vector.broadcast %cst_66 : f32 to vector<32x256xf32>
    %99 = arith.addf %98, %95 : vector<32x256xf32>
    %100 = math.log %99 : vector<32x256xf32>
    %101 = arith.addf %97, %100 : vector<32x256xf32>
    %c160 = arith.constant 160 : index
    %c0_67 = arith.constant 0 : index
    %102 = vector.load %arg9[%c160, %c0_67] : memref<192x256xf32, #tpu.memory_space<vmem>>, vector<32x256xf32>
    tpu.vector_store %arg9[%c160, %c0_67], %101 {strides = array<i32>} : memref<192x256xf32, #tpu.memory_space<vmem>>, vector<32x256xf32>,
    %c0_68 = arith.constant 0 : index
    %c0_69 = arith.constant 0 : index
    %103 = vector.load %arg9[%c0_68, %c0_69] : memref<192x256xf32, #tpu.memory_space<vmem>>, vector<192x256xf32>
    %c0_70 = arith.constant 0 : index
    %c0_71 = arith.constant 0 : index
    %104 = vector.load %arg5[%c0_70, %c0_71] : memref<192x1xf32, #tpu.memory_space<vmem>>, vector<192x1xf32>
    %105 = vector.broadcast %104 : vector<192x1xf32> to vector<192x256xf32>
    %106 = arith.mulf %103, %105 : vector<192x256xf32>
    %c160_72 = arith.constant 160 : index
    %c0_73 = arith.constant 0 : index
    %107 = vector.load %arg9[%c160_72, %c0_73] : memref<192x256xf32, #tpu.memory_space<vmem>>, vector<32x256xf32>
    %cst_74 = arith.constant 0.000000e+00 : f32
    %108 = vector.broadcast %cst_74 : f32 to vector<32x256xf32>
    %109 = arith.subf %108, %107 : vector<32x256xf32>
    %110 = math.exp %109 : vector<32x256xf32>
    %cst_75 = arith.constant 1.000000e+00 : f32
    %111 = vector.broadcast %cst_75 : f32 to vector<32x256xf32>
    %112 = arith.subf %111, %110 : vector<32x256xf32>
    %113 = vector.extract_strided_slice %106 {offsets = [160, 0], sizes = [32, 256], strides = [1, 1]} : vector<192x256xf32> to vector<32x256xf32>
    %114 = arith.mulf %113, %112 : vector<32x256xf32>
    %115 = vector.extract_strided_slice %106 {offsets = [0, 0], sizes = [160, 256], strides = [1, 1]} : vector<192x256xf32> to vector<160x256xf32>
    %c4_76 = arith.constant 4 : index
    %c0_77 = arith.constant 0 : index
    %c0_78 = arith.constant 0 : index
    %116 = vector.load %arg7[%c4_76, %c0_77, %c0_78] : memref<5x192x32xf32, #tpu.memory_space<vmem>>, vector<1x160x32xf32>
    %117 = vector.shape_cast %116 : vector<1x160x32xf32> to vector<160x32xf32>
    %cst_79 = arith.constant dense<0.000000e+00> : vector<160x256xf32>
    %118 = tpu.matmul %117, %114, %cst_79 {dimension_numbers = #tpu.dot_dimension_numbers<[1], [0], [0], [1], [0, 0, 1, 1], [], []>} : vector<160x32xf32>, vector<32x256xf32>, vector<160x256xf32> -> vector<160x256xf32>
    %119 = arith.addf %115, %118 : vector<160x256xf32>
    %c128_80 = arith.constant 128 : index
    %c0_81 = arith.constant 0 : index
    %120 = vector.load %arg9[%c128_80, %c0_81] : memref<192x256xf32, #tpu.memory_space<vmem>>, vector<32x256xf32>
    %cst_82 = arith.constant 0.000000e+00 : f32
    %121 = vector.broadcast %cst_82 : f32 to vector<32x256xf32>
    %122 = arith.subf %121, %120 : vector<32x256xf32>
    %123 = math.exp %122 : vector<32x256xf32>
    %cst_83 = arith.constant 1.000000e+00 : f32
    %124 = vector.broadcast %cst_83 : f32 to vector<32x256xf32>
    %125 = arith.subf %124, %123 : vector<32x256xf32>
    %126 = vector.extract_strided_slice %119 {offsets = [128, 0], sizes = [32, 256], strides = [1, 1]} : vector<160x256xf32> to vector<32x256xf32>
    %127 = arith.mulf %126, %125 : vector<32x256xf32>
    %128 = vector.extract_strided_slice %119 {offsets = [0, 0], sizes = [128, 256], strides = [1, 1]} : vector<160x256xf32> to vector<128x256xf32>
    %c3_84 = arith.constant 3 : index
    %c0_85 = arith.constant 0 : index
    %c0_86 = arith.constant 0 : index
    %129 = vector.load %arg7[%c3_84, %c0_85, %c0_86] : memref<5x192x32xf32, #tpu.memory_space<vmem>>, vector<1x128x32xf32>
    %130 = vector.shape_cast %129 : vector<1x128x32xf32> to vector<128x32xf32>
    %cst_87 = arith.constant dense<0.000000e+00> : vector<128x256xf32>
    %131 = tpu.matmul %130, %127, %cst_87 {dimension_numbers = #tpu.dot_dimension_numbers<[1], [0], [0], [1], [0, 0, 1, 1], [], []>} : vector<128x32xf32>, vector<32x256xf32>, vector<128x256xf32> -> vector<128x256xf32>
    %132 = arith.addf %128, %131 : vector<128x256xf32>
    %c96_88 = arith.constant 96 : index
    %c0_89 = arith.constant 0 : index
    %133 = vector.load %arg9[%c96_88, %c0_89] : memref<192x256xf32, #tpu.memory_space<vmem>>, vector<32x256xf32>
    %cst_90 = arith.constant 0.000000e+00 : f32
    %134 = vector.broadcast %cst_90 : f32 to vector<32x256xf32>
    %135 = arith.subf %134, %133 : vector<32x256xf32>
    %136 = math.exp %135 : vector<32x256xf32>
    %cst_91 = arith.constant 1.000000e+00 : f32
    %137 = vector.broadcast %cst_91 : f32 to vector<32x256xf32>
    %138 = arith.subf %137, %136 : vector<32x256xf32>
    %139 = vector.extract_strided_slice %132 {offsets = [96, 0], sizes = [32, 256], strides = [1, 1]} : vector<128x256xf32> to vector<32x256xf32>
    %140 = arith.mulf %139, %138 : vector<32x256xf32>
    %141 = vector.extract_strided_slice %132 {offsets = [0, 0], sizes = [96, 256], strides = [1, 1]} : vector<128x256xf32> to vector<96x256xf32>
    %c2_92 = arith.constant 2 : index
    %c0_93 = arith.constant 0 : index
    %c0_94 = arith.constant 0 : index
    %142 = vector.load %arg7[%c2_92, %c0_93, %c0_94] : memref<5x192x32xf32, #tpu.memory_space<vmem>>, vector<1x96x32xf32>
    %143 = vector.shape_cast %142 : vector<1x96x32xf32> to vector<96x32xf32>
    %cst_95 = arith.constant dense<0.000000e+00> : vector<96x256xf32>
    %144 = tpu.matmul %143, %140, %cst_95 {dimension_numbers = #tpu.dot_dimension_numbers<[1], [0], [0], [1], [0, 0, 1, 1], [], []>} : vector<96x32xf32>, vector<32x256xf32>, vector<96x256xf32> -> vector<96x256xf32>
    %145 = arith.addf %141, %144 : vector<96x256xf32>
    %c64_96 = arith.constant 64 : index
    %c0_97 = arith.constant 0 : index
    %146 = vector.load %arg9[%c64_96, %c0_97] : memref<192x256xf32, #tpu.memory_space<vmem>>, vector<32x256xf32>
    %cst_98 = arith.constant 0.000000e+00 : f32
    %147 = vector.broadcast %cst_98 : f32 to vector<32x256xf32>
    %148 = arith.subf %147, %146 : vector<32x256xf32>
    %149 = math.exp %148 : vector<32x256xf32>
    %cst_99 = arith.constant 1.000000e+00 : f32
    %150 = vector.broadcast %cst_99 : f32 to vector<32x256xf32>
    %151 = arith.subf %150, %149 : vector<32x256xf32>
    %152 = vector.extract_strided_slice %145 {offsets = [64, 0], sizes = [32, 256], strides = [1, 1]} : vector<96x256xf32> to vector<32x256xf32>
    %153 = arith.mulf %152, %151 : vector<32x256xf32>
    %154 = vector.extract_strided_slice %145 {offsets = [0, 0], sizes = [64, 256], strides = [1, 1]} : vector<96x256xf32> to vector<64x256xf32>
    %c1_100 = arith.constant 1 : index
    %c0_101 = arith.constant 0 : index
    %c0_102 = arith.constant 0 : index
    %155 = vector.load %arg7[%c1_100, %c0_101, %c0_102] : memref<5x192x32xf32, #tpu.memory_space<vmem>>, vector<1x64x32xf32>
    %156 = vector.shape_cast %155 : vector<1x64x32xf32> to vector<64x32xf32>
    %cst_103 = arith.constant dense<0.000000e+00> : vector<64x256xf32>
    %157 = tpu.matmul %156, %153, %cst_103 {dimension_numbers = #tpu.dot_dimension_numbers<[1], [0], [0], [1], [0, 0, 1, 1], [], []>} : vector<64x32xf32>, vector<32x256xf32>, vector<64x256xf32> -> vector<64x256xf32>
    %158 = arith.addf %154, %157 : vector<64x256xf32>
    %c32_104 = arith.constant 32 : index
    %c0_105 = arith.constant 0 : index
    %159 = vector.load %arg9[%c32_104, %c0_105] : memref<192x256xf32, #tpu.memory_space<vmem>>, vector<32x256xf32>
    %cst_106 = arith.constant 0.000000e+00 : f32
    %160 = vector.broadcast %cst_106 : f32 to vector<32x256xf32>
    %161 = arith.subf %160, %159 : vector<32x256xf32>
    %162 = math.exp %161 : vector<32x256xf32>
    %cst_107 = arith.constant 1.000000e+00 : f32
    %163 = vector.broadcast %cst_107 : f32 to vector<32x256xf32>
    %164 = arith.subf %163, %162 : vector<32x256xf32>
    %165 = vector.extract_strided_slice %158 {offsets = [32, 0], sizes = [32, 256], strides = [1, 1]} : vector<64x256xf32> to vector<32x256xf32>
    %166 = arith.mulf %165, %164 : vector<32x256xf32>
    %167 = vector.extract_strided_slice %158 {offsets = [0, 0], sizes = [32, 256], strides = [1, 1]} : vector<64x256xf32> to vector<32x256xf32>
    %c0_108 = arith.constant 0 : index
    %c0_109 = arith.constant 0 : index
    %c0_110 = arith.constant 0 : index
    %168 = vector.load %arg7[%c0_108, %c0_109, %c0_110] : memref<5x192x32xf32, #tpu.memory_space<vmem>>, vector<1x32x32xf32>
    %169 = vector.shape_cast %168 : vector<1x32x32xf32> to vector<32x32xf32>
    %cst_111 = arith.constant dense<0.000000e+00> : vector<32x256xf32>
    %170 = tpu.matmul %169, %166, %cst_111 {dimension_numbers = #tpu.dot_dimension_numbers<[1], [0], [0], [1], [0, 0, 1, 1], [], []>} : vector<32x32xf32>, vector<32x256xf32>, vector<32x256xf32> -> vector<32x256xf32>
    %171 = arith.addf %167, %170 : vector<32x256xf32>
    %c0_112 = arith.constant 0 : index
    %c0_113 = arith.constant 0 : index
    %172 = vector.load %arg3[%c0_112, %c0_113] : memref<6x32xf32, #tpu.memory_space<vmem>>, vector<6x32xf32>
    %cst_114 = arith.constant dense<0.000000e+00> : vector<6x256xf32>
    %173 = tpu.matmul %172, %171, %cst_114 {dimension_numbers = #tpu.dot_dimension_numbers<[1], [0], [0], [1], [0, 0, 1, 1], [], []>} : vector<6x32xf32>, vector<32x256xf32>, vector<6x256xf32> -> vector<6x256xf32>
    %c0_115 = arith.constant 0 : index
    %c0_116 = arith.constant 0 : index
    %174 = vector.load %arg8[%c0_115, %c0_116] : memref<6x256xf32, #tpu.memory_space<vmem>>, vector<6x256xf32>
    tpu.vector_store %arg8[%c0_115, %c0_116], %173 {strides = array<i32>} : memref<6x256xf32, #tpu.memory_space<vmem>>, vector<6x256xf32>,
    return
  }
  func.func @transform_0(%arg0: i32) -> (i32, i32) {
    %c0_i32 = arith.constant 0 : i32
    %c0_i32_0 = arith.constant 0 : i32
    return %c0_i32, %arg0 : i32, i32
  }
  func.func @transform_1(%arg0: i32) -> (i32, i32) {
    %c0_i32 = arith.constant 0 : i32
    %c0_i32_0 = arith.constant 0 : i32
    %c0_i32_1 = arith.constant 0 : i32
    return %c0_i32, %c0_i32_0 : i32, i32
  }
  func.func @transform_2(%arg0: i32) -> (i32, i32) {
    %c0_i32 = arith.constant 0 : i32
    %c0_i32_0 = arith.constant 0 : i32
    %c0_i32_1 = arith.constant 0 : i32
    return %c0_i32, %c0_i32_0 : i32, i32
  }
  func.func @transform_3(%arg0: i32) -> (i32, i32, i32) {
    %c0_i32 = arith.constant 0 : i32
    %c0_i32_0 = arith.constant 0 : i32
    %c0_i32_1 = arith.constant 0 : i32
    %c0_i32_2 = arith.constant 0 : i32
    return %c0_i32, %c0_i32_0, %c0_i32_1 : i32, i32, i32
  }
  func.func @transform_4(%arg0: i32) -> (i32, i32) {
    %c0_i32 = arith.constant 0 : i32
    %c0_i32_0 = arith.constant 0 : i32
    %c0_i32_1 = arith.constant 0 : i32
    return %c0_i32, %c0_i32_0 : i32, i32
  }
  func.func @transform_5(%arg0: i32) -> (i32, i32, i32) {
    %c0_i32 = arith.constant 0 : i32
    %c0_i32_0 = arith.constant 0 : i32
    %c0_i32_1 = arith.constant 0 : i32
    %c0_i32_2 = arith.constant 0 : i32
    return %c0_i32, %c0_i32_0, %c0_i32_1 : i32, i32, i32
  }
  func.func @transform_6(%arg0: i32) -> (i32, i32, i32) {
    %c0_i32 = arith.constant 0 : i32
    %c0_i32_0 = arith.constant 0 : i32
    %c0_i32_1 = arith.constant 0 : i32
    %c0_i32_2 = arith.constant 0 : i32
    return %c0_i32, %c0_i32_0, %c0_i32_1 : i32, i32, i32
  }
  func.func @transform_7(%arg0: i32) -> (i32, i32) {
    %c0_i32 = arith.constant 0 : i32
    %c0_i32_0 = arith.constant 0 : i32
    return %c0_i32, %arg0 : i32, i32
  }
}

</mosaic_0001>

<bundles_post_ra>
// kernel: tpu_custom_call.1
= control target key start
LH: loop header
LB: loop body
LE: loop exit
PB: predicated region body
PF: predicated region fallthrough
CT: control target
= control target key end

     0   :  { %vm70_vm0 = vcmask 1045504   ;;  %v3174_v2 = vmov 0   ;;  %vm57_vm1 = vcmask 48128   ;;  %s4476_s0 = inlined_call_operand.vmem [shape: f32[6,256], index: 0, kind: input, shape index: {}]   ;;  %s4477_s1 = inlined_call_operand.vmem [shape: f32[32,6], index: 1, kind: input, shape index: {}]   ;;  %s4478_s2 = inlined_call_operand.vmem [shape: f32[6,32], index: 2, kind: input, shape index: {}]   ;;  %s4479_s3 = inlined_call_operand.vmem [shape: f32[6,32,1], index: 3, kind: input, shape index: {}]   ;;  %s4480_s4 = inlined_call_operand.vmem [shape: f32[192,1], index: 4, kind: input, shape index: {}]   ;;  %s4481_s5 = inlined_call_operand.vmem [shape: f32[5,32,192], index: 5, kind: input, shape index: {}]   ;;  %s4482_s6 = inlined_call_operand.vmem [shape: f32[5,192,32], index: 6, kind: input, shape index: {}]   ;;  %s4483_s7 = inlined_call_operand.hbm [shape: f32[6,256], index: 7, kind: output, shape index: {}]  }
   0x1   :  { %v27_v0 = vld [vmem:[%s4476_s0] sm:$0x3f]  ;;  %v28_v1 = vld [vmem:[%s4476_s0 + $0x8] sm:$0x3f]  ;;  %2907 = vset.pattern.permute.xlu2 %v3174_v2  ;;  %2906 = vset.pattern.permute.xlu1 %v3174_v2  ;;  %v2656_v3 = vld [vmem:[%s4479_s3 + $0x38] sm:$0xff] }
   0x2   :  { %v36_v4 = vld [vmem:[%s4479_s3 + $0x18] sm:$0xff]  ;;  %v34_v5 = vld [vmem:[%s4479_s3 + $0x8] sm:$0xff]  ;;  %2905 = vset.pattern.permute.xlu0 %v3174_v2  ;;  %2643 = vmatpush.msk.msra.mxu0 %vm70_vm0, %v27_v0  ;;  %v29_v6 = vld [vmem:[%s4477_s1] sm:$0xff] }
   0x3   :  { %2648 = vmatpush.msk.msra.mxu1 %vm70_vm0, %v28_v1  ;;  %177 = vperm.xlu2 %2907, %v2656_v3  }
   0x4   :  { %54 = vperm.xlu0 %2905, %v36_v4   ;;  %44 = vperm.xlu1 %2906, %v34_v5  }
   0x5   :  { %2644 = vmatmul.msk.f32.vlgmr.msra.gmra.mxu0 %vm57_vm1, %v29_v6  ;;  %2649 = vmatmul.msk.f32.vlgmr.msra.gmra.mxu1 %vm57_vm1, %v29_v6 }
   0x6   :  { %12 = vsyncpa [#allocation4], 0  ;;  %v2655_v7 = vld [vmem:[%s4479_s3 + $0x30] sm:$0xff]  ;;  %v33_v9 = vld [vmem:[%s4479_s3] sm:$0xff]  ;;  %vm180_vm2 = vcmask 261120   ;;  %vm377_vm3 = vcmask 523264  }
   0x7   :  { %v35_v8 = vld [vmem:[%s4479_s3 + $0x10] sm:$0xff]  ;;  %v30_v10 = vld [vmem:[%s4477_s1 + $0x8] sm:$0xff]  ;;  %v2672_v11 = vld [vmem:[%s4479_s3 + $0x58] sm:$0xff]  ;;  %vm582_vm4 = vcmask 785408   ;;  %s3175_s9 = smov [#allocation3]   ;;  %s2634_s0 = sshll.u32 %s4483_s7, 4  ;;  %s2635_s0 = int_to_ptr.hbm [resolvable:$true] %s2634_s0 }
   0x8   :  { %v2654_v12 = vld [vmem:[%s4479_s3 + $0x28] sm:$0xff]  ;;  %v2653_v13 = vld [vmem:[%s4479_s3 + $0x20] sm:$0xff]  ;;  %v31_v14 = vld [vmem:[%s4477_s1 + $0x10] sm:$0xff]  ;;  %s2632_s10 = sshll.u32 %s3175_s9, 4  ;;  %s2633_s10 = int_to_ptr.vmem [resolvable:$true] %s2632_s10 }
   0x9   :  { %v2669_v15 = vld [vmem:[%s4479_s3 + $0x40] sm:$0xff]  ;;  %v2671_v16 = vld [vmem:[%s4479_s3 + $0x50] sm:$0xff]  ;;  %v2670_v17 = vld [vmem:[%s4479_s3 + $0x48] sm:$0xff] }
   0xa   :  { %v32_v18 = vld [vmem:[%s4477_s1 + $0x18] sm:$0xff]  ;;  %v2686_v19 = vld [vmem:[%s4479_s3 + $0x68] sm:$0xff]  ;;  %v2687_v21 = vld [vmem:[%s4479_s3 + $0x70] sm:$0xff] }
   0xb   :  { %172 = vperm.xlu2 %2907, %v2655_v7   ;;  %v2688_v20 = vld [vmem:[%s4479_s3 + $0x78] sm:$0xff]  ;;  %v2703_v22 = vld [vmem:[%s4479_s3 + $0x90] sm:$0xff]  ;;  %v2685_v23 = vld [vmem:[%s4479_s3 + $0x60] sm:$0xff] }
   0xc   :  { %49 = vperm.xlu0 %2905, %v35_v8   ;;  %39 = vperm.xlu1 %2906, %v33_v9   ;;  %v2704_v24 = vld [vmem:[%s4479_s3 + $0x98] sm:$0xff]  ;;  %v2702_v26 = vld [vmem:[%s4479_s3 + $0x88] sm:$0xff]  ;;  %v2701_v27 = vld [vmem:[%s4479_s3 + $0x80] sm:$0xff] }
   0xd   :  { %2645 = vmatmul.msk.f32.gmra.mxu0 %vm57_vm1, %v30_v10  ;;  %2650 = vmatmul.msk.f32.gmra.mxu1 %vm57_vm1, %v30_v10  ;;  %v2716_v25 = vld [vmem:[%s4479_s3 + $0xb8] sm:$0xff]  ;;  %v2713_v28 = vld [vmem:[%s4479_s3 + $0xa0] sm:$0xff]  ;;  %v2715_v29 = vld [vmem:[%s4479_s3 + $0xb0] sm:$0xff] }
   0xe   :  { %v2714_v30 = vld [vmem:[%s4479_s3 + $0xa8] sm:$0xff]  ;;  %v1286_v32 = vld [vmem:[%s4480_s4 + $0xb8] sm:$0xff]  ;;  %v1285_v33 = vld [vmem:[%s4480_s4 + $0xb0] sm:$0xff] }
   0xf   :  { %v1284_v31 = vld [vmem:[%s4480_s4 + $0xa8] sm:$0xff]  ;;  %v1281_v34 = vld [vmem:[%s4480_s4 + $0x90] sm:$0xff]  ;;  %v1283_v35 = vld [vmem:[%s4480_s4 + $0xa0] sm:$0xff] }
  0x10   :  { %v1282_v36 = vld [vmem:[%s4480_s4 + $0x98] sm:$0xff]  ;;  %v1280_v38 = vld [vmem:[%s4480_s4 + $0x88] sm:$0xff]  ;;  %v1279_v39 = vld [vmem:[%s4480_s4 + $0x80] sm:$0xff] }
  0x11   :  { %v1278_v37 = vld [vmem:[%s4480_s4 + $0x78] sm:$0xff]  ;;  %v1275_v40 = vld [vmem:[%s4480_s4 + $0x60] sm:$0xff]  ;;  %v1277_v41 = vld [vmem:[%s4480_s4 + $0x70] sm:$0xff] }
  0x12   :  { %v1276_v42 = vld [vmem:[%s4480_s4 + $0x68] sm:$0xff]  ;;  %v1274_v44 = vld [vmem:[%s4480_s4 + $0x58] sm:$0xff]  ;;  %v1273_v45 = vld [vmem:[%s4480_s4 + $0x50] sm:$0xff] }
  0x13   :  { %374 = vperm.xlu2 %2907, %v2672_v11   ;;  %v1272_v43 = vld [vmem:[%s4480_s4 + $0x48] sm:$0xff]  ;;  %v1269_v46 = vld [vmem:[%s4480_s4 + $0x30] sm:$0xff]  ;;  %v1271_v47 = vld [vmem:[%s4480_s4 + $0x40] sm:$0xff] }
  0x14   :  { %167 = vperm.xlu0 %2905, %v2654_v12   ;;  %162 = vperm.xlu1 %2906, %v2653_v13   ;;  %v1270_v48 = vld [vmem:[%s4480_s4 + $0x38] sm:$0xff]  ;;  %v1268_v50 = vld [vmem:[%s4480_s4 + $0x28] sm:$0xff]  ;;  %v1267_v51 = vld [vmem:[%s4480_s4 + $0x20] sm:$0xff] }
  0x15   :  { %2646 = vmatmul.msk.f32.gmra.mxu0 %vm57_vm1, %v31_v14  ;;  %2651 = vmatmul.msk.f32.gmra.mxu1 %vm57_vm1, %v31_v14  ;;  %v1266_v49 = vld [vmem:[%s4480_s4 + $0x18] sm:$0xff]  ;;  %v1263_v52 = vld [vmem:[%s4480_s4] sm:$0xff]  ;;  %v1265_v53 = vld [vmem:[%s4480_s4 + $0x10] sm:$0xff] }
  0x16   :  { %v1264_v54 = vld [vmem:[%s4480_s4 + $0x8] sm:$0xff]  ;;  %v143_v11 = vld [vmem:[%s4481_s5] sm:$0xff]  ;;  %v144_v12 = vld [vmem:[%s4481_s5 + $0x10] sm:$0xff] }
  0x17   :  { %v145_v13 = vld [vmem:[%s4481_s5 + $0x20] sm:$0xff]  ;;  %v146_v14 = vld [vmem:[%s4481_s5 + $0x30] sm:$0xff] }
  0x1b   :  { %359 = vperm.xlu2 %2907, %v2669_v15  }
  0x1c   :  { %369 = vperm.xlu0 %2905, %v2671_v16   ;;  %364 = vperm.xlu1 %2906, %v2670_v17  }
  0x1d   :  { %2647 = vmatmul.msk.f32.gmra.mxu0 %vm57_vm1, %v32_v18  ;;  %2652 = vmatmul.msk.f32.gmra.mxu1 %vm57_vm1, %v32_v18 }
  0x23   :  { %569 = vperm.xlu2 %2907, %v2686_v19  }
  0x24   :  { %579 = vperm.xlu0 %2905, %v2688_v20   ;;  %574 = vperm.xlu1 %2906, %v2687_v21  }
  0x2b   :  { %787 = vperm.xlu2 %2907, %v2703_v22  }
  0x2c   :  { %564 = vperm.xlu0 %2905, %v2685_v23   ;;  %792 = vperm.xlu1 %2906, %v2704_v24  }
  0x33   :  { %1004 = vperm.xlu2 %2907, %v2716_v25  }
  0x34   :  { %782 = vperm.xlu0 %2905, %v2702_v26   ;;  %777 = vperm.xlu1 %2906, %v2701_v27  }
  0x3b   :  { %989 = vperm.xlu2 %2907, %v2713_v28  }
  0x3c   :  { %999 = vperm.xlu0 %2905, %v2715_v29   ;;  %994 = vperm.xlu1 %2906, %v2714_v30  }
  0x43   :  { %1394 = vperm.xlu2 %2907, %v1284_v31  }
  0x44   :  { %1404 = vperm.xlu0 %2905, %v1286_v32   ;;  %1399 = vperm.xlu1 %2906, %v1285_v33  }
  0x4b   :  { %1379 = vperm.xlu2 %2907, %v1281_v34  }
  0x4c   :  { %1389 = vperm.xlu0 %2905, %v1283_v35   ;;  %1384 = vperm.xlu1 %2906, %v1282_v36  }
  0x53   :  { %1364 = vperm.xlu2 %2907, %v1278_v37  }
  0x54   :  { %1374 = vperm.xlu0 %2905, %v1280_v38   ;;  %1369 = vperm.xlu1 %2906, %v1279_v39  }
  0x5b   :  { %1349 = vperm.xlu2 %2907, %v1275_v40  }
  0x5c   :  { %1359 = vperm.xlu0 %2905, %v1277_v41   ;;  %1354 = vperm.xlu1 %2906, %v1276_v42  }
  0x5d   :  { %v178_v17 = vpop.permute.xlu2 %177 }
  0x63   :  { %1334 = vperm.xlu2 %2907, %v1272_v43  }
  0x64   :  { %1344 = vperm.xlu0 %2905, %v1274_v44   ;;  %1339 = vperm.xlu1 %2906, %v1273_v45  }
  0x65   :  { %v173_v27 = vpop.permute.xlu2 %172 }
  0x6b   :  { %1319 = vperm.xlu2 %2907, %v1269_v46  }
  0x6c   :  { %1329 = vperm.xlu0 %2905, %v1271_v47   ;;  %1324 = vperm.xlu1 %2906, %v1270_v48  }
  0x73   :  { %1304 = vperm.xlu2 %2907, %v1266_v49  }
  0x74   :  { %1314 = vperm.xlu0 %2905, %v1268_v50   ;;  %1309 = vperm.xlu1 %2906, %v1267_v51  }
  0x76   :  { %v55_v59 = vpop.permute.xlu0 %54  ;;  %v45_v62 = vpop.permute.xlu1 %44 }
  0x7b   :  { %1289 = vperm.xlu2 %2907, %v1263_v52  }
  0x7c   :  { %1299 = vperm.xlu0 %2905, %v1265_v53   ;;  %1294 = vperm.xlu1 %2906, %v1264_v54  }
  0x7e   :  { %v50_v3 = vpop.permute.xlu0 %49  ;;  %v40_v8 = vpop.permute.xlu1 %39 }
  0x82   :  { %v94_v55 = vpop.f32.mrf.mxu0  ;;  %v123_v56 = vpop.f32.mrf.mxu1 }
  0x83   :  { %v3402_v9 = vadd.f32 %v94_v55, %v40_v8  ;;  %v3404_v10 = vadd.f32 %v123_v56, %v40_v8 }
  0x85   :  { %4514 = vst [vmem:[#allocation12_spill] sm:$0xff] %v3402_v9 }
  0x86   :  { %4515 = vst [vmem:[#allocation13_spill] sm:$0xff] %v3404_v10  ;;  %v163_v18 = vpop.permute.xlu1 %162  ;;  %v168_v21 = vpop.permute.xlu0 %167 }
  0x8a   :  { %v97_v57 = vpop.f32.mrf.mxu0  ;;  %v126_v58 = vpop.f32.mrf.mxu1 }
  0x8b   :  { %v3396_v6 = vadd.f32 %v97_v57, %v45_v62  ;;  %v3398_v7 = vadd.f32 %v126_v58, %v45_v62 }
  0x8d   :  { %4512 = vst [vmem:[#allocation10_spill] sm:$0xff] %v3396_v6 }
  0x8e   :  { %4513 = vst [vmem:[#allocation11_spill] sm:$0xff] %v3398_v7 }
  0x92   :  { %v100_v60 = vpop.f32.mrf.mxu0  ;;  %v129_v61 = vpop.f32.mrf.mxu1 }
  0x93   :  { %v3390_v4 = vadd.f32 %v100_v60, %v50_v3  ;;  %v3392_v5 = vadd.f32 %v129_v61, %v50_v3 }
  0x95   :  { %4510 = vst [vmem:[#allocation8_spill] sm:$0xff] %v3390_v4 }
  0x96   :  { %4511 = vst [vmem:[#allocation9_spill] sm:$0xff] %v3392_v5 }
  0x9a   :  { %v103_v63 = vpop.f32.mrf.mxu0  ;;  %v132_v0 = vpop.f32.mrf.mxu1 }
  0x9b   :  { %v3386_v1 = vadd.f32 %v103_v63, %v55_v59  ;;  %v3388_v2 = vadd.f32 %v132_v0, %v55_v59 }
  0x9d   :  { %4508 = vst [vmem:[#allocation6_spill] sm:$0xff] %v3386_v1  ;;  %205 = vmatpush.msra.mxu2 %v3386_v1  ;;  %234 = vmatpush.msra.mxu3 %v3388_v2 }
  0x9e   :  { %4509 = vst [vmem:[#allocation7_spill] sm:$0xff] %v3388_v2 }
  0x9f   :  { %206 = vmatpush.msra.mxu2 %v3390_v4  ;;  %235 = vmatpush.msra.mxu3 %v3392_v5 }
  0xa1   :  { %207 = vmatpush.msra.mxu2 %v3396_v6  ;;  %236 = vmatpush.msra.mxu3 %v3398_v7 }
  0xa3   :  { %208 = vmatpush.msra.mxu2 %v3402_v9  ;;  %237 = vmatpush.msra.mxu3 %v3404_v10 }
  0xa4   :  { %2657 = vmatmul.msk.f32.vlgmr.msra.gmra.mxu2 %vm180_vm2, %v143_v11  ;;  %2661 = vmatmul.msk.f32.vlgmr.msra.gmra.mxu3 %vm180_vm2, %v143_v11 }
  0xac   :  { %2658 = vmatmul.msk.f32.gmra.mxu2 %vm180_vm2, %v144_v12  ;;  %2662 = vmatmul.msk.f32.gmra.mxu3 %vm180_vm2, %v144_v12 }
  0xb4   :  { %2659 = vmatmul.msk.f32.gmra.mxu2 %vm180_vm2, %v145_v13  ;;  %2663 = vmatmul.msk.f32.gmra.mxu3 %vm180_vm2, %v145_v13 }
  0xbc   :  { %2660 = vmatmul.msk.f32.gmra.mxu2 %vm180_vm2, %v146_v14  ;;  %2664 = vmatmul.msk.f32.gmra.mxu3 %vm180_vm2, %v146_v14 }
 0x127   :  { %v210_v15 = vpop.f32.mrf.mxu2  ;;  %v239_v16 = vpop.f32.mrf.mxu3 }
 0x128   :  { %v3430_v22 = vadd.f32 %v210_v15, %v163_v18  ;;  %v3438_v28 = vadd.f32 %v239_v16, %v163_v18 }
 0x12a   :  { %v251_v24 = vand.u32 2147483647, %v3430_v22  ;;  %v252_v38 = vand.u32 2147483647, %v3438_v28 }
 0x12c   :  { %v259_v31 = vsub.f32 0.0, %v251_v24  ;;  %v260_v45 = vsub.f32 0.0, %v252_v38 }
 0x12e   :  { %v267_v39 = vmul.f32 1.442695, %v259_v31  ;;  %v269_v53 = vmul.f32 1.442695, %v260_v45 }
 0x12f   :  { %v213_v19 = vpop.f32.mrf.mxu2  ;;  %v242_v20 = vpop.f32.mrf.mxu3 }
 0x130   :  { %v3432_v23 = vadd.f32 %v213_v19, %v168_v21  ;;  %v3436_v26 = vadd.f32 %v242_v20, %v168_v21  ;;  %2908 = vpow2.f32 %v267_v39 }
 0x132   :  { %v253_v25 = vand.u32 2147483647, %v3432_v23  ;;  %v254_v35 = vand.u32 2147483647, %v3436_v26 }
 0x134   :  { %v261_v34 = vsub.f32 0.0, %v253_v25  ;;  %v262_v43 = vsub.f32 0.0, %v254_v35 }
 0x136   :  { %v271_v42 = vmul.f32 1.442695, %v261_v34  ;;  %v273_v51 = vmul.f32 1.442695, %v262_v43  ;;  %v2909_v57 = vpop.eup %2908 }
 0x137   :  { %v216_v29 = vpop.f32.mrf.mxu2  ;;  %v245_v30 = vpop.f32.mrf.mxu3  ;;  %v291_v63 = vadd.f32 1.0, %v2909_v57 }
 0x138   :  { %v3440_v32 = vadd.f32 %v216_v29, %v173_v27  ;;  %v3442_v33 = vadd.f32 %v245_v30, %v173_v27  ;;  %2910 = vpow2.f32 %v271_v42  ;;  %v285_v42 = vmax.f32 %v3432_v23, 0.0  ;;  %v375_v57 = vpop.permute.xlu2 %374 }
 0x13a   :  { %v255_v36 = vand.u32 2147483647, %v3440_v32  ;;  %v256_v37 = vand.u32 2147483647, %v3442_v33  ;;  %v287_v35 = vmax.f32 %v3440_v32, 0.0  ;;  %v288_v43 = vmax.f32 %v3442_v33, 0.0 }
 0x13b   :  { %v283_v32 = vmax.f32 %v3430_v22, 0.0  ;;  %v284_v33 = vmax.f32 %v3438_v28, 0.0  ;;  %v2666_v28 = vld [vmem:[%s4481_s5 + $0x50] sm:$0xff] }
 0x13c   :  { %v263_v40 = vsub.f32 0.0, %v255_v36  ;;  %v264_v41 = vsub.f32 0.0, %v256_v37 }
 0x13e   :  { %v275_v44 = vmul.f32 1.442695, %v263_v40  ;;  %v277_v46 = vmul.f32 1.442695, %v264_v41  ;;  %v2911_v59 = vpop.eup %2910 }
 0x13f   :  { %v219_v47 = vpop.f32.mrf.mxu2  ;;  %v248_v48 = vpop.f32.mrf.mxu3  ;;  %v293_v0 = vadd.f32 1.0, %v2911_v59 }
 0x140   :  { %v220_v49 = vadd.f32 %v219_v47, %v178_v17  ;;  %v3448_v50 = vadd.f32 %v248_v48, %v178_v17  ;;  %2912 = vpow2.f32 %v275_v44 }
 0x141   :  { %2914 = vpow2.f32 %v277_v46 }
 0x142   :  { %v257_v52 = vand.u32 2147483647, %v220_v49  ;;  %v258_v54 = vand.u32 2147483647, %v3448_v50  ;;  %2916 = vpow2.f32 %v273_v51  ;;  %v289_v30 = vmax.f32 %v220_v49, 0.0 }
 0x143   :  { %2918 = vpow2.f32 %v269_v53  ;;  %v290_v36 = vmax.f32 %v3448_v50, 0.0  ;;  %v286_v50 = vmax.f32 %v3436_v26, 0.0  ;;  %v2665_v26 = vld [vmem:[%s4481_s5 + $0x40] sm:$0xff] }
 0x144   :  { %v265_v55 = vsub.f32 0.0, %v257_v52  ;;  %v266_v56 = vsub.f32 0.0, %v258_v54  ;;  %v2667_v53 = vld [vmem:[%s4481_s5 + $0x60] sm:$0xff]  ;;  %v2668_v54 = vld [vmem:[%s4481_s5 + $0x70] sm:$0xff] }
 0x146   :  { %v279_v58 = vmul.f32 1.442695, %v265_v55  ;;  %v281_v60 = vmul.f32 1.442695, %v266_v56  ;;  %v2913_v61 = vpop.eup %2912 }
 0x147   :  { %v2915_v62 = vpop.eup %2914  ;;  %v295_v8 = vadd.f32 1.0, %v2913_v61 }
 0x148   :  { %2920 = vpow2.f32 %v279_v58  ;;  %v2917_v3 = vpop.eup %2916  ;;  %v296_v11 = vadd.f32 1.0, %v2915_v62  ;;  %v360_v62 = vpop.permute.xlu2 %359 }
 0x149   :  { %2922 = vpow2.f32 %v281_v60  ;;  %v2919_v12 = vpop.eup %2918  ;;  %v294_v14 = vadd.f32 1.0, %v2917_v3  ;;  %v365_v60 = vpop.permute.xlu1 %364 }
 0x14a   :  { %2924 = vlog2.f32 %v291_v63  ;;  %v292_v17 = vadd.f32 1.0, %v2919_v12 }
 0x14b   :  { %2926 = vlog2.f32 %v293_v0  ;;  %v370_v0 = vpop.permute.xlu0 %369 }
 0x14c   :  { %2928 = vlog2.f32 %v295_v8 }
 0x14d   :  { %2930 = vlog2.f32 %v296_v11 }
 0x14e   :  { %v2921_v13 = vpop.eup %2920 }
 0x14f   :  { %v297_v15 = vadd.f32 1.0, %v2921_v13  ;;  %v2923_v16 = vpop.eup %2922 }
 0x150   :  { %v298_v18 = vadd.f32 1.0, %v2923_v16  ;;  %v2925_v19 = vpop.eup %2924 }
 0x151   :  { %2932 = vlog2.f32 %v297_v15  ;;  %v2927_v20 = vpop.eup %2926  ;;  %v300_v44 = vmul.f32 0.6931472, %v2925_v19 }
 0x152   :  { %2934 = vlog2.f32 %v294_v14  ;;  %v2929_v21 = vpop.eup %2928  ;;  %v304_v37 = vmul.f32 0.6931472, %v2927_v20 }
 0x153   :  { %2936 = vlog2.f32 %v298_v18  ;;  %v2931_v24 = vpop.eup %2930  ;;  %v308_v29 = vmul.f32 0.6931472, %v2929_v21  ;;  %v3470_v23 = vadd.f32 %v300_v44, %v283_v32 }
 0x154   :  { %2938 = vlog2.f32 %v292_v17  ;;  %v310_v38 = vmul.f32 0.6931472, %v2931_v24  ;;  %v3463_v49 = vadd.f32 %v304_v37, %v285_v42 }
 0x155   :  { %v3457_v46 = vadd.f32 %v308_v29, %v287_v35  ;;  %4521 = vst [vmem:[#allocation19_spill] sm:$0xff] %v3470_v23 }
 0x156   :  { %4519 = vst [vmem:[#allocation17_spill] sm:$0xff] %v3463_v49  ;;  %v3466_v51 = vadd.f32 %v310_v38, %v288_v43 }
 0x157   :  { %v2933_v25 = vpop.eup %2932  ;;  %4517 = vst [vmem:[#allocation15_spill] sm:$0xff] %v3457_v46 }
 0x158   :  { %v2935_v27 = vpop.eup %2934  ;;  %v312_v31 = vmul.f32 0.6931472, %v2933_v25  ;;  %4520 = vst [vmem:[#allocation18_spill] sm:$0xff] %v3466_v51 }
 0x159   :  { %v2937_v34 = vpop.eup %2936  ;;  %v306_v45 = vmul.f32 0.6931472, %v2935_v27 }
 0x15a   :  { %v3453_v39 = vadd.f32 %v312_v31, %v289_v30  ;;  %v314_v40 = vmul.f32 0.6931472, %v2937_v34  ;;  %v2939_v41 = vpop.eup %2938 }
 0x15b   :  { %v302_v48 = vmul.f32 0.6931472, %v2939_v41  ;;  %v3473_v52 = vadd.f32 %v306_v45, %v286_v50 }
 0x15c   :  { %4516 = vst [vmem:[#allocation14_spill] sm:$0xff] %v3453_v39  ;;  %v3459_v47 = vadd.f32 %v314_v40, %v290_v36  ;;  %398 = vmatpush.msrb.mxu0 %v3453_v39 }
 0x15d   :  { %4522 = vst [vmem:[#allocation20_spill] sm:$0xff] %v3473_v52  ;;  %v3477_v22 = vadd.f32 %v302_v48, %v284_v33 }
 0x15e   :  { %4518 = vst [vmem:[#allocation16_spill] sm:$0xff] %v3459_v47  ;;  %427 = vmatpush.msrb.mxu1 %v3459_v47  ;;  %399 = vmatpush.msrb.mxu0 %v3457_v46 }
 0x15f   :  { %4523 = vst [vmem:[#allocation21_spill] sm:$0xff] %v3477_v22 }
 0x160   :  { %428 = vmatpush.msrb.mxu1 %v3466_v51  ;;  %400 = vmatpush.msrb.mxu0 %v3463_v49 }
 0x162   :  { %429 = vmatpush.msrb.mxu1 %v3473_v52  ;;  %401 = vmatpush.msrb.mxu0 %v3470_v23 }
 0x164   :  { %430 = vmatpush.msrb.mxu1 %v3477_v22  ;;  %402 = vmatpush.msrb.mxu0 %v3386_v1 }
 0x166   :  { %431 = vmatpush.msrb.mxu1 %v3388_v2  ;;  %403 = vmatpush.msrb.mxu0 %v3390_v4 }
 0x168   :  { %432 = vmatpush.msrb.mxu1 %v3392_v5  ;;  %404 = vmatpush.msrb.mxu0 %v3396_v6 }
 0x16a   :  { %433 = vmatpush.msrb.mxu1 %v3398_v7  ;;  %405 = vmatpush.msrb.mxu0 %v3402_v9 }
 0x16b   :  { %2673 = vmatmul.msk.f32.vlgmr.msrb.gmra.mxu0 %vm377_vm3, %v2665_v26 }
 0x16c   :  { %434 = vmatpush.msrb.mxu1 %v3404_v10 }
 0x16d   :  { %2677 = vmatmul.msk.f32.vlgmr.msrb.gmra.mxu1 %vm377_vm3, %v2665_v26 }
 0x173   :  { %2674 = vmatmul.msk.f32.gmra.mxu0 %vm377_vm3, %v2666_v28 }
 0x175   :  { %2678 = vmatmul.msk.f32.gmra.mxu1 %vm377_vm3, %v2666_v28 }
 0x17b   :  { %2675 = vmatmul.msk.f32.gmra.mxu0 %vm377_vm3, %v2667_v53 }
 0x17d   :  { %2679 = vmatmul.msk.f32.gmra.mxu1 %vm377_vm3, %v2667_v53 }
 0x183   :  { %2676 = vmatmul.msk.f32.gmra.mxu0 %vm377_vm3, %v2668_v54 }
 0x185   :  { %2680 = vmatmul.msk.f32.gmra.mxu1 %vm377_vm3, %v2668_v54 }
 0x1e8   :  { %v407_v55 = vpop.f32.mrf.mxu0 }
 0x1e9   :  { %v3504_v63 = vadd.f32 %v407_v55, %v360_v62 }
 0x1ea   :  { %v436_v56 = vpop.f32.mrf.mxu1 }
 0x1eb   :  { %v448_v13 = vand.u32 2147483647, %v3504_v63  ;;  %v3512_v15 = vadd.f32 %v436_v56, %v360_v62 }
 0x1ed   :  { %v456_v24 = vsub.f32 0.0, %v448_v13  ;;  %v449_v25 = vand.u32 2147483647, %v3512_v15 }
 0x1ef   :  { %v464_v36 = vmul.f32 1.442695, %v456_v24  ;;  %v457_v38 = vsub.f32 0.0, %v449_v25 }
 0x1f0   :  { %v410_v58 = vpop.f32.mrf.mxu0 }
 0x1f1   :  { %v3502_v61 = vadd.f32 %v410_v58, %v365_v60  ;;  %v466_v32 = vmul.f32 1.442695, %v457_v38 }
 0x1f2   :  { %v439_v59 = vpop.f32.mrf.mxu1 }
 0x1f3   :  { %v450_v3 = vand.u32 2147483647, %v3502_v61  ;;  %v3507_v8 = vadd.f32 %v439_v59, %v365_v60  ;;  %v482_v38 = vmax.f32 %v3502_v61, 0.0 }
 0x1f5   :  { %v458_v18 = vsub.f32 0.0, %v450_v3  ;;  %v451_v19 = vand.u32 2147483647, %v3507_v8 }
 0x1f7   :  { %v468_v30 = vmul.f32 1.442695, %v458_v18  ;;  %v459_v31 = vsub.f32 0.0, %v451_v19 }
 0x1f8   :  { %v413_v11 = vpop.f32.mrf.mxu0 }
 0x1f9   :  { %v3509_v12 = vadd.f32 %v413_v11, %v370_v0  ;;  %v470_v42 = vmul.f32 1.442695, %v459_v31 }
 0x1fa   :  { %v442_v14 = vpop.f32.mrf.mxu1 }
 0x1fb   :  { %v452_v16 = vand.u32 2147483647, %v3509_v12  ;;  %v3515_v17 = vadd.f32 %v442_v14, %v370_v0  ;;  %v484_v31 = vmax.f32 %v3509_v12, 0.0 }
 0x1fd   :  { %v460_v20 = vsub.f32 0.0, %v452_v16  ;;  %v453_v21 = vand.u32 2147483647, %v3515_v17 }
 0x1ff   :  { %v472_v27 = vmul.f32 1.442695, %v460_v20  ;;  %v461_v29 = vsub.f32 0.0, %v453_v21 }
 0x200   :  { %v416_v34 = vpop.f32.mrf.mxu0 }
 0x201   :  { %v417_v35 = vadd.f32 %v416_v34, %v375_v57  ;;  %2940 = vpow2.f32 %v472_v27  ;;  %v474_v40 = vmul.f32 1.442695, %v461_v29 }
 0x202   :  { %v445_v37 = vpop.f32.mrf.mxu1  ;;  %2942 = vpow2.f32 %v468_v30 }
 0x203   :  { %v454_v41 = vand.u32 2147483647, %v417_v35  ;;  %v3520_v43 = vadd.f32 %v445_v37, %v375_v57  ;;  %2944 = vpow2.f32 %v464_v36  ;;  %v486_v24 = vmax.f32 %v417_v35, 0.0 }
 0x204   :  { %2946 = vpow2.f32 %v474_v40 }
 0x205   :  { %v462_v44 = vsub.f32 0.0, %v454_v41  ;;  %v455_v45 = vand.u32 2147483647, %v3520_v43  ;;  %2948 = vpow2.f32 %v470_v42  ;;  %v487_v42 = vmax.f32 %v3520_v43, 0.0 }
 0x206   :  { %v483_v43 = vmax.f32 %v3507_v8, 0.0  ;;  %v2681_v8 = vld [vmem:[%s4481_s5 + $0x80] sm:$0xff] }
 0x207   :  { %v476_v48 = vmul.f32 1.442695, %v462_v44  ;;  %v463_v50 = vsub.f32 0.0, %v455_v45  ;;  %v2941_v33 = vpop.eup %2940  ;;  %v480_v45 = vmax.f32 %v3504_v63, 0.0  ;;  %v481_v63 = vmax.f32 %v3512_v15, 0.0  ;;  %v2682_v15 = vld [vmem:[%s4481_s5 + $0x90] sm:$0xff] }
 0x208   :  { %v2943_v26 = vpop.eup %2942  ;;  %v492_v54 = vadd.f32 1.0, %v2941_v33 }
 0x209   :  { %2950 = vpow2.f32 %v476_v48  ;;  %v478_v28 = vmul.f32 1.442695, %v463_v50  ;;  %v2945_v53 = vpop.eup %2944  ;;  %v490_v56 = vadd.f32 1.0, %v2943_v26  ;;  %v485_v48 = vmax.f32 %v3515_v17, 0.0 }
 0x20a   :  { %2952 = vpow2.f32 %v466_v32  ;;  %v2947_v55 = vpop.eup %2946  ;;  %v488_v59 = vadd.f32 1.0, %v2945_v53  ;;  %v2683_v53 = vld [vmem:[%s4481_s5 + $0xa0] sm:$0xff] }
 0x20b   :  { %2954 = vpow2.f32 %v478_v28  ;;  %v2949_v57 = vpop.eup %2948  ;;  %v493_v60 = vadd.f32 1.0, %v2947_v55 }
 0x20c   :  { %2956 = vlog2.f32 %v492_v54  ;;  %v491_v3 = vadd.f32 1.0, %v2949_v57  ;;  %v2684_v54 = vld [vmem:[%s4481_s5 + $0xb0] sm:$0xff] }
 0x20d   :  { %2958 = vlog2.f32 %v490_v56  ;;  %v580_v56 = vpop.permute.xlu0 %579 }
 0x20f   :  { %v2951_v58 = vpop.eup %2950 }
 0x210   :  { %v494_v62 = vadd.f32 1.0, %v2951_v58  ;;  %v2953_v0 = vpop.eup %2952 }
 0x211   :  { %v2955_v11 = vpop.eup %2954  ;;  %v489_v13 = vadd.f32 1.0, %v2953_v0 }
 0x212   :  { %2960 = vlog2.f32 %v494_v62  ;;  %v495_v14 = vadd.f32 1.0, %v2955_v11  ;;  %v2957_v16 = vpop.eup %2956  ;;  %v575_v11 = vpop.permute.xlu1 %574 }
 0x213   :  { %2962 = vlog2.f32 %v488_v59  ;;  %v2959_v18 = vpop.eup %2958  ;;  %v505_v21 = vmul.f32 0.6931472, %v2957_v16  ;;  %v570_v59 = vpop.permute.xlu2 %569 }
 0x214   :  { %2964 = vlog2.f32 %v493_v60  ;;  %v501_v30 = vmul.f32 0.6931472, %v2959_v18 }
 0x215   :  { %2966 = vlog2.f32 %v491_v3  ;;  %v3527_v40 = vadd.f32 %v505_v21, %v484_v31  ;;  %v565_v0 = vpop.permute.xlu0 %564 }
 0x216   :  { %2968 = vlog2.f32 %v495_v14  ;;  %v3532_v32 = vadd.f32 %v501_v30, %v482_v38 }
 0x217   :  { %2970 = vlog2.f32 %v489_v13 }
 0x218   :  { %v2961_v19 = vpop.eup %2960 }
 0x219   :  { %v2963_v20 = vpop.eup %2962  ;;  %v509_v25 = vmul.f32 0.6931472, %v2961_v19 }
 0x21a   :  { %v2965_v27 = vpop.eup %2964  ;;  %v497_v37 = vmul.f32 0.6931472, %v2963_v20 }
 0x21b   :  { %v2967_v29 = vpop.eup %2966  ;;  %v3524_v34 = vadd.f32 %v509_v25, %v486_v24  ;;  %v507_v41 = vmul.f32 0.6931472, %v2965_v27 }
 0x21c   :  { %v2969_v36 = vpop.eup %2968  ;;  %v503_v12 = vmul.f32 0.6931472, %v2967_v29  ;;  %v3538_v61 = vadd.f32 %v497_v37, %v480_v45 }
 0x21d   :  { %v511_v44 = vmul.f32 0.6931472, %v2969_v36  ;;  %599 = vmatpush.msrb.mxu2 %v3524_v34  ;;  %v2971_v35 = vpop.eup %2970  ;;  %v3541_v26 = vadd.f32 %v507_v41, %v485_v48 }
 0x21e   :  { %v499_v33 = vmul.f32 0.6931472, %v2971_v35  ;;  %v3546_v28 = vadd.f32 %v503_v12, %v483_v43 }
 0x21f   :  { %v3535_v50 = vadd.f32 %v511_v44, %v487_v42  ;;  %600 = vmatpush.msrb.mxu2 %v3527_v40 }
 0x220   :  { %v3550_v17 = vadd.f32 %v499_v33, %v481_v63 }
 0x221   :  { %628 = vmatpush.msrb.mxu3 %v3535_v50  ;;  %601 = vmatpush.msrb.mxu2 %v3532_v32 }
 0x223   :  { %629 = vmatpush.msrb.mxu3 %v3541_v26  ;;  %602 = vmatpush.msrb.mxu2 %v3538_v61 }
 0x225   :  { %630 = vmatpush.msrb.mxu3 %v3546_v28  ;;  %603 = vmatpush.msrb.mxu2 %v3453_v39 }
 0x227   :  { %631 = vmatpush.msrb.mxu3 %v3550_v17  ;;  %604 = vmatpush.msrb.mxu2 %v3457_v46 }
 0x229   :  { %632 = vmatpush.msrb.mxu3 %v3459_v47  ;;  %605 = vmatpush.msrb.mxu2 %v3463_v49 }
 0x22b   :  { %633 = vmatpush.msrb.mxu3 %v3466_v51  ;;  %606 = vmatpush.msrb.mxu2 %v3470_v23 }
 0x22d   :  { %634 = vmatpush.msrb.mxu3 %v3473_v52  ;;  %607 = vmatpush.msrb.mxu2 %v3386_v1 }
 0x22f   :  { %635 = vmatpush.msrb.mxu3 %v3477_v22  ;;  %608 = vmatpush.msrb.mxu2 %v3390_v4 }
 0x231   :  { %636 = vmatpush.msrb.mxu3 %v3388_v2  ;;  %609 = vmatpush.msrb.mxu2 %v3396_v6 }
 0x233   :  { %637 = vmatpush.msrb.mxu3 %v3392_v5  ;;  %610 = vmatpush.msrb.mxu2 %v3402_v9 }
 0x234   :  { %2689 = vmatmul.msk.f32.vlgmr.msrb.gmra.mxu2 %vm582_vm4, %v2681_v8 }
 0x235   :  { %638 = vmatpush.msrb.mxu3 %v3398_v7 }
 0x237   :  { %639 = vmatpush.msrb.mxu3 %v3404_v10 }
 0x238   :  { %2693 = vmatmul.msk.f32.vlgmr.msrb.gmra.mxu3 %vm582_vm4, %v2681_v8 }
 0x23c   :  { %2690 = vmatmul.msk.f32.gmra.mxu2 %vm582_vm4, %v2682_v15 }
 0x240   :  { %2694 = vmatmul.msk.f32.gmra.mxu3 %vm582_vm4, %v2682_v15 }
 0x244   :  { %2691 = vmatmul.msk.f32.gmra.mxu2 %vm582_vm4, %v2683_v53 }
 0x248   :  { %2695 = vmatmul.msk.f32.gmra.mxu3 %vm582_vm4, %v2683_v53 }
 0x24c   :  { %2692 = vmatmul.msk.f32.gmra.mxu2 %vm582_vm4, %v2684_v54 }
 0x250   :  { %2696 = vmatmul.msk.f32.gmra.mxu3 %vm582_vm4, %v2684_v54 }
 0x2b7   :  { %v612_v55 = vpop.f32.mrf.mxu2 }
 0x2b8   :  { %v3584_v3 = vadd.f32 %v612_v55, %v565_v0 }
 0x2ba   :  { %v653_v19 = vand.u32 2147483647, %v3584_v3 }
 0x2bb   :  { %v641_v57 = vpop.f32.mrf.mxu3 }
 0x2bc   :  { %v3592_v20 = vadd.f32 %v641_v57, %v565_v0  ;;  %v661_v31 = vsub.f32 0.0, %v653_v19 }
 0x2be   :  { %v654_v36 = vand.u32 2147483647, %v3592_v20  ;;  %v669_v12 = vmul.f32 1.442695, %v661_v31 }
 0x2bf   :  { %v615_v58 = vpop.f32.mrf.mxu2 }
 0x2c0   :  { %v3582_v60 = vadd.f32 %v615_v58, %v570_v59  ;;  %v662_v48 = vsub.f32 0.0, %v654_v36 }
 0x2c2   :  { %v655_v13 = vand.u32 2147483647, %v3582_v60  ;;  %v671_v54 = vmul.f32 1.442695, %v662_v48 }
 0x2c3   :  { %v644_v62 = vpop.f32.mrf.mxu3 }
 0x2c4   :  { %v3587_v14 = vadd.f32 %v644_v62, %v570_v59  ;;  %v663_v24 = vsub.f32 0.0, %v655_v13 }
 0x2c6   :  { %v656_v25 = vand.u32 2147483647, %v3587_v14  ;;  %v673_v41 = vmul.f32 1.442695, %v663_v24 }
 0x2c7   :  { %v618_v16 = vpop.f32.mrf.mxu2 }
 0x2c8   :  { %v3589_v18 = vadd.f32 %v618_v16, %v575_v11  ;;  %v664_v42 = vsub.f32 0.0, %v656_v25 }
 0x2ca   :  { %v657_v21 = vand.u32 2147483647, %v3589_v18  ;;  %v675_v63 = vmul.f32 1.442695, %v664_v42 }
 0x2cb   :  { %v647_v27 = vpop.f32.mrf.mxu3 }
 0x2cc   :  { %v665_v29 = vsub.f32 0.0, %v657_v21  ;;  %v3596_v30 = vadd.f32 %v647_v27, %v575_v11 }
 0x2ce   :  { %v677_v37 = vmul.f32 1.442695, %v665_v29  ;;  %v658_v38 = vand.u32 2147483647, %v3596_v30 }
 0x2cf   :  { %v621_v44 = vpop.f32.mrf.mxu2 }
 0x2d0   :  { %v666_v35 = vsub.f32 0.0, %v658_v38  ;;  %v622_v45 = vadd.f32 %v621_v44, %v580_v56  ;;  %2972 = vpow2.f32 %v677_v37 }
 0x2d1   :  { %2974 = vpow2.f32 %v673_v41 }
 0x2d2   :  { %v679_v33 = vmul.f32 1.442695, %v666_v35  ;;  %v659_v43 = vand.u32 2147483647, %v622_v45  ;;  %2976 = vpow2.f32 %v669_v12  ;;  %v691_v48 = vmax.f32 %v622_v45, 0.0 }
 0x2d3   :  { %v650_v8 = vpop.f32.mrf.mxu3 }
 0x2d4   :  { %v667_v15 = vsub.f32 0.0, %v659_v43  ;;  %v3600_v53 = vadd.f32 %v650_v8, %v580_v56  ;;  %2978 = vpow2.f32 %v679_v33 }
 0x2d5   :  { %2980 = vpow2.f32 %v675_v63 }
 0x2d6   :  { %v681_v55 = vmul.f32 1.442695, %v667_v15  ;;  %v660_v57 = vand.u32 2147483647, %v3600_v53  ;;  %v2973_v58 = vpop.eup %2972  ;;  %v689_v15 = vmax.f32 %v3589_v18, 0.0 }
 0x2d7   :  { %v2975_v62 = vpop.eup %2974  ;;  %v697_v13 = vadd.f32 1.0, %v2973_v58  ;;  %v687_v58 = vmax.f32 %v3582_v60, 0.0 }
 0x2d8   :  { %2982 = vpow2.f32 %v681_v55  ;;  %v668_v59 = vsub.f32 0.0, %v660_v57  ;;  %v2977_v11 = vpop.eup %2976  ;;  %v695_v19 = vadd.f32 1.0, %v2975_v62 }
 0x2d9   :  { %2984 = vpow2.f32 %v671_v54  ;;  %v693_v24 = vadd.f32 1.0, %v2977_v11 }
 0x2da   :  { %v683_v0 = vmul.f32 1.442695, %v668_v59  ;;  %v2979_v16 = vpop.eup %2978 }
 0x2db   :  { %v2981_v56 = vpop.eup %2980  ;;  %v698_v25 = vadd.f32 1.0, %v2979_v16 }
 0x2dc   :  { %2986 = vpow2.f32 %v683_v0  ;;  %v696_v31 = vadd.f32 1.0, %v2981_v56  ;;  %v692_v0 = vmax.f32 %v3600_v53, 0.0 }
 0x2dd   :  { %2988 = vlog2.f32 %v697_v13  ;;  %v685_v13 = vmax.f32 %v3584_v3, 0.0  ;;  %v686_v3 = vmax.f32 %v3592_v20, 0.0  ;;  %v2705_v20 = vld [vmem:[%s4481_s5 + $0x100] sm:$0xff] }
 0x2de   :  { %v2983_v21 = vpop.eup %2982  ;;  %2990 = vlog2.f32 %v695_v19  ;;  %v690_v19 = vmax.f32 %v3596_v30, 0.0 }
 0x2df   :  { %v699_v27 = vadd.f32 1.0, %v2983_v21  ;;  %v2985_v29 = vpop.eup %2984  ;;  %v688_v21 = vmax.f32 %v3587_v14, 0.0  ;;  %v2697_v14 = vld [vmem:[%s4481_s5 + $0xc0] sm:$0xff] }
 0x2e0   :  { %v694_v37 = vadd.f32 1.0, %v2985_v29  ;;  %v2707_v29 = vld [vmem:[%s4481_s5 + $0x110] sm:$0xff] }
 0x2e1   :  { %2992 = vlog2.f32 %v699_v27  ;;  %v2698_v27 = vld [vmem:[%s4481_s5 + $0xd0] sm:$0xff] }
 0x2e2   :  { %v2987_v36 = vpop.eup %2986  ;;  %2994 = vlog2.f32 %v693_v24 }
 0x2e3   :  { %2996 = vlog2.f32 %v698_v25  ;;  %v700_v38 = vadd.f32 1.0, %v2987_v36  ;;  %v2989_v41 = vpop.eup %2988  ;;  %v2709_v36 = vld [vmem:[%s4481_s5 + $0x120] sm:$0xff] }
 0x2e4   :  { %2998 = vlog2.f32 %v696_v31  ;;  %v2991_v42 = vpop.eup %2990  ;;  %v710_v12 = vmul.f32 0.6931472, %v2989_v41  ;;  %v2699_v31 = vld [vmem:[%s4481_s5 + $0xe0] sm:$0xff]  ;;  %v793_v41 = vpop.permute.xlu1 %792 }
 0x2e5   :  { %3000 = vlog2.f32 %v700_v38  ;;  %v706_v8 = vmul.f32 0.6931472, %v2991_v42  ;;  %v2711_v38 = vld [vmem:[%s4481_s5 + $0x130] sm:$0xff] }
 0x2e6   :  { %3002 = vlog2.f32 %v694_v37  ;;  %v3607_v59 = vadd.f32 %v710_v12, %v689_v15  ;;  %v2700_v37 = vld [vmem:[%s4481_s5 + $0xf0] sm:$0xff] }
 0x2e7   :  { %v2993_v44 = vpop.eup %2992  ;;  %v3613_v18 = vadd.f32 %v706_v8, %v687_v58 }
 0x2e8   :  { %v2995_v35 = vpop.eup %2994  ;;  %v714_v33 = vmul.f32 0.6931472, %v2993_v44 }
 0x2e9   :  { %v2997_v43 = vpop.eup %2996  ;;  %v702_v57 = vmul.f32 0.6931472, %v2995_v35 }
 0x2ea   :  { %v2999_v63 = vpop.eup %2998  ;;  %v3604_v54 = vadd.f32 %v714_v33, %v691_v48  ;;  %v712_v62 = vmul.f32 0.6931472, %v2997_v43  ;;  %v783_v33 = vpop.permute.xlu0 %782 }
 0x2eb   :  { %v3001_v55 = vpop.eup %3000  ;;  %v708_v16 = vmul.f32 0.6931472, %v2999_v63  ;;  %v3620_v60 = vadd.f32 %v702_v57, %v685_v13 }
 0x2ec   :  { %v716_v11 = vmul.f32 0.6931472, %v3001_v55  ;;  %795 = vmatpush.msra.mxu0 %v3604_v54  ;;  %1019 = vmatpush.msra.mxu2 %v3604_v54  ;;  %v3003_v45 = vpop.eup %3002  ;;  %v3623_v24 = vadd.f32 %v712_v62, %v690_v19  ;;  %v778_v12 = vpop.permute.xlu1 %777 }
 0x2ed   :  { %v704_v53 = vmul.f32 0.6931472, %v3003_v45  ;;  %v3629_v30 = vadd.f32 %v708_v16, %v688_v21  ;;  %v788_v55 = vpop.permute.xlu2 %787 }
 0x2ee   :  { %v3616_v56 = vadd.f32 %v716_v11, %v692_v0  ;;  %796 = vmatpush.msra.mxu0 %v3607_v59  ;;  %1020 = vmatpush.msra.mxu2 %v3607_v59 }
 0x2ef   :  { %v3634_v25 = vadd.f32 %v704_v53, %v686_v3 }
 0x2f0   :  { %824 = vmatpush.msra.mxu1 %v3616_v56  ;;  %797 = vmatpush.msra.mxu0 %v3613_v18 }
 0x2f1   :  { %1021 = vmatpush.msra.mxu2 %v3613_v18 }
 0x2f2   :  { %825 = vmatpush.msra.mxu1 %v3623_v24  ;;  %798 = vmatpush.msra.mxu0 %v3620_v60 }
 0x2f3   :  { %1022 = vmatpush.msra.mxu2 %v3620_v60 }
 0x2f4   :  { %826 = vmatpush.msra.mxu1 %v3629_v30  ;;  %799 = vmatpush.msra.mxu0 %v3524_v34 }
 0x2f5   :  { %1023 = vmatpush.msra.mxu2 %v3524_v34 }
 0x2f6   :  { %827 = vmatpush.msra.mxu1 %v3634_v25  ;;  %800 = vmatpush.msra.mxu0 %v3527_v40 }
 0x2f7   :  { %1024 = vmatpush.msra.mxu2 %v3527_v40 }
 0x2f8   :  { %828 = vmatpush.msra.mxu1 %v3535_v50  ;;  %801 = vmatpush.msra.mxu0 %v3532_v32 }
 0x2f9   :  { %1025 = vmatpush.msra.mxu2 %v3532_v32 }
 0x2fa   :  { %829 = vmatpush.msra.mxu1 %v3541_v26  ;;  %802 = vmatpush.msra.mxu0 %v3538_v61 }
 0x2fb   :  { %1026 = vmatpush.msra.mxu2 %v3538_v61 }
 0x2fc   :  { %830 = vmatpush.msra.mxu1 %v3546_v28  ;;  %803 = vmatpush.msra.mxu0 %v3453_v39 }
 0x2fd   :  { %1027 = vmatpush.msra.mxu2 %v3453_v39 }
 0x2fe   :  { %831 = vmatpush.msra.mxu1 %v3550_v17  ;;  %804 = vmatpush.msra.mxu0 %v3457_v46 }
 0x2ff   :  { %1028 = vmatpush.msra.mxu2 %v3457_v46 }
 0x300   :  { %832 = vmatpush.msra.mxu1 %v3459_v47  ;;  %805 = vmatpush.msra.mxu0 %v3463_v49 }
 0x301   :  { %1029 = vmatpush.msra.mxu2 %v3463_v49 }
 0x302   :  { %833 = vmatpush.msra.mxu1 %v3466_v51  ;;  %806 = vmatpush.msra.mxu0 %v3470_v23 }
 0x303   :  { %1030 = vmatpush.msra.mxu2 %v3470_v23 }
 0x304   :  { %834 = vmatpush.msra.mxu1 %v3473_v52  ;;  %807 = vmatpush.msra.mxu0 %v3386_v1 }
 0x305   :  { %1031 = vmatpush.msra.mxu2 %v3386_v1 }
 0x306   :  { %835 = vmatpush.msra.mxu1 %v3477_v22  ;;  %808 = vmatpush.msra.mxu0 %v3390_v4 }
 0x307   :  { %1032 = vmatpush.msra.mxu2 %v3390_v4 }
 0x308   :  { %836 = vmatpush.msra.mxu1 %v3388_v2  ;;  %809 = vmatpush.msra.mxu0 %v3396_v6 }
 0x309   :  { %1033 = vmatpush.msra.mxu2 %v3396_v6 }
 0x30a   :  { %837 = vmatpush.msra.mxu1 %v3392_v5  ;;  %810 = vmatpush.msra.mxu0 %v3402_v9 }
 0x30b   :  { %1034 = vmatpush.msra.mxu2 %v3402_v9  ;;  %811 = vmatmul.f32.vlgmr.msra.gmra.mxu0 %v2697_v14 }
 0x30c   :  { %838 = vmatpush.msra.mxu1 %v3398_v7  ;;  %1035 = vmatmul.f32.vlgmr.msra.gmra.mxu2 %v2705_v20 }
 0x30d   :  { %1077 = vmatpush.msrb.mxu0 %v3616_v56 }
 0x30e   :  { %839 = vmatpush.msra.mxu1 %v3404_v10 }
 0x30f   :  { %840 = vmatmul.f32.vlgmr.msra.gmra.mxu1 %v2697_v14  ;;  %1078 = vmatpush.msrb.mxu0 %v3623_v24 }
 0x311   :  { %1079 = vmatpush.msrb.mxu0 %v3629_v30 }
 0x313   :  { %1080 = vmatpush.msrb.mxu0 %v3634_v25 }
 0x314   :  { %814 = vmatmul.f32.gmra.mxu0 %v2698_v27  ;;  %1038 = vmatmul.f32.gmra.mxu2 %v2707_v29 }
 0x315   :  { %1081 = vmatpush.msrb.mxu0 %v3535_v50 }
 0x317   :  { %843 = vmatmul.f32.gmra.mxu1 %v2698_v27  ;;  %1082 = vmatpush.msrb.mxu0 %v3541_v26 }
 0x319   :  { %1083 = vmatpush.msrb.mxu0 %v3546_v28 }
 0x31b   :  { %1084 = vmatpush.msrb.mxu0 %v3550_v17 }
 0x31c   :  { %817 = vmatmul.f32.gmra.mxu0 %v2699_v31  ;;  %1041 = vmatmul.f32.gmra.mxu2 %v2709_v36 }
 0x31d   :  { %1085 = vmatpush.msrb.mxu0 %v3459_v47 }
 0x31f   :  { %846 = vmatmul.f32.gmra.mxu1 %v2699_v31  ;;  %1086 = vmatpush.msrb.mxu0 %v3466_v51 }
 0x321   :  { %1087 = vmatpush.msrb.mxu0 %v3473_v52 }
 0x323   :  { %1088 = vmatpush.msrb.mxu0 %v3477_v22 }
 0x324   :  { %820 = vmatmul.f32.gmra.mxu0 %v2700_v37  ;;  %1044 = vmatmul.f32.gmra.mxu2 %v2711_v38 }
 0x325   :  { %1089 = vmatpush.msrb.mxu0 %v3388_v2 }
 0x327   :  { %849 = vmatmul.f32.gmra.mxu1 %v2700_v37  ;;  %1090 = vmatpush.msrb.mxu0 %v3392_v5 }
 0x329   :  { %1091 = vmatpush.msrb.mxu0 %v3398_v7 }
 0x32b   :  { %1092 = vmatpush.msrb.mxu0 %v3404_v10 }
 0x32c   :  { %1093 = vmatmul.f32.vlgmr.msrb.gmra.mxu0 %v2705_v20 }
 0x334   :  { %1096 = vmatmul.f32.gmra.mxu0 %v2707_v29 }
 0x33c   :  { %1099 = vmatmul.f32.gmra.mxu0 %v2709_v36 }
 0x344   :  { %1102 = vmatmul.f32.gmra.mxu0 %v2711_v38 }
 0x388   :  { %v812_v42 = vpop.f32.mrf.mxu0 }
 0x389   :  { %v3714_v48 = vadd.f32 %v812_v42, %v778_v12 }
 0x38b   :  { %v853_v8 = vand.u32 2147483647, %v3714_v48 }
 0x38c   :  { %v841_v44 = vpop.f32.mrf.mxu1 }
 0x38d   :  { %v861_v0 = vsub.f32 0.0, %v853_v8  ;;  %v3724_v11 = vadd.f32 %v841_v44, %v778_v12 }
 0x38f   :  { %v869_v3 = vmul.f32 1.442695, %v861_v0  ;;  %v854_v14 = vand.u32 2147483647, %v3724_v11 }
 0x391   :  { %v815_v35 = vpop.f32.mrf.mxu0  ;;  %3004 = vpow2.f32 %v869_v3  ;;  %v862_v42 = vsub.f32 0.0, %v854_v14 }
 0x392   :  { %v3716_v63 = vadd.f32 %v815_v35, %v783_v33 }
 0x394   :  { %v844_v43 = vpop.f32.mrf.mxu1  ;;  %v855_v57 = vand.u32 2147483647, %v3716_v63 }
 0x395   :  { %v3719_v15 = vadd.f32 %v844_v43, %v783_v33 }
 0x396   :  { %v863_v19 = vsub.f32 0.0, %v855_v57 }
 0x397   :  { %v856_v45 = vand.u32 2147483647, %v3719_v15  ;;  %v3005_v0 = vpop.eup %3004 }
 0x398   :  { %v873_v31 = vmul.f32 1.442695, %v863_v19 }
 0x399   :  { %v818_v58 = vpop.f32.mrf.mxu0  ;;  %v864_v27 = vsub.f32 0.0, %v856_v45 }
 0x39a   :  { %v3722_v62 = vadd.f32 %v818_v58, %v788_v55 }
 0x39b   :  { %v875_v35 = vmul.f32 1.442695, %v864_v27 }
 0x39c   :  { %v857_v13 = vand.u32 2147483647, %v3722_v62  ;;  %v847_v16 = vpop.f32.mrf.mxu1 }
 0x39d   :  { %v3728_v53 = vadd.f32 %v847_v16, %v788_v55  ;;  %v871_v55 = vmul.f32 1.442695, %v862_v42 }
 0x39e   :  { %v865_v21 = vsub.f32 0.0, %v857_v13 }
 0x39f   :  { %v858_v20 = vand.u32 2147483647, %v3728_v53 }
 0x3a0   :  { %v877_v29 = vmul.f32 1.442695, %v865_v21  ;;  %v893_v21 = vadd.f32 1.0, %v3005_v0 }
 0x3a1   :  { %v866_v36 = vsub.f32 0.0, %v858_v20  ;;  %v821_v37 = vpop.f32.mrf.mxu0 }
 0x3a2   :  { %v822_v38 = vadd.f32 %v821_v37, %v793_v41  ;;  %3006 = vpow2.f32 %v877_v29 }
 0x3a3   :  { %v879_v44 = vmul.f32 1.442695, %v866_v36  ;;  %3008 = vpow2.f32 %v873_v31 }
 0x3a4   :  { %v859_v12 = vand.u32 2147483647, %v822_v38  ;;  %v850_v33 = vpop.f32.mrf.mxu1 }
 0x3a5   :  { %v851_v43 = vadd.f32 %v850_v33, %v793_v41  ;;  %3010 = vpow2.f32 %v879_v44 }
 0x3a6   :  { %v867_v8 = vsub.f32 0.0, %v859_v12  ;;  %3012 = vpow2.f32 %v875_v35 }
 0x3a7   :  { %v860_v57 = vand.u32 2147483647, %v851_v43 }
 0x3a8   :  { %v881_v58 = vmul.f32 1.442695, %v867_v8  ;;  %v3007_v13 = vpop.eup %3006 }
 0x3a9   :  { %v868_v45 = vsub.f32 0.0, %v860_v57  ;;  %v3009_v16 = vpop.eup %3008  ;;  %v897_v14 = vadd.f32 1.0, %v3007_v13 }
 0x3aa   :  { %3014 = vpow2.f32 %v881_v58  ;;  %v895_v27 = vadd.f32 1.0, %v3009_v16  ;;  %v891_v58 = vmax.f32 %v822_v38, 0.0 }
 0x3ab   :  { %3016 = vpow2.f32 %v871_v55  ;;  %v883_v19 = vmul.f32 1.442695, %v868_v45  ;;  %v3011_v3 = vpop.eup %3010 }
 0x3ac   :  { %v3013_v20 = vpop.eup %3012  ;;  %v898_v29 = vadd.f32 1.0, %v3011_v3 }
 0x3ad   :  { %3018 = vpow2.f32 %v883_v19  ;;  %v896_v36 = vadd.f32 1.0, %v3013_v20  ;;  %v889_v19 = vmax.f32 %v3722_v62, 0.0  ;;  %v885_v62 = vmax.f32 %v3714_v48, 0.0 }
 0x3ae   :  { %3020 = vlog2.f32 %v893_v21  ;;  %v886_v48 = vmax.f32 %v3724_v11, 0.0  ;;  %v2708_v11 = vld [vmem:[%s4481_s5 + $0x118] sm:$0xff] }
 0x3af   :  { %3022 = vlog2.f32 %v897_v14  ;;  %v892_v14 = vmax.f32 %v851_v43, 0.0 }
 0x3b0   :  { %v3015_v41 = vpop.eup %3014  ;;  %3024 = vlog2.f32 %v895_v27 }
 0x3b1   :  { %v3017_v31 = vpop.eup %3016  ;;  %v899_v37 = vadd.f32 1.0, %v3015_v41 }
 0x3b2   :  { %v894_v44 = vadd.f32 1.0, %v3017_v31 }
 0x3b3   :  { %v3019_v42 = vpop.eup %3018  ;;  %3026 = vlog2.f32 %v899_v37 }
 0x3b4   :  { %3028 = vlog2.f32 %v898_v29  ;;  %v900_v35 = vadd.f32 1.0, %v3019_v42  ;;  %v3021_v12 = vpop.eup %3020  ;;  %v887_v29 = vmax.f32 %v3716_v63, 0.0 }
 0x3b5   :  { %3030 = vlog2.f32 %v896_v36  ;;  %v3023_v33 = vpop.eup %3022  ;;  %v902_v38 = vmul.f32 0.6931472, %v3021_v12  ;;  %v890_v36 = vmax.f32 %v3728_v53, 0.0  ;;  %v2706_v53 = vld [vmem:[%s4481_s5 + $0x108] sm:$0xff] }
 0x3b6   :  { %3032 = vlog2.f32 %v900_v35  ;;  %v3025_v8 = vpop.eup %3024  ;;  %v910_v45 = vmul.f32 0.6931472, %v3023_v33 }
 0x3b7   :  { %3034 = vlog2.f32 %v894_v44  ;;  %v906_v3 = vmul.f32 0.6931472, %v3025_v8  ;;  %v888_v44 = vmax.f32 %v3719_v15, 0.0  ;;  %v3751_v12 = vadd.f32 %v902_v38, %v885_v62  ;;  %v2710_v8 = vld [vmem:[%s4481_s5 + $0x128] sm:$0xff] }
 0x3b8   :  { %v3737_v31 = vadd.f32 %v910_v45, %v889_v19 }
 0x3b9   :  { %v3027_v55 = vpop.eup %3026  ;;  %v3744_v43 = vadd.f32 %v906_v3, %v887_v29  ;;  %v995_v29 = vpop.permute.xlu1 %994 }
 0x3ba   :  { %v3029_v57 = vpop.eup %3028  ;;  %v914_v0 = vmul.f32 0.6931472, %v3027_v55  ;;  %v2712_v55 = vld [vmem:[%s4481_s5 + $0x138] sm:$0xff] }
 0x3bb   :  { %v3031_v13 = vpop.eup %3030  ;;  %v912_v27 = vmul.f32 0.6931472, %v3029_v57  ;;  %v1005_v57 = vpop.permute.xlu2 %1004 }
 0x3bc   :  { %v3033_v16 = vpop.eup %3032  ;;  %v3733_v21 = vadd.f32 %v914_v0, %v891_v58  ;;  %v908_v42 = vmul.f32 0.6931472, %v3031_v13  ;;  %v1094_v58 = vpop.f32.mrf.mxu0 }
 0x3bd   :  { %v916_v20 = vmul.f32 0.6931472, %v3033_v16  ;;  %v3035_v41 = vpop.eup %3034  ;;  %v3748_v63 = vadd.f32 %v912_v27, %v890_v36  ;;  %v1036_v0 = vpop.f32.mrf.mxu2 }
 0x3be   :  { %1060 = vmatpush.msra.mxu3 %v3733_v21  ;;  %v904_v35 = vmul.f32 0.6931472, %v3035_v41  ;;  %v3758_v33 = vadd.f32 %v908_v42, %v888_v44 }
 0x3bf   :  { %v3740_v37 = vadd.f32 %v916_v20, %v892_v14 }
 0x3c0   :  { %1061 = vmatpush.msra.mxu3 %v3737_v31  ;;  %v3762_v15 = vadd.f32 %v904_v35, %v886_v48 }
 0x3c1   :  { %1118 = vmatpush.msrb.mxu1 %v3740_v37 }
 0x3c2   :  { %1062 = vmatpush.msra.mxu3 %v3744_v43 }
 0x3c3   :  { %1119 = vmatpush.msrb.mxu1 %v3748_v63  ;;  %v990_v45 = vpop.permute.xlu2 %989 }
 0x3c4   :  { %1063 = vmatpush.msra.mxu3 %v3751_v12  ;;  %v1095_v13 = vadd.f32 %v1094_v58, %v990_v45  ;;  %v1097_v16 = vpop.f32.mrf.mxu0  ;;  %v1037_v27 = vadd.f32 %v1036_v0, %v990_v45 }
 0x3c5   :  { %1120 = vmatpush.msrb.mxu1 %v3758_v33  ;;  %2717 = vmatmul.msk.f32.vlgmr.msra.gmra.mxu3 %vm180_vm2, %v2706_v53  ;;  %v1039_v14 = vpop.f32.mrf.mxu2  ;;  %v1098_v36 = vadd.f32 %v1097_v16, %v995_v29 }
 0x3c6   :  { %v1040_v35 = vadd.f32 %v1039_v14, %v995_v29 }
 0x3c7   :  { %1121 = vmatpush.msrb.mxu1 %v3762_v15 }
 0x3c8   :  { %2721 = vmatmul.msk.f32.vlgmr.msrb.gmra.mxu1 %vm180_vm2, %v2706_v53 }
 0x3cc   :  { %v1100_v53 = vpop.f32.mrf.mxu0 }
 0x3cd   :  { %2718 = vmatmul.msk.f32.gmra.mxu3 %vm180_vm2, %v2708_v11  ;;  %v1042_v0 = vpop.f32.mrf.mxu2 }
 0x3d0   :  { %2722 = vmatmul.msk.f32.gmra.mxu1 %vm180_vm2, %v2708_v11 }
 0x3d5   :  { %2719 = vmatmul.msk.f32.gmra.mxu3 %vm180_vm2, %v2710_v8 }
 0x3d8   :  { %2723 = vmatmul.msk.f32.gmra.mxu1 %vm180_vm2, %v2710_v8 }
 0x3dd   :  { %2720 = vmatmul.msk.f32.gmra.mxu3 %vm180_vm2, %v2712_v55 }
 0x3e0   :  { %2724 = vmatmul.msk.f32.gmra.mxu1 %vm180_vm2, %v2712_v55 }
 0x445   :  { %v1123_v19 = vpop.f32.mrf.mxu1 }
 0x446   :  { %v3782_v3 = vadd.f32 %v1123_v19, %v1095_v13  ;;  %v1000_v13 = vpop.permute.xlu0 %999 }
 0x448   :  { %v1065_v20 = vpop.f32.mrf.mxu3  ;;  %v1136_v41 = vand.u32 2147483647, %v3782_v3 }
 0x449   :  { %v3785_v38 = vadd.f32 %v1065_v20, %v1037_v27  ;;  %v1101_v20 = vadd.f32 %v1100_v53, %v1000_v13 }
 0x44a   :  { %v1144_v42 = vsub.f32 0.0, %v1136_v41 }
 0x44b   :  { %v1135_v48 = vand.u32 2147483647, %v3785_v38 }
 0x44c   :  { %v1153_v55 = vmul.f32 1.442695, %v1144_v42 }
 0x44d   :  { %v1126_v62 = vpop.f32.mrf.mxu1  ;;  %v1143_v19 = vsub.f32 0.0, %v1135_v48 }
 0x44e   :  { %v3787_v44 = vadd.f32 %v1126_v62, %v1098_v36  ;;  %3036 = vpow2.f32 %v1153_v55  ;;  %v1043_v36 = vadd.f32 %v1042_v0, %v1000_v13  ;;  %v1045_v55 = vpop.f32.mrf.mxu2 }
 0x44f   :  { %v1151_v62 = vmul.f32 1.442695, %v1143_v19 }
 0x450   :  { %v1138_v11 = vand.u32 2147483647, %v3787_v44  ;;  %v1068_v8 = vpop.f32.mrf.mxu3 }
 0x451   :  { %v3791_v58 = vadd.f32 %v1068_v8, %v1040_v35  ;;  %v1103_v8 = vpop.f32.mrf.mxu0 }
 0x452   :  { %v1146_v45 = vsub.f32 0.0, %v1138_v11 }
 0x453   :  { %v1137_v16 = vand.u32 2147483647, %v3791_v58 }
 0x454   :  { %v1157_v27 = vmul.f32 1.442695, %v1146_v45  ;;  %v3037_v22 = vpop.eup %3036  ;;  %v1104_v45 = vadd.f32 %v1103_v8, %v1005_v57 }
 0x455   :  { %v1145_v41 = vsub.f32 0.0, %v1137_v16  ;;  %v1129_v14 = vpop.f32.mrf.mxu1  ;;  %v1176_v19 = vadd.f32 1.0, %v3037_v22 }
 0x456   :  { %v3794_v29 = vadd.f32 %v1129_v14, %v1101_v20  ;;  %3038 = vpow2.f32 %v1157_v27  ;;  %v1046_v14 = vadd.f32 %v1045_v55, %v1005_v57 }
 0x457   :  { %v1155_v23 = vmul.f32 1.442695, %v1145_v41 }
 0x458   :  { %v1140_v42 = vand.u32 2147483647, %v3794_v29  ;;  %v1071_v35 = vpop.f32.mrf.mxu3 }
 0x459   :  { %3040 = vpow2.f32 %v1155_v23  ;;  %v3797_v11 = vadd.f32 %v1071_v35, %v1043_v36 }
 0x45a   :  { %v1148_v48 = vsub.f32 0.0, %v1140_v42  ;;  %3042 = vpow2.f32 %v1151_v62 }
 0x45b   :  { %v1139_v53 = vand.u32 2147483647, %v3797_v11 }
 0x45c   :  { %v1161_v16 = vmul.f32 1.442695, %v1148_v48  ;;  %v3039_v20 = vpop.eup %3038 }
 0x45d   :  { %v1147_v0 = vsub.f32 0.0, %v1139_v53  ;;  %v1132_v13 = vpop.f32.mrf.mxu1  ;;  %v1178_v36 = vadd.f32 1.0, %v3039_v20 }
 0x45e   :  { %3044 = vpow2.f32 %v1161_v16  ;;  %v3800_v27 = vadd.f32 %v1132_v13, %v1104_v45 }
 0x45f   :  { %v3041_v41 = vpop.eup %3040  ;;  %v1159_v23 = vmul.f32 1.442695, %v1147_v0 }
 0x460   :  { %v1142_v42 = vand.u32 2147483647, %v3800_v27  ;;  %v1074_v35 = vpop.f32.mrf.mxu3  ;;  %v3043_v62 = vpop.eup %3042  ;;  %v1177_v1 = vadd.f32 1.0, %v3041_v41 }
 0x461   :  { %3046 = vpow2.f32 %v1159_v23  ;;  %v3803_v2 = vadd.f32 %v1074_v35, %v1046_v14  ;;  %v1175_v53 = vadd.f32 1.0, %v3043_v62 }
 0x462   :  { %3048 = vlog2.f32 %v1176_v19  ;;  %v1150_v8 = vsub.f32 0.0, %v1142_v42 }
 0x463   :  { %v1141_v48 = vand.u32 2147483647, %v3803_v2  ;;  %3050 = vlog2.f32 %v1178_v36  ;;  %v1168_v36 = vmax.f32 %v3782_v3, 0.0  ;;  %v1171_v3 = vmax.f32 %v3797_v11, 0.0 }
 0x464   :  { %v3045_v22 = vpop.eup %3044  ;;  %v1165_v45 = vmul.f32 1.442695, %v1150_v8  ;;  %3052 = vlog2.f32 %v1177_v1  ;;  %v1172_v8 = vmax.f32 %v3794_v29, 0.0 }
 0x465   :  { %v1180_v57 = vadd.f32 1.0, %v3045_v22  ;;  %v1149_v55 = vsub.f32 0.0, %v1141_v48 }
 0x466   :  { %3054 = vpow2.f32 %v1165_v45 }
 0x467   :  { %v3047_v16 = vpop.eup %3046  ;;  %3056 = vlog2.f32 %v1180_v57  ;;  %v1163_v20 = vmul.f32 1.442695, %v1149_v55 }
 0x468   :  { %v3049_v0 = vpop.eup %3048  ;;  %3058 = vlog2.f32 %v1175_v53  ;;  %v1179_v13 = vadd.f32 1.0, %v3047_v16  ;;  %v1170_v53 = vmax.f32 %v3787_v44, 0.0 }
 0x469   :  { %3060 = vpow2.f32 %v1163_v20  ;;  %v3051_v41 = vpop.eup %3050  ;;  %v1186_v14 = vmul.f32 0.6931472, %v3049_v0 }
 0x46a   :  { %3062 = vlog2.f32 %v1179_v13  ;;  %v3053_v19 = vpop.eup %3052  ;;  %v1190_v35 = vmul.f32 0.6931472, %v3051_v41  ;;  %v1169_v41 = vmax.f32 %v3791_v58, 0.0 }
 0x46b   :  { %v3808_v45 = vadd.f32 %v1186_v14, %v1168_v36  ;;  %v1188_v55 = vmul.f32 0.6931472, %v3053_v19  ;;  %v1167_v19 = vmax.f32 %v3785_v38, 0.0 }
 0x46c   :  { %v3055_v23 = vpop.eup %3054  ;;  %v3811_v0 = vadd.f32 %v1190_v35, %v1170_v53  ;;  %v1174_v35 = vmax.f32 %v3800_v27, 0.0 }
 0x46d   :  { %v3057_v42 = vpop.eup %3056  ;;  %v1182_v1 = vadd.f32 1.0, %v3055_v23  ;;  %v1456_v29 = vsub.f32 0.0, %v3808_v45 }
 0x46e   :  { %v3059_v62 = vpop.eup %3058  ;;  %v1194_v48 = vmul.f32 0.6931472, %v3057_v42  ;;  %v3816_v42 = vadd.f32 %v1188_v55, %v1169_v41  ;;  %v1173_v55 = vmax.f32 %v3803_v2, 0.0 }
 0x46f   :  { %v3061_v22 = vpop.eup %3060  ;;  %3064 = vlog2.f32 %v1182_v1  ;;  %v1184_v23 = vmul.f32 0.6931472, %v3059_v62  ;;  %v1458_v1 = vsub.f32 0.0, %v3811_v0  ;;  %v1465_v58 = vmul.f32 1.442695, %v1456_v29 }
 0x470   :  { %v3063_v57 = vpop.eup %3062  ;;  %v1204_v16 = vadd.f32 %v1194_v48, %v1172_v8  ;;  %v1181_v20 = vadd.f32 1.0, %v3061_v22  ;;  %v1457_v53 = vsub.f32 0.0, %v3816_v42 }
 0x471   :  { %v1192_v13 = vmul.f32 0.6931472, %v3063_v57  ;;  %v3821_v11 = vadd.f32 %v1184_v23, %v1167_v19 }
 0x472   :  { %3066 = vlog2.f32 %v1181_v20  ;;  %v1460_v44 = vsub.f32 0.0, %v1204_v16  ;;  %v1467_v23 = vmul.f32 1.442695, %v1457_v53  ;;  %v1400_v53 = vpop.permute.xlu1 %1399 }
 0x473   :  { %v1203_v14 = vadd.f32 %v1192_v13, %v1171_v3  ;;  %v1469_v3 = vmul.f32 1.442695, %v1458_v1  ;;  %v1455_v38 = vsub.f32 0.0, %v3821_v11  ;;  %3068 = vpow2.f32 %v1465_v58 }
 0x474   :  { %v1473_v57 = vmul.f32 1.442695, %v1460_v44  ;;  %v1405_v44 = vpop.permute.xlu0 %1404 }
 0x475   :  { %v3065_v36 = vpop.eup %3064  ;;  %v1459_v48 = vsub.f32 0.0, %v1203_v14 }
 0x476   :  { %v1198_v8 = vmul.f32 0.6931472, %v3065_v36  ;;  %3070 = vpow2.f32 %v1473_v57 }
 0x477   :  { %v1471_v27 = vmul.f32 1.442695, %v1459_v48  ;;  %3072 = vpow2.f32 %v1469_v3 }
 0x478   :  { %v3067_v22 = vpop.eup %3066  ;;  %v1206_v62 = vadd.f32 %v1198_v8, %v1174_v35  ;;  %v1463_v35 = vmul.f32 1.442695, %v1455_v38 }
 0x479   :  { %v1196_v20 = vmul.f32 0.6931472, %v3067_v22  ;;  %v3069_v2 = vpop.eup %3068 }
 0x47a   :  { %v1462_v13 = vsub.f32 0.0, %v1206_v62  ;;  %v1454_v58 = vmul.f32 %v1405_v44, %v1206_v62  ;;  %v1480_v6 = vsub.f32 1.0, %v3069_v2 }
 0x47b   :  { %v1205_v41 = vadd.f32 %v1196_v20, %v1173_v55 }
 0x47c   :  { %v1477_v36 = vmul.f32 1.442695, %v1462_v13  ;;  %v3071_v1 = vpop.eup %3070  ;;  %v1390_v7 = vpop.permute.xlu0 %1389 }
 0x47d   :  { %v1461_v19 = vsub.f32 0.0, %v1205_v41  ;;  %v3073_v8 = vpop.eup %3072  ;;  %v1484_v20 = vsub.f32 1.0, %v3071_v1  ;;  %v1453_v38 = vmul.f32 %v1405_v44, %v1205_v41 }
 0x47e   :  { %3074 = vpow2.f32 %v1477_v36  ;;  %v1452_v36 = vmul.f32 %v1400_v53, %v1204_v16 }
 0x47f   :  { %v1475_v29 = vmul.f32 1.442695, %v1461_v19  ;;  %3076 = vpow2.f32 %v1471_v27  ;;  %v1482_v19 = vsub.f32 1.0, %v3073_v8  ;;  %v1395_v27 = vpop.permute.xlu2 %1394 }
 0x480   :  { %3078 = vpow2.f32 %v1467_v23  ;;  %v1449_v41 = vmul.f32 %v1395_v27, %v3816_v42  ;;  %v2731_v42 = vld [vmem:[%s4482_s6 + $0x330] sm:$0xff] }
 0x481   :  { %3080 = vpow2.f32 %v1475_v29  ;;  %v1492_v29 = vmul.f32 %v1484_v20, %v1452_v36  ;;  %v2735_v20 = vld [vmem:[%s4482_s6 + $0x350] sm:$0xff]  ;;  %v2740_v36 = vld [vmem:[%s4482_s6 + $0x378] sm:$0xff] }
 0x482   :  { %3082 = vpow2.f32 %v1463_v35  ;;  %v1450_v35 = vmul.f32 %v1395_v27, %v3811_v0  ;;  %v2725_v0 = vld [vmem:[%s4482_s6 + $0x300] sm:$0xff] }
 0x484   :  { %v3075_v22 = vpop.eup %3074  ;;  %v1490_v9 = vmul.f32 %v1482_v19, %v1450_v35  ;;  %v2741_v19 = vld [vmem:[%s4482_s6 + $0x380] sm:$0xff]  ;;  %v2743_v35 = vld [vmem:[%s4482_s6 + $0x390] sm:$0xff] }
 0x485   :  { %v3077_v55 = vpop.eup %3076  ;;  %v1486_v48 = vsub.f32 1.0, %v3075_v22  ;;  %v1451_v22 = vmul.f32 %v1400_v53, %v1203_v14  ;;  %v2730_v14 = vld [vmem:[%s4482_s6 + $0x328] sm:$0xff]  ;;  %v2737_v53 = vld [vmem:[%s4482_s6 + $0x360] sm:$0xff] }
 0x486   :  { %v3079_v57 = vpop.eup %3078  ;;  %v1483_v23 = vsub.f32 1.0, %v3077_v55  ;;  %v2733_v55 = vld [vmem:[%s4482_s6 + $0x340] sm:$0xff] }
 0x487   :  { %v3081_v13 = vpop.eup %3080  ;;  %v1494_v3 = vmul.f32 %v1486_v48, %v1454_v58  ;;  %v1481_v1 = vsub.f32 1.0, %v3079_v57  ;;  %v1448_v58 = vmul.f32 %v1390_v7, %v3808_v45  ;;  %v2734_v48 = vld [vmem:[%s4482_s6 + $0x348] sm:$0xff]  ;;  %v2736_v57 = vld [vmem:[%s4482_s6 + $0x358] sm:$0xff] }
 0x488   :  { %v1485_v4 = vsub.f32 1.0, %v3081_v13  ;;  %v3083_v5 = vpop.eup %3082  ;;  %v1491_v16 = vmul.f32 %v1483_v23, %v1451_v22  ;;  %v2738_v13 = vld [vmem:[%s4482_s6 + $0x368] sm:$0xff] }
 0x489   :  { %1665 = vmatpush.msrb.mxu3 %v1494_v3  ;;  %v1479_v44 = vsub.f32 1.0, %v3083_v5  ;;  %v1488_v8 = vmul.f32 %v1480_v6, %v1448_v58  ;;  %v1489_v2 = vmul.f32 %v1481_v1, %v1449_v41  ;;  %v2726_v5 = vld [vmem:[%s4482_s6 + $0x308] sm:$0xff]  ;;  %v2727_v6 = vld [vmem:[%s4482_s6 + $0x310] sm:$0xff]  ;;  %v2744_v1 = vld [vmem:[%s4482_s6 + $0x398] sm:$0xff] }
 0x48a   :  { %v1493_v62 = vmul.f32 %v1485_v4, %v1453_v38  ;;  %v1447_v4 = vmul.f32 %v1390_v7, %v3821_v11  ;;  %v2728_v7 = vld [vmem:[%s4482_s6 + $0x318] sm:$0xff]  ;;  %v2739_v3 = vld [vmem:[%s4482_s6 + $0x370] sm:$0xff]  ;;  %v2742_v38 = vld [vmem:[%s4482_s6 + $0x388] sm:$0xff] }
 0x48b   :  { %1666 = vmatpush.msrb.mxu3 %v1492_v29  ;;  %v2732_v11 = vld [vmem:[%s4482_s6 + $0x338] sm:$0xff] }
 0x48c   :  { %1588 = vmatpush.msrb.mxu2 %v1493_v62  ;;  %v1487_v45 = vmul.f32 %v1479_v44, %v1447_v4 }
 0x48d   :  { %1667 = vmatpush.msrb.mxu3 %v1490_v9  ;;  %v2729_v9 = vld [vmem:[%s4482_s6 + $0x320] sm:$0xff] }
 0x48e   :  { %1589 = vmatpush.msrb.mxu2 %v1491_v16 }
 0x48f   :  { %1668 = vmatpush.msrb.mxu3 %v1488_v8 }
 0x490   :  { %2765 = vmatmul.msk.f32.vlgmr.msrb.gmra.mxu3 %vm180_vm2, %v2725_v0  ;;  %1590 = vmatpush.msrb.mxu2 %v1489_v2 }
 0x492   :  { %1591 = vmatpush.msrb.mxu2 %v1487_v45 }
 0x493   :  { %2745 = vmatmul.msk.f32.vlgmr.msrb.gmra.mxu2 %vm180_vm2, %v2725_v0 }
 0x498   :  { %2766 = vmatmul.msk.f32.gmra.mxu3 %vm180_vm2, %v2726_v5 }
 0x49b   :  { %2746 = vmatmul.msk.f32.gmra.mxu2 %vm180_vm2, %v2726_v5 }
 0x4a0   :  { %2767 = vmatmul.msk.f32.gmra.mxu3 %vm180_vm2, %v2727_v6 }
 0x4a3   :  { %2747 = vmatmul.msk.f32.gmra.mxu2 %vm180_vm2, %v2727_v6 }
 0x4a8   :  { %2768 = vmatmul.msk.f32.gmra.mxu3 %vm180_vm2, %v2728_v7 }
 0x4ab   :  { %2748 = vmatmul.msk.f32.gmra.mxu2 %vm180_vm2, %v2728_v7 }
 0x4b0   :  { %2769 = vmatmul.msk.f32.gmra.mxu3 %vm180_vm2, %v2729_v9 }
 0x4b3   :  { %2749 = vmatmul.msk.f32.gmra.mxu2 %vm180_vm2, %v2729_v9 }
 0x4b8   :  { %2770 = vmatmul.msk.f32.gmra.mxu3 %vm180_vm2, %v2730_v14 }
 0x4bb   :  { %2750 = vmatmul.msk.f32.gmra.mxu2 %vm180_vm2, %v2730_v14 }
 0x4c0   :  { %2771 = vmatmul.msk.f32.gmra.mxu3 %vm180_vm2, %v2731_v42 }
 0x4c3   :  { %2751 = vmatmul.msk.f32.gmra.mxu2 %vm180_vm2, %v2731_v42  ;;  %v3968_v42 = vpop.permute.xlu2 %1379 }
 0x4c8   :  { %2772 = vmatmul.msk.f32.gmra.mxu3 %vm180_vm2, %v2732_v11 }
 0x4cb   :  { %2752 = vmatmul.msk.f32.gmra.mxu2 %vm180_vm2, %v2732_v11 }
 0x4d0   :  { %2773 = vmatmul.msk.f32.gmra.mxu3 %vm180_vm2, %v2733_v55 }
 0x4d3   :  { %2753 = vmatmul.msk.f32.gmra.mxu2 %vm180_vm2, %v2733_v55 }
 0x4d8   :  { %2774 = vmatmul.msk.f32.gmra.mxu3 %vm180_vm2, %v2734_v48 }
 0x4db   :  { %2754 = vmatmul.msk.f32.gmra.mxu2 %vm180_vm2, %v2734_v48  ;;  %v3974_v48 = vpop.permute.xlu1 %1384 }
 0x4e0   :  { %2775 = vmatmul.msk.f32.gmra.mxu3 %vm180_vm2, %v2735_v20 }
 0x4e3   :  { %2755 = vmatmul.msk.f32.gmra.mxu2 %vm180_vm2, %v2735_v20 }
 0x4e8   :  { %2776 = vmatmul.msk.f32.gmra.mxu3 %vm180_vm2, %v2736_v57 }
 0x4eb   :  { %2756 = vmatmul.msk.f32.gmra.mxu2 %vm180_vm2, %v2736_v57  ;;  %v1365_v57 = vpop.permute.xlu2 %1364 }
 0x4ec   :  { %v1438_v39 = vmul.f32 %v1365_v57, %v3616_v56 }
 0x4f0   :  { %2777 = vmatmul.msk.f32.gmra.mxu3 %vm180_vm2, %v2737_v53 }
 0x4f3   :  { %2757 = vmatmul.msk.f32.gmra.mxu2 %vm180_vm2, %v2737_v53 }
 0x4f8   :  { %2778 = vmatmul.msk.f32.gmra.mxu3 %vm180_vm2, %v2738_v13 }
 0x4fb   :  { %2758 = vmatmul.msk.f32.gmra.mxu2 %vm180_vm2, %v2738_v13 }
 0x500   :  { %2779 = vmatmul.msk.f32.gmra.mxu3 %vm180_vm2, %v2739_v3 }
 0x503   :  { %2759 = vmatmul.msk.f32.gmra.mxu2 %vm180_vm2, %v2739_v3  ;;  %v3982_v3 = vpop.permute.xlu1 %1369 }
 0x508   :  { %2780 = vmatmul.msk.f32.gmra.mxu3 %vm180_vm2, %v2740_v36 }
 0x50b   :  { %2760 = vmatmul.msk.f32.gmra.mxu2 %vm180_vm2, %v2740_v36  ;;  %v1350_v36 = vpop.permute.xlu2 %1349 }
 0x510   :  { %2781 = vmatmul.msk.f32.gmra.mxu3 %vm180_vm2, %v2741_v19 }
 0x513   :  { %v3914_v27 = vpop.f32.mrf.mxu3  ;;  %2761 = vmatmul.msk.f32.gmra.mxu2 %vm180_vm2, %v2741_v19  ;;  %v1432_v19 = vmul.f32 %v1350_v36, %v3634_v25 }
 0x514   :  { %4524 = vst [vmem:[#allocation22_spill] sm:$0xff] %v3914_v27 }
 0x516   :  { %v3920_v23 = vpop.f32.mrf.mxu2 }
 0x517   :  { %4525 = vst [vmem:[#allocation23_spill] sm:$0xff] %v3920_v23 }
 0x518   :  { %2782 = vmatmul.msk.f32.gmra.mxu3 %vm180_vm2, %v2742_v38 }
 0x51b   :  { %v3923_v29 = vpop.f32.mrf.mxu3  ;;  %2762 = vmatmul.msk.f32.gmra.mxu2 %vm180_vm2, %v2742_v38 }
 0x51c   :  { %4526 = vst [vmem:[#allocation24_spill] sm:$0xff] %v3923_v29 }
 0x51e   :  { %v3929_v62 = vpop.f32.mrf.mxu2 }
 0x51f   :  { %4527 = vst [vmem:[#allocation25_spill] sm:$0xff] %v3929_v62 }
 0x520   :  { %2783 = vmatmul.msk.f32.gmra.mxu3 %vm180_vm2, %v2743_v35 }
 0x523   :  { %v3932_v22 = vpop.f32.mrf.mxu3  ;;  %2763 = vmatmul.msk.f32.gmra.mxu2 %vm180_vm2, %v2743_v35 }
 0x524   :  { %4528 = vst [vmem:[#allocation26_spill] sm:$0xff] %v3932_v22 }
 0x526   :  { %v3938_v58 = vpop.f32.mrf.mxu2 }
 0x527   :  { %4529 = vst [vmem:[#allocation27_spill] sm:$0xff] %v3938_v58 }
 0x528   :  { %2784 = vmatmul.msk.f32.gmra.mxu3 %vm180_vm2, %v2744_v1 }
 0x52b   :  { %v3941_v16 = vpop.f32.mrf.mxu3  ;;  %2764 = vmatmul.msk.f32.gmra.mxu2 %vm180_vm2, %v2744_v1  ;;  %v1431_v1 = vmul.f32 %v1350_v36, %v3620_v60 }
 0x52c   :  { %4530 = vst [vmem:[#allocation28_spill] sm:$0xff] %v3941_v16  ;;  %v1355_v16 = vpop.permute.xlu1 %1354 }
 0x52d   :  { %v1434_v58 = vmul.f32 %v1355_v16, %v3629_v30  ;;  %v1433_v29 = vmul.f32 %v1355_v16, %v3613_v18  ;;  %v1437_v16 = vmul.f32 %v1365_v57, %v3604_v54  ;;  %v1779_v57 = vsub.f32 0.0, %v3762_v15 }
 0x52e   :  { %v3944_v41 = vpop.f32.mrf.mxu2 }
 0x52f   :  { %4531 = vst [vmem:[#allocation29_spill] sm:$0xff] %v3944_v41 }
 0x533   :  { %v3946_v44 = vpop.f32.mrf.mxu3 }
 0x534   :  { %4532 = vst [vmem:[#allocation30_spill] sm:$0xff] %v3946_v44  ;;  %v3988_v44 = vpop.permute.xlu0 %1374 }
 0x536   :  { %v3948_v8 = vpop.f32.mrf.mxu2 }
 0x537   :  { %4533 = vst [vmem:[#allocation31_spill] sm:$0xff] %v3948_v8 }
 0x53b   :  { %v3950_v0 = vpop.f32.mrf.mxu3 }
 0x53c   :  { %4534 = vst [vmem:[#allocation32_spill] sm:$0xff] %v3950_v0  ;;  %v1788_v0 = vmul.f32 1.442695, %v1779_v57  ;;  %v1442_v57 = vmul.f32 %v3988_v44, %v3758_v33 }
 0x53e   :  { %v3952_v2 = vpop.f32.mrf.mxu2 }
 0x53f   :  { %4535 = vst [vmem:[#allocation33_spill] sm:$0xff] %v3952_v2 }
 0x543   :  { %v3954_v4 = vpop.f32.mrf.mxu3 }
 0x544   :  { %4536 = vst [vmem:[#allocation34_spill] sm:$0xff] %v3954_v4  ;;  %v1778_v4 = vsub.f32 0.0, %v3751_v12 }
 0x546   :  { %v3956_v45 = vpop.f32.mrf.mxu2 }
 0x547   :  { %4537 = vst [vmem:[#allocation35_spill] sm:$0xff] %v3956_v45  ;;  %v1781_v45 = vsub.f32 0.0, %v3758_v33  ;;  %v1441_v33 = vmul.f32 %v3988_v44, %v3744_v43 }
 0x549   :  { %v1792_v51 = vmul.f32 1.442695, %v1781_v45  ;;  %v1446_v45 = vmul.f32 %v3974_v48, %v3740_v37 }
 0x54b   :  { %v3958_v5 = vpop.f32.mrf.mxu3 }
 0x54c   :  { %4538 = vst [vmem:[#allocation36_spill] sm:$0xff] %v3958_v5 }
 0x54e   :  { %v3960_v6 = vpop.f32.mrf.mxu2 }
 0x54f   :  { %4539 = vst [vmem:[#allocation37_spill] sm:$0xff] %v3960_v6 }
 0x553   :  { %v3962_v7 = vpop.f32.mrf.mxu3 }
 0x556   :  { %v3964_v9 = vpop.f32.mrf.mxu2 }
 0x55b   :  { %v3966_v14 = vpop.f32.mrf.mxu3 }
 0x55e   :  { %v3970_v11 = vpop.f32.mrf.mxu2 }
 0x563   :  { %v3972_v55 = vpop.f32.mrf.mxu3 }
 0x566   :  { %v3976_v20 = vpop.f32.mrf.mxu2 }
 0x56b   :  { %v3978_v53 = vpop.f32.mrf.mxu3 }
 0x56e   :  { %v3980_v13 = vpop.f32.mrf.mxu2 }
 0x573   :  { %v1706_v38 = vpop.f32.mrf.mxu3 }
 0x574   :  { %v3985_v35 = vadd.f32 %v1706_v38, %v1432_v19  ;;  %v1360_v19 = vpop.permute.xlu0 %1359 }
 0x575   :  { %v1436_v38 = vmul.f32 %v1360_v19, %v3623_v24 }
 0x576   :  { %v1629_v8 = vpop.f32.mrf.mxu2 }
 0x577   :  { %v3990_v41 = vadd.f32 %v1629_v8, %v1431_v1  ;;  %v1435_v8 = vmul.f32 %v1360_v19, %v3607_v59  ;;  %v1783_v19 = vsub.f32 0.0, %v3748_v63 }
 0x57b   :  { %v1709_v22 = vpop.f32.mrf.mxu3 }
 0x57c   :  { %v3993_v62 = vadd.f32 %v1709_v22, %v1434_v58 }
 0x57e   :  { %v1632_v23 = vpop.f32.mrf.mxu2 }
 0x57f   :  { %v3996_v27 = vadd.f32 %v1632_v23, %v1433_v29 }
 0x583   :  { %v1712_v36 = vpop.f32.mrf.mxu3 }
 0x584   :  { %v3999_v10 = vadd.f32 %v1712_v36, %v1436_v38  ;;  %v1785_v36 = vsub.f32 0.0, %v3740_v37  ;;  %v1440_v37 = vmul.f32 %v3982_v3, %v3762_v15  ;;  %v1439_v15 = vmul.f32 %v3982_v3, %v3751_v12  ;;  %v2788_v3 = vld [vmem:[%s4482_s6 + $0x258] sm:$0xff] }
 0x586   :  { %4540 = vst [vmem:[#allocation38_spill] sm:$0xff] %v3999_v10  ;;  %v1635_v1 = vpop.f32.mrf.mxu2 }
 0x587   :  { %v4002_v6 = vadd.f32 %v1635_v1, %v1435_v8  ;;  %v1784_v1 = vsub.f32 0.0, %v3733_v21 }
 0x589   :  { %4541 = vst [vmem:[#allocation39_spill] sm:$0xff] %v4002_v6  ;;  %v1798_v46 = vmul.f32 1.442695, %v1784_v1 }
 0x58b   :  { %v1715_v22 = vpop.f32.mrf.mxu3 }
 0x58c   :  { %v4005_v58 = vadd.f32 %v1715_v22, %v1438_v39  ;;  %v1800_v39 = vmul.f32 1.442695, %v1785_v36  ;;  %v1782_v22 = vsub.f32 0.0, %v3737_v31  ;;  %v1786_v36 = vmul.f32 1.442695, %v1778_v4 }
 0x58e   :  { %4542 = vst [vmem:[#allocation40_spill] sm:$0xff] %v4005_v58  ;;  %v1638_v23 = vpop.f32.mrf.mxu2  ;;  %3084 = vpow2.f32 %v1800_v39  ;;  %v1794_v49 = vmul.f32 1.442695, %v1782_v22 }
 0x58f   :  { %v4008_v29 = vadd.f32 %v1638_v23, %v1437_v16  ;;  %v1796_v16 = vmul.f32 1.442695, %v1783_v19  ;;  %v1780_v23 = vsub.f32 0.0, %v3744_v43  ;;  %v1444_v19 = vmul.f32 %v3968_v42, %v3748_v63 }
 0x590   :  { %v1445_v63 = vmul.f32 %v3974_v48, %v3733_v21 }
 0x591   :  { %4543 = vst [vmem:[#allocation41_spill] sm:$0xff] %v4008_v29  ;;  %3086 = vpow2.f32 %v1796_v16  ;;  %v1790_v52 = vmul.f32 1.442695, %v1780_v23 }
 0x592   :  { %3088 = vpow2.f32 %v1798_v46 }
 0x593   :  { %v1718_v5 = vpop.f32.mrf.mxu3  ;;  %3090 = vpow2.f32 %v1792_v51 }
 0x594   :  { %3092 = vpow2.f32 %v1794_v49  ;;  %v3085_v58 = vpop.eup %3084 }
 0x595   :  { %3094 = vpow2.f32 %v1788_v0  ;;  %v1809_v51 = vsub.f32 1.0, %v3085_v58 }
 0x596   :  { %v4010_v47 = vpop.f32.mrf.mxu2  ;;  %3096 = vpow2.f32 %v1790_v52  ;;  %v1443_v52 = vmul.f32 %v3968_v42, %v3737_v31  ;;  %v1763_v31 = vadd.f32 %v1718_v5, %v1440_v37  ;;  %v2785_v5 = vld [vmem:[%s4482_s6 + $0x240] sm:$0xff]  ;;  %v2795_v37 = vld [vmem:[%s4482_s6 + $0x290] sm:$0xff] }
 0x597   :  { %v3087_v1 = vpop.eup %3086  ;;  %3098 = vpow2.f32 %v1786_v36  ;;  %v1762_v43 = vadd.f32 %v4010_v47, %v1439_v15  ;;  %v2787_v47 = vld [vmem:[%s4482_s6 + $0x250] sm:$0xff] }
 0x598   :  { %v3089_v22 = vpop.eup %3088  ;;  %v1807_v23 = vsub.f32 1.0, %v3087_v1 }
 0x599   :  { %v3091_v49 = vpop.eup %3090 }
 0x59a   :  { %v3093_v0 = vpop.eup %3092  ;;  %v1805_v42 = vsub.f32 1.0, %v3091_v49  ;;  %v2791_v49 = vld [vmem:[%s4482_s6 + $0x270] sm:$0xff] }
 0x59b   :  { %v1721_v38 = vpop.f32.mrf.mxu3  ;;  %v3095_v10 = vpop.eup %3094 }
 0x59c   :  { %v1765_v16 = vadd.f32 %v1721_v38, %v1442_v57  ;;  %v1806_v38 = vsub.f32 1.0, %v3093_v0  ;;  %v1803_v57 = vsub.f32 1.0, %v3095_v10  ;;  %v2786_v10 = vld [vmem:[%s4482_s6 + $0x248] sm:$0xff] }
 0x59d   :  { %v2794_v0 = vld [vmem:[%s4482_s6 + $0x288] sm:$0xff] }
 0x59e   :  { %v1644_v8 = vpop.f32.mrf.mxu2 }
 0x59f   :  { %v1764_v48 = vadd.f32 %v1644_v8, %v1441_v33  ;;  %v2789_v8 = vld [vmem:[%s4482_s6 + $0x260] sm:$0xff]  ;;  %v2799_v33 = vld [vmem:[%s4482_s6 + $0x2b0] sm:$0xff] }
 0x5a3   :  { %v1724_v2 = vpop.f32.mrf.mxu3 }
 0x5a4   :  { %v1767_v46 = vadd.f32 %v1724_v2, %v1444_v19  ;;  %v1808_v19 = vsub.f32 1.0, %v3089_v22 }
 0x5a6   :  { %v1647_v29 = vpop.f32.mrf.mxu2 }
 0x5a7   :  { %v1766_v2 = vadd.f32 %v1647_v29, %v1443_v52  ;;  %v1811_v29 = vmul.f32 %v1803_v57, %v1763_v31  ;;  %v2792_v52 = vld [vmem:[%s4482_s6 + $0x278] sm:$0xff] }
 0x5ab   :  { %v1727_v39 = vpop.f32.mrf.mxu3 }
 0x5ac   :  { %v1769_v4 = vadd.f32 %v1727_v39, %v1446_v45  ;;  %v3097_v45 = vpop.eup %3096  ;;  %v1815_v39 = vmul.f32 %v1807_v23, %v1767_v46  ;;  %v2797_v23 = vld [vmem:[%s4482_s6 + $0x2a0] sm:$0xff] }
 0x5ad   :  { %v3099_v21 = vpop.eup %3098  ;;  %v1804_v44 = vsub.f32 1.0, %v3097_v45 }
 0x5ae   :  { %v1817_v36 = vmul.f32 %v1809_v51, %v1769_v4  ;;  %v1650_v6 = vpop.f32.mrf.mxu2  ;;  %v1813_v4 = vmul.f32 %v1805_v42, %v1765_v16  ;;  %v1802_v22 = vsub.f32 1.0, %v3099_v21  ;;  %v2790_v51 = vld [vmem:[%s4482_s6 + $0x268] sm:$0xff]  ;;  %v2796_v16 = vld [vmem:[%s4482_s6 + $0x298] sm:$0xff] }
 0x5af   :  { %v1768_v58 = vadd.f32 %v1650_v6, %v1445_v63  ;;  %v1814_v6 = vmul.f32 %v1806_v38, %v1766_v2  ;;  %v1812_v46 = vmul.f32 %v1804_v44, %v1764_v48  ;;  %v2793_v63 = vld [vmem:[%s4482_s6 + $0x280] sm:$0xff]  ;;  %v2800_v2 = vld [vmem:[%s4482_s6 + $0x2b8] sm:$0xff] }
 0x5b0   :  { %1960 = vmatpush.msra.mxu1 %v1817_v36  ;;  %v1810_v12 = vmul.f32 %v1802_v22, %v1762_v43  ;;  %v2798_v36 = vld [vmem:[%s4482_s6 + $0x2a8] sm:$0xff]  ;;  %v1345_v43 = vpop.permute.xlu0 %1344 }
 0x5b1   :  { %v1816_v1 = vmul.f32 %v1808_v19, %v1768_v58 }
 0x5b2   :  { %1961 = vmatpush.msra.mxu1 %v1815_v39 }
 0x5b3   :  { %1895 = vmatpush.msra.mxu0 %v1816_v1 }
 0x5b4   :  { %1962 = vmatpush.msra.mxu1 %v1813_v4 }
 0x5b5   :  { %1896 = vmatpush.msra.mxu0 %v1814_v6 }
 0x5b6   :  { %1963 = vmatpush.msra.mxu1 %v1811_v29 }
 0x5b7   :  { %2817 = vmatmul.msk.f32.vlgmr.msra.gmra.mxu1 %vm180_vm2, %v2785_v5  ;;  %1897 = vmatpush.msra.mxu0 %v1812_v46 }
 0x5b9   :  { %1898 = vmatpush.msra.mxu0 %v1810_v12 }
 0x5ba   :  { %2801 = vmatmul.msk.f32.vlgmr.msra.gmra.mxu0 %vm180_vm2, %v2785_v5  ;;  %v1330_v5 = vpop.permute.xlu0 %1329 }
 0x5bb   :  { %v1424_v22 = vmul.f32 %v1330_v5, %v3550_v17  ;;  %v1423_v12 = vmul.f32 %v1330_v5, %v3538_v61 }
 0x5bd   :  { %v1747_v46 = vadd.f32 %v3962_v7, %v1424_v22 }
 0x5bf   :  { %2818 = vmatmul.msk.f32.gmra.mxu1 %vm180_vm2, %v2786_v10 }
 0x5c2   :  { %2802 = vmatmul.msk.f32.gmra.mxu0 %vm180_vm2, %v2786_v10 }
 0x5c7   :  { %2819 = vmatmul.msk.f32.gmra.mxu1 %vm180_vm2, %v2787_v47 }
 0x5ca   :  { %2803 = vmatmul.msk.f32.gmra.mxu0 %vm180_vm2, %v2787_v47 }
 0x5cf   :  { %2820 = vmatmul.msk.f32.gmra.mxu1 %vm180_vm2, %v2788_v3 }
 0x5d2   :  { %2804 = vmatmul.msk.f32.gmra.mxu0 %vm180_vm2, %v2788_v3  ;;  %v1746_v3 = vadd.f32 %v3964_v9, %v1423_v12 }
 0x5d7   :  { %2821 = vmatmul.msk.f32.gmra.mxu1 %vm180_vm2, %v2789_v8 }
 0x5da   :  { %2805 = vmatmul.msk.f32.gmra.mxu0 %vm180_vm2, %v2789_v8 }
 0x5df   :  { %2822 = vmatmul.msk.f32.gmra.mxu1 %vm180_vm2, %v2790_v51 }
 0x5e2   :  { %2806 = vmatmul.msk.f32.gmra.mxu0 %vm180_vm2, %v2790_v51  ;;  %v1335_v51 = vpop.permute.xlu2 %1334 }
 0x5e7   :  { %2823 = vmatmul.msk.f32.gmra.mxu1 %vm180_vm2, %v2791_v49 }
 0x5ea   :  { %2807 = vmatmul.msk.f32.gmra.mxu0 %vm180_vm2, %v2791_v49 }
 0x5ef   :  { %2824 = vmatmul.msk.f32.gmra.mxu1 %vm180_vm2, %v2792_v52 }
 0x5f2   :  { %2808 = vmatmul.msk.f32.gmra.mxu0 %vm180_vm2, %v2792_v52  ;;  %v1426_v52 = vmul.f32 %v1335_v51, %v3546_v28 }
 0x5f7   :  { %2825 = vmatmul.msk.f32.gmra.mxu1 %vm180_vm2, %v2793_v63 }
 0x5fa   :  { %2809 = vmatmul.msk.f32.gmra.mxu0 %vm180_vm2, %v2793_v63  ;;  %v1749_v63 = vadd.f32 %v3966_v14, %v1426_v52  ;;  %v2054_v14 = vsub.f32 0.0, %v3634_v25  ;;  %v2056_v25 = vsub.f32 0.0, %v3629_v30 }
 0x5ff   :  { %2826 = vmatmul.msk.f32.gmra.mxu1 %vm180_vm2, %v2794_v0 }
 0x602   :  { %2810 = vmatmul.msk.f32.gmra.mxu0 %vm180_vm2, %v2794_v0  ;;  %v1425_v0 = vmul.f32 %v1335_v51, %v3532_v32  ;;  %v1430_v51 = vmul.f32 %v1345_v43, %v3535_v50 }
 0x604   :  { %v1748_v7 = vadd.f32 %v3970_v11, %v1425_v0  ;;  %v2053_v11 = vsub.f32 0.0, %v3620_v60  ;;  %v1753_v52 = vadd.f32 %v3978_v53, %v1430_v51  ;;  %v2055_v60 = vsub.f32 0.0, %v3613_v18 }
 0x606   :  { %v2065_v53 = vmul.f32 1.442695, %v2055_v60 }
 0x607   :  { %2827 = vmatmul.msk.f32.gmra.mxu1 %vm180_vm2, %v2795_v37 }
 0x60a   :  { %2811 = vmatmul.msk.f32.gmra.mxu0 %vm180_vm2, %v2795_v37 }
 0x60f   :  { %2828 = vmatmul.msk.f32.gmra.mxu1 %vm180_vm2, %v2796_v16 }
 0x612   :  { %2812 = vmatmul.msk.f32.gmra.mxu0 %vm180_vm2, %v2796_v16 }
 0x617   :  { %2829 = vmatmul.msk.f32.gmra.mxu1 %vm180_vm2, %v2797_v23 }
 0x61a   :  { %2813 = vmatmul.msk.f32.gmra.mxu0 %vm180_vm2, %v2797_v23 }
 0x61f   :  { %2830 = vmatmul.msk.f32.gmra.mxu1 %vm180_vm2, %v2798_v36 }
 0x622   :  { %2814 = vmatmul.msk.f32.gmra.mxu0 %vm180_vm2, %v2798_v36  ;;  %v1340_v36 = vpop.permute.xlu1 %1339 }
 0x623   :  { %v1428_v9 = vmul.f32 %v1340_v36, %v3541_v26  ;;  %v1427_v5 = vmul.f32 %v1340_v36, %v3527_v40  ;;  %v2067_v36 = vmul.f32 1.442695, %v2056_v25 }
 0x625   :  { %v1750_v12 = vadd.f32 %v3976_v20, %v1427_v5 }
 0x627   :  { %2831 = vmatmul.msk.f32.gmra.mxu1 %vm180_vm2, %v2799_v33 }
 0x62a   :  { %2815 = vmatmul.msk.f32.gmra.mxu0 %vm180_vm2, %v2799_v33 }
 0x62f   :  { %2832 = vmatmul.msk.f32.gmra.mxu1 %vm180_vm2, %v2800_v2 }
 0x632   :  { %2816 = vmatmul.msk.f32.gmra.mxu0 %vm180_vm2, %v2800_v2  ;;  %v1751_v2 = vadd.f32 %v3972_v55, %v1428_v9  ;;  %v2061_v55 = vmul.f32 1.442695, %v2053_v11 }
 0x634   :  { %v4117_v58 = vpop.f32.mrf.mxu1 }
 0x637   :  { %v4119_v19 = vpop.f32.mrf.mxu0 }
 0x63c   :  { %v4121_v45 = vpop.f32.mrf.mxu1 }
 0x63f   :  { %v4123_v31 = vpop.f32.mrf.mxu0 }
 0x644   :  { %v4125_v42 = vpop.f32.mrf.mxu1 }
 0x647   :  { %v4127_v39 = vpop.f32.mrf.mxu0 }
 0x64c   :  { %v4129_v21 = vpop.f32.mrf.mxu1 }
 0x64f   :  { %v4131_v15 = vpop.f32.mrf.mxu0 }
 0x654   :  { %v4133_v48 = vpop.f32.mrf.mxu1 }
 0x657   :  { %v4135_v38 = vpop.f32.mrf.mxu0 }
 0x65c   :  { %v4137_v1 = vpop.f32.mrf.mxu1 }
 0x65f   :  { %v4139_v57 = vpop.f32.mrf.mxu0 }
 0x664   :  { %v4141_v4 = vpop.f32.mrf.mxu1 }
 0x667   :  { %v4143_v44 = vpop.f32.mrf.mxu0 }
 0x66c   :  { %v4145_v6 = vpop.f32.mrf.mxu1 }
 0x66f   :  { %v4147_v29 = vpop.f32.mrf.mxu0 }
 0x674   :  { %v1989_v10 = vpop.f32.mrf.mxu1 }
 0x675   :  { %v4152_v47 = vadd.f32 %v1989_v10, %v1747_v46 }
 0x677   :  { %v1924_v8 = vpop.f32.mrf.mxu0 }
 0x678   :  { %v4155_v49 = vadd.f32 %v1924_v8, %v1746_v3  ;;  %v2063_v8 = vmul.f32 1.442695, %v2054_v14 }
 0x67a   :  { %3100 = vpow2.f32 %v2063_v8 }
 0x67b   :  { %3102 = vpow2.f32 %v2061_v55 }
 0x67c   :  { %v1992_v37 = vpop.f32.mrf.mxu1  ;;  %3104 = vpow2.f32 %v2067_v36 }
 0x67d   :  { %v4160_v16 = vadd.f32 %v1992_v37, %v1749_v63  ;;  %v1429_v63 = vmul.f32 %v1345_v43, %v3524_v34  ;;  %v2058_v43 = vsub.f32 0.0, %v3623_v24  ;;  %3106 = vpow2.f32 %v2065_v53 }
 0x67e   :  { %v2060_v24 = vsub.f32 0.0, %v3616_v56  ;;  %v4544_v56 = vld [vmem:[#allocation38_spill] sm:$0xff] }
 0x67f   :  { %v1927_v23 = vpop.f32.mrf.mxu0  ;;  %v1752_v20 = vadd.f32 %v3980_v13, %v1429_v63  ;;  %v2057_v13 = vsub.f32 0.0, %v3607_v59  ;;  %v2071_v11 = vmul.f32 1.442695, %v2058_v43  ;;  %v2059_v59 = vsub.f32 0.0, %v3604_v54 }
 0x680   :  { %v4163_v33 = vadd.f32 %v1927_v23, %v1748_v7  ;;  %v3101_v9 = vpop.eup %3100  ;;  %v2075_v60 = vmul.f32 1.442695, %v2060_v24 }
 0x681   :  { %v3103_v5 = vpop.eup %3102  ;;  %3108 = vpow2.f32 %v2071_v11  ;;  %v2073_v53 = vmul.f32 1.442695, %v2059_v59 }
 0x682   :  { %v3105_v8 = vpop.eup %3104 }
 0x683   :  { %v3107_v63 = vpop.eup %3106 }
 0x684   :  { %v1995_v22 = vpop.f32.mrf.mxu1 }
 0x685   :  { %v4169_v46 = vadd.f32 %v1995_v22, %v1751_v2  ;;  %v2078_v22 = vsub.f32 1.0, %v3101_v9 }
 0x687   :  { %v1930_v10 = vpop.f32.mrf.mxu0  ;;  %v3109_v36 = vpop.eup %3108 }
 0x688   :  { %v4173_v3 = vadd.f32 %v1930_v10, %v1750_v12  ;;  %v2077_v10 = vsub.f32 1.0, %v3103_v5 }
 0x68c   :  { %v1998_v0 = vpop.f32.mrf.mxu1 }
 0x68d   :  { %v4179_v37 = vadd.f32 %v1998_v0, %v1753_v52  ;;  %v2069_v52 = vmul.f32 1.442695, %v2057_v13  ;;  %v2080_v0 = vsub.f32 1.0, %v3105_v8  ;;  %v4546_v8 = vld [vmem:[#allocation40_spill] sm:$0xff] }
 0x68f   :  { %v1933_v7 = vpop.f32.mrf.mxu0  ;;  %3110 = vpow2.f32 %v2069_v52 }
 0x690   :  { %v4183_v23 = vadd.f32 %v1933_v7, %v1752_v20  ;;  %v2079_v7 = vsub.f32 1.0, %v3107_v63  ;;  %3112 = vpow2.f32 %v2075_v60  ;;  %v2838_v60 = vld [vmem:[%s4482_s6 + $0x1a8] sm:$0xff] }
 0x691   :  { %3114 = vpow2.f32 %v2073_v53  ;;  %v2841_v53 = vld [vmem:[%s4482_s6 + $0x1c0] sm:$0xff] }
 0x694   :  { %v2001_v2 = vpop.f32.mrf.mxu1 }
 0x695   :  { %v2038_v30 = vadd.f32 %v2001_v2, %v3985_v35  ;;  %v3111_v43 = vpop.eup %3110 }
 0x696   :  { %v3113_v54 = vpop.eup %3112 }
 0x697   :  { %v2086_v14 = vmul.f32 %v2078_v22, %v2038_v30  ;;  %v1936_v12 = vpop.f32.mrf.mxu0  ;;  %v2082_v30 = vsub.f32 1.0, %v3109_v36  ;;  %v3115_v11 = vpop.eup %3114  ;;  %v2839_v36 = vld [vmem:[%s4482_s6 + $0x1b0] sm:$0xff] }
 0x698   :  { %v2037_v18 = vadd.f32 %v1936_v12, %v3990_v41  ;;  %v4545_v12 = vld [vmem:[#allocation39_spill] sm:$0xff] }
 0x69a   :  { %v2085_v51 = vmul.f32 %v2077_v10, %v2037_v18  ;;  %v2081_v18 = vsub.f32 1.0, %v3111_v43  ;;  %v2843_v43 = vld [vmem:[%s4482_s6 + $0x1d0] sm:$0xff] }
 0x69c   :  { %v2004_v55 = vpop.f32.mrf.mxu1 }
 0x69d   :  { %v2040_v35 = vadd.f32 %v2004_v55, %v3993_v62  ;;  %v2084_v55 = vsub.f32 1.0, %v3113_v54 }
 0x69f   :  { %v2088_v25 = vmul.f32 %v2080_v0, %v2040_v35  ;;  %v1939_v20 = vpop.f32.mrf.mxu0  ;;  %v4547_v35 = vld [vmem:[#allocation41_spill] sm:$0xff] }
 0x6a0   :  { %v2039_v41 = vadd.f32 %v1939_v20, %v3996_v27  ;;  %v2083_v20 = vsub.f32 1.0, %v3115_v11  ;;  %v4548_v11 = vld [vmem:[#allocation20_spill] sm:$0xff] }
 0x6a2   :  { %v2087_v9 = vmul.f32 %v2079_v7, %v2039_v41  ;;  %v2833_v41 = vld [vmem:[%s4482_s6 + $0x180] sm:$0xff]  ;;  %v2834_v7 = vld [vmem:[%s4482_s6 + $0x188] sm:$0xff] }
 0x6a4   :  { %v2007_v2 = vpop.f32.mrf.mxu1 }
 0x6a5   :  { %v2042_v5 = vadd.f32 %v2007_v2, %v4544_v56  ;;  %v2842_v2 = vld [vmem:[%s4482_s6 + $0x1c8] sm:$0xff]  ;;  %v2844_v56 = vld [vmem:[%s4482_s6 + $0x1d8] sm:$0xff] }
 0x6a7   :  { %v2090_v62 = vmul.f32 %v2082_v30, %v2042_v5  ;;  %v1942_v22 = vpop.f32.mrf.mxu0 }
 0x6a8   :  { %v2041_v13 = vadd.f32 %v1942_v22, %v4545_v12 }
 0x6aa   :  { %v2089_v10 = vmul.f32 %v2081_v18, %v2041_v13 }
 0x6ac   :  { %v2010_v27 = vpop.f32.mrf.mxu1 }
 0x6ad   :  { %v2044_v52 = vadd.f32 %v2010_v27, %v4546_v8  ;;  %v1315_v27 = vpop.permute.xlu0 %1314 }
 0x6ae   :  { %v1418_v8 = vmul.f32 %v1315_v27, %v4548_v11 }
 0x6af   :  { %v2092_v24 = vmul.f32 %v2084_v55, %v2044_v52  ;;  %v1945_v63 = vpop.f32.mrf.mxu0  ;;  %v4550_v55 = vld [vmem:[#allocation32_spill] sm:$0xff] }
 0x6b0   :  { %v2043_v0 = vadd.f32 %v1945_v63, %v4547_v35  ;;  %v4551_v63 = vld [vmem:[#allocation17_spill] sm:$0xff] }
 0x6b1   :  { %2207 = vmatpush.msrb.mxu1 %v2092_v24  ;;  %v1741_v24 = vadd.f32 %v4550_v55, %v1418_v8  ;;  %v1417_v35 = vmul.f32 %v1315_v27, %v4551_v63 }
 0x6b2   :  { %v2091_v59 = vmul.f32 %v2083_v20, %v2043_v0  ;;  %v4552_v20 = vld [vmem:[#allocation33_spill] sm:$0xff] }
 0x6b3   :  { %2208 = vmatpush.msrb.mxu1 %v2090_v62  ;;  %v2024_v0 = vadd.f32 %v4137_v1, %v1741_v24  ;;  %v4557_v1 = vld [vmem:[#allocation35_spill] sm:$0xff] }
 0x6b4   :  { %2154 = vmatpush.msrb.mxu0 %v2091_v59  ;;  %v1740_v59 = vadd.f32 %v4552_v20, %v1417_v35  ;;  %v1325_v35 = vpop.permute.xlu1 %1324 }
 0x6b5   :  { %2209 = vmatpush.msrb.mxu1 %v2088_v25  ;;  %v2835_v25 = vld [vmem:[%s4482_s6 + $0x190] sm:$0xff] }
 0x6b6   :  { %2155 = vmatpush.msrb.mxu0 %v2089_v10 }
 0x6b7   :  { %2210 = vmatpush.msrb.mxu1 %v2086_v14  ;;  %v2836_v14 = vld [vmem:[%s4482_s6 + $0x198] sm:$0xff] }
 0x6b8   :  { %2857 = vmatmul.msk.f32.vlgmr.msrb.gmra.mxu1 %vm180_vm2, %v2833_v41  ;;  %2156 = vmatpush.msrb.mxu0 %v2087_v9  ;;  %v2840_v9 = vld [vmem:[%s4482_s6 + $0x1b8] sm:$0xff] }
 0x6ba   :  { %2157 = vmatpush.msrb.mxu0 %v2085_v51  ;;  %v2837_v51 = vld [vmem:[%s4482_s6 + $0x1a0] sm:$0xff] }
 0x6bb   :  { %2845 = vmatmul.msk.f32.vlgmr.msrb.gmra.mxu0 %vm180_vm2, %v2833_v41 }
 0x6c0   :  { %2858 = vmatmul.msk.f32.gmra.mxu1 %vm180_vm2, %v2834_v7 }
 0x6c3   :  { %2846 = vmatmul.msk.f32.gmra.mxu0 %vm180_vm2, %v2834_v7 }
 0x6c8   :  { %2859 = vmatmul.msk.f32.gmra.mxu1 %vm180_vm2, %v2835_v25 }
 0x6cb   :  { %2847 = vmatmul.msk.f32.gmra.mxu0 %vm180_vm2, %v2835_v25  ;;  %v1320_v25 = vpop.permute.xlu2 %1319 }
 0x6d0   :  { %2860 = vmatmul.msk.f32.gmra.mxu1 %vm180_vm2, %v2836_v14 }
 0x6d3   :  { %2848 = vmatmul.msk.f32.gmra.mxu0 %vm180_vm2, %v2836_v14  ;;  %v2023_v14 = vadd.f32 %v4139_v57, %v1740_v59  ;;  %v4558_v57 = vld [vmem:[#allocation16_spill] sm:$0xff] }
 0x6d4   :  { %v1422_v20 = vmul.f32 %v1325_v35, %v4558_v57 }
 0x6d8   :  { %2861 = vmatmul.msk.f32.gmra.mxu1 %vm180_vm2, %v2837_v51 }
 0x6db   :  { %2849 = vmatmul.msk.f32.gmra.mxu0 %vm180_vm2, %v2837_v51  ;;  %v4553_v51 = vld [vmem:[#allocation18_spill] sm:$0xff] }
 0x6e0   :  { %2862 = vmatmul.msk.f32.gmra.mxu1 %vm180_vm2, %v2838_v60 }
 0x6e3   :  { %2850 = vmatmul.msk.f32.gmra.mxu0 %vm180_vm2, %v2838_v60  ;;  %v1420_v60 = vmul.f32 %v1320_v25, %v4553_v51 }
 0x6e8   :  { %2863 = vmatmul.msk.f32.gmra.mxu1 %vm180_vm2, %v2839_v36 }
 0x6eb   :  { %2851 = vmatmul.msk.f32.gmra.mxu0 %vm180_vm2, %v2839_v36 }
 0x6f0   :  { %2864 = vmatmul.msk.f32.gmra.mxu1 %vm180_vm2, %v2840_v9 }
 0x6f3   :  { %2852 = vmatmul.msk.f32.gmra.mxu0 %vm180_vm2, %v2840_v9 }
 0x6f8   :  { %2865 = vmatmul.msk.f32.gmra.mxu1 %vm180_vm2, %v2841_v53 }
 0x6fb   :  { %2853 = vmatmul.msk.f32.gmra.mxu0 %vm180_vm2, %v2841_v53  ;;  %v4555_v53 = vld [vmem:[#allocation34_spill] sm:$0xff] }
 0x700   :  { %2866 = vmatmul.msk.f32.gmra.mxu1 %vm180_vm2, %v2842_v2 }
 0x703   :  { %2854 = vmatmul.msk.f32.gmra.mxu0 %vm180_vm2, %v2842_v2  ;;  %v1743_v2 = vadd.f32 %v4555_v53, %v1420_v60  ;;  %v4560_v60 = vld [vmem:[#allocation14_spill] sm:$0xff] }
 0x704   :  { %v1421_v53 = vmul.f32 %v1325_v35, %v4560_v60 }
 0x705   :  { %v2026_v27 = vadd.f32 %v4141_v4, %v1743_v2  ;;  %v4561_v4 = vld [vmem:[#allocation37_spill] sm:$0xff] }
 0x706   :  { %v1744_v2 = vadd.f32 %v4561_v4, %v1421_v53  ;;  %v2284_v53 = vsub.f32 0.0, %v3527_v40  ;;  %v2282_v4 = vsub.f32 0.0, %v3532_v32 }
 0x708   :  { %2867 = vmatmul.msk.f32.gmra.mxu1 %vm180_vm2, %v2843_v43 }
 0x70b   :  { %2855 = vmatmul.msk.f32.gmra.mxu0 %vm180_vm2, %v2843_v43  ;;  %v4556_v43 = vld [vmem:[#allocation15_spill] sm:$0xff] }
 0x710   :  { %2868 = vmatmul.msk.f32.gmra.mxu1 %vm180_vm2, %v2844_v56 }
 0x713   :  { %2856 = vmatmul.msk.f32.gmra.mxu0 %vm180_vm2, %v2844_v56  ;;  %v1419_v56 = vmul.f32 %v1320_v25, %v4556_v43 }
 0x715   :  { %v1742_v8 = vadd.f32 %v4557_v1, %v1419_v56 }
 0x735   :  { %v4257_v5 = vpop.f32.mrf.mxu1 }
 0x738   :  { %v4259_v30 = vpop.f32.mrf.mxu0 }
 0x73d   :  { %v4261_v62 = vpop.f32.mrf.mxu1 }
 0x740   :  { %v4263_v22 = vpop.f32.mrf.mxu0 }
 0x745   :  { %v4265_v12 = vpop.f32.mrf.mxu1 }
 0x748   :  { %v4267_v13 = vpop.f32.mrf.mxu0 }
 0x74d   :  { %v4269_v18 = vpop.f32.mrf.mxu1 }
 0x750   :  { %v4271_v54 = vpop.f32.mrf.mxu0 }
 0x755   :  { %v4273_v10 = vpop.f32.mrf.mxu1 }
 0x758   :  { %v4276_v52 = vpop.f32.mrf.mxu0 }
 0x759   :  { %4549 = vst [vmem:[#allocation38_spill] sm:$0xff] %v4276_v52 }
 0x75d   :  { %v2227_v41 = vpop.f32.mrf.mxu1 }
 0x75e   :  { %v4282_v7 = vadd.f32 %v2227_v41, %v2024_v0  ;;  %v2025_v0 = vadd.f32 %v4143_v44, %v1742_v8 }
 0x760   :  { %v2174_v36 = vpop.f32.mrf.mxu0 }
 0x761   :  { %v4286_v9 = vadd.f32 %v2174_v36, %v2023_v14  ;;  %v4559_v14 = vld [vmem:[#allocation36_spill] sm:$0xff] }
 0x762   :  { %v1745_v36 = vadd.f32 %v4559_v14, %v1422_v20  ;;  %v2285_v20 = vsub.f32 0.0, %v3541_v26  ;;  %v2283_v14 = vsub.f32 0.0, %v3546_v28  ;;  %v2296_v26 = vmul.f32 1.442695, %v2284_v53 }
 0x763   :  { %4554 = vst [vmem:[#allocation39_spill] sm:$0xff] %v4286_v9 }
 0x764   :  { %v2028_v25 = vadd.f32 %v4145_v6, %v1745_v36  ;;  %v2286_v6 = vsub.f32 0.0, %v3524_v34  ;;  %v2292_v34 = vmul.f32 1.442695, %v2282_v4 }
 0x765   :  { %v2230_v55 = vpop.f32.mrf.mxu1 }
 0x766   :  { %v4292_v24 = vadd.f32 %v2230_v55, %v2026_v27  ;;  %v2027_v27 = vadd.f32 %v4147_v29, %v1744_v2  ;;  %v2281_v29 = vsub.f32 0.0, %v3550_v17  ;;  %v2300_v2 = vmul.f32 1.442695, %v2286_v6 }
 0x768   :  { %v2177_v59 = vpop.f32.mrf.mxu0 }
 0x769   :  { %v4296_v41 = vadd.f32 %v2177_v59, %v2025_v0  ;;  %v2287_v59 = vsub.f32 0.0, %v3535_v50  ;;  %v2280_v50 = vsub.f32 0.0, %v3538_v61 }
 0x76b   :  { %v2302_v36 = vmul.f32 1.442695, %v2287_v59  ;;  %v2288_v28 = vmul.f32 1.442695, %v2280_v50 }
 0x76d   :  { %v2233_v56 = vpop.f32.mrf.mxu1  ;;  %3116 = vpow2.f32 %v2302_v36 }
 0x76e   :  { %v4302_v1 = vadd.f32 %v2233_v56, %v2028_v25  ;;  %v2298_v25 = vmul.f32 1.442695, %v2285_v20  ;;  %v2294_v56 = vmul.f32 1.442695, %v2283_v14 }
 0x770   :  { %v2180_v55 = vpop.f32.mrf.mxu0  ;;  %3118 = vpow2.f32 %v2298_v25 }
 0x771   :  { %v4305_v44 = vadd.f32 %v2180_v55, %v2027_v27  ;;  %v2290_v55 = vmul.f32 1.442695, %v2281_v29  ;;  %3120 = vpow2.f32 %v2300_v2 }
 0x772   :  { %3122 = vpow2.f32 %v2294_v56 }
 0x773   :  { %3124 = vpow2.f32 %v2296_v26  ;;  %v3117_v40 = vpop.eup %3116 }
 0x774   :  { %3126 = vpow2.f32 %v2290_v55  ;;  %v2311_v6 = vsub.f32 1.0, %v3117_v40 }
 0x775   :  { %v2236_v8 = vpop.f32.mrf.mxu1  ;;  %3128 = vpow2.f32 %v2292_v34 }
 0x776   :  { %v3119_v17 = vpop.eup %3118  ;;  %3130 = vpow2.f32 %v2288_v28  ;;  %v2265_v34 = vadd.f32 %v2236_v8, %v4152_v47  ;;  %v2869_v47 = vld [vmem:[%s4482_s6 + $0xc0] sm:$0xff] }
 0x777   :  { %v3121_v59 = vpop.eup %3120  ;;  %v2309_v29 = vsub.f32 1.0, %v3119_v17 }
 0x778   :  { %v2183_v9 = vpop.f32.mrf.mxu0  ;;  %v3123_v14 = vpop.eup %3122  ;;  %v2310_v26 = vsub.f32 1.0, %v3121_v59 }
 0x779   :  { %v3125_v36 = vpop.eup %3124 }
 0x77a   :  { %v3127_v2 = vpop.eup %3126  ;;  %v2308_v28 = vsub.f32 1.0, %v3125_v36  ;;  %v1305_v36 = vpop.permute.xlu2 %1304 }
 0x77b   :  { %v3129_v55 = vpop.eup %3128 }
 0x77d   :  { %v2239_v0 = vpop.f32.mrf.mxu1 }
 0x77e   :  { %v2267_v53 = vadd.f32 %v2239_v0, %v4160_v16  ;;  %v3131_v16 = vpop.eup %3130  ;;  %v2305_v0 = vsub.f32 1.0, %v3127_v2  ;;  %v4563_v2 = vld [vmem:[#allocation22_spill] sm:$0xff] }
 0x77f   :  { %v2304_v8 = vsub.f32 1.0, %v3131_v16  ;;  %v4566_v16 = vld [vmem:[#allocation11_spill] sm:$0xff] }
 0x780   :  { %v2186_v35 = vpop.f32.mrf.mxu0 }
 0x785   :  { %v2242_v27 = vpop.f32.mrf.mxu1 }
 0x786   :  { %v2269_v20 = vadd.f32 %v2242_v27, %v4169_v46  ;;  %v2307_v46 = vsub.f32 1.0, %v3123_v14  ;;  %v2876_v14 = vld [vmem:[%s4482_s6 + $0xf8] sm:$0xff] }
 0x788   :  { %v2189_v52 = vpop.f32.mrf.mxu0  ;;  %v2317_v27 = vmul.f32 %v2309_v29, %v2269_v20  ;;  %v2315_v17 = vmul.f32 %v2307_v46, %v2267_v53  ;;  %v2873_v20 = vld [vmem:[%s4482_s6 + $0xe0] sm:$0xff]  ;;  %v4363_v53 = vpop.permute.xlu1 %1309  ;;  %v4565_v46 = vld [vmem:[#allocation23_spill] sm:$0xff] }
 0x789   :  { %v2268_v56 = vadd.f32 %v2189_v52, %v4173_v3  ;;  %v2306_v3 = vsub.f32 1.0, %v3129_v55  ;;  %v1290_v29 = vpop.permute.xlu2 %1289 }
 0x78b   :  { %v2316_v52 = vmul.f32 %v2308_v28, %v2268_v56 }
 0x78d   :  { %v2245_v32 = vpop.f32.mrf.mxu1 }
 0x78e   :  { %v2271_v61 = vadd.f32 %v2245_v32, %v4179_v37  ;;  %v2266_v37 = vadd.f32 %v2186_v35, %v4163_v33  ;;  %v2264_v32 = vadd.f32 %v2183_v9, %v4155_v49  ;;  %v2870_v49 = vld [vmem:[%s4482_s6 + $0xc8] sm:$0xff]  ;;  %v2871_v9 = vld [vmem:[%s4482_s6 + $0xd0] sm:$0xff]  ;;  %v2872_v35 = vld [vmem:[%s4482_s6 + $0xd8] sm:$0xff] }
 0x790   :  { %v2319_v25 = vmul.f32 %v2311_v6, %v2271_v61  ;;  %v2192_v4 = vpop.f32.mrf.mxu0  ;;  %v2314_v59 = vmul.f32 %v2306_v3, %v2266_v37  ;;  %v2312_v33 = vmul.f32 %v2304_v8, %v2264_v32  ;;  %v2874_v61 = vld [vmem:[%s4482_s6 + $0xe8] sm:$0xff]  ;;  %v2875_v6 = vld [vmem:[%s4482_s6 + $0xf0] sm:$0xff]  ;;  %v4567_v3 = vld [vmem:[#allocation24_spill] sm:$0xff] }
 0x791   :  { %v2270_v50 = vadd.f32 %v2192_v4, %v4183_v23  ;;  %v2313_v23 = vmul.f32 %v2305_v0, %v2265_v34  ;;  %v1295_v34 = vpop.permute.xlu1 %1294 }
 0x792   :  { %2406 = vmatpush.msra.mxu3 %v2319_v25  ;;  %v4562_v25 = vld [vmem:[#allocation13_spill] sm:$0xff]  ;;  %v1410_v0 = vmul.f32 %v1295_v34, %v4566_v16  ;;  %v4576_v16 = vld [vmem:[#allocation6_spill] sm:$0xff] }
 0x793   :  { %v2318_v40 = vmul.f32 %v2310_v26, %v2270_v50  ;;  %v1408_v4 = vmul.f32 %v1290_v29, %v4562_v25  ;;  %v4564_v50 = vld [vmem:[#allocation12_spill] sm:$0xff] }
 0x794   :  { %2407 = vmatpush.msra.mxu3 %v2317_v27  ;;  %v1407_v26 = vmul.f32 %v1290_v29, %v4564_v50  ;;  %v4573_v50 = vld [vmem:[#allocation27_spill] sm:$0xff] }
 0x795   :  { %2365 = vmatpush.msra.mxu2 %v2318_v40  ;;  %v1731_v56 = vadd.f32 %v4563_v2, %v1408_v4  ;;  %v4572_v4 = vld [vmem:[#allocation8_spill] sm:$0xff] }
 0x796   :  { %2408 = vmatpush.msra.mxu3 %v2315_v17  ;;  %v1730_v27 = vadd.f32 %v4565_v46, %v1407_v26 }
 0x797   :  { %2366 = vmatpush.msra.mxu2 %v2316_v52  ;;  %v2014_v55 = vadd.f32 %v4117_v58, %v1731_v56  ;;  %v1733_v52 = vadd.f32 %v4567_v3, %v1410_v0  ;;  %v1413_v0 = vmul.f32 %v1305_v36, %v4576_v16  ;;  %v4577_v3 = vld [vmem:[#allocation29_spill] sm:$0xff]  ;;  %v4581_v16 = vld [vmem:[#allocation31_spill] sm:$0xff] }
 0x798   :  { %2409 = vmatpush.msra.mxu3 %v2313_v23  ;;  %v2013_v28 = vadd.f32 %v4119_v19, %v1730_v27 }
 0x799   :  { %2885 = vmatmul.msk.f32.vlgmr.msra.gmra.mxu3 %vm180_vm2, %v2869_v47  ;;  %2367 = vmatpush.msra.mxu2 %v2314_v59  ;;  %v2249_v37 = vadd.f32 %v4257_v5, %v2014_v55  ;;  %v2016_v59 = vadd.f32 %v4121_v45, %v1733_v52  ;;  %v4569_v5 = vld [vmem:[#allocation25_spill] sm:$0xff] }
 0x79a   :  { %v2248_v32 = vadd.f32 %v4259_v30, %v2013_v28 }
 0x79b   :  { %2368 = vmatpush.msra.mxu2 %v2312_v33  ;;  %v1300_v33 = vpop.permute.xlu0 %1299  ;;  %v2251_v19 = vadd.f32 %v4261_v62, %v2016_v59 }
 0x79c   :  { %2877 = vmatmul.msk.f32.vlgmr.msra.gmra.mxu2 %vm180_vm2, %v2869_v47  ;;  %v4568_v47 = vld [vmem:[#allocation10_spill] sm:$0xff]  ;;  %v1411_v2 = vmul.f32 %v1300_v33, %v4572_v4 }
 0x79d   :  { %v1409_v8 = vmul.f32 %v1295_v34, %v4568_v47  ;;  %v4574_v34 = vld [vmem:[#allocation7_spill] sm:$0xff] }
 0x79e   :  { %v1734_v62 = vadd.f32 %v4573_v50, %v1411_v2  ;;  %v1414_v46 = vmul.f32 %v1305_v36, %v4574_v34 }
 0x7a0   :  { %v2017_v26 = vadd.f32 %v4127_v39, %v1734_v62 }
 0x7a1   :  { %2886 = vmatmul.msk.f32.gmra.mxu3 %vm180_vm2, %v2870_v49 }
 0x7a4   :  { %2878 = vmatmul.msk.f32.gmra.mxu2 %vm180_vm2, %v2870_v49  ;;  %v1732_v49 = vadd.f32 %v4569_v5, %v1409_v8 }
 0x7a9   :  { %2887 = vmatmul.msk.f32.gmra.mxu3 %vm180_vm2, %v2871_v9 }
 0x7ac   :  { %2879 = vmatmul.msk.f32.gmra.mxu2 %vm180_vm2, %v2871_v9  ;;  %v2015_v9 = vadd.f32 %v4123_v31, %v1732_v49  ;;  %v2464_v49 = vsub.f32 0.0, %v4553_v51 }
 0x7b1   :  { %2888 = vmatmul.msk.f32.gmra.mxu3 %vm180_vm2, %v2872_v35 }
 0x7b4   :  { %2880 = vmatmul.msk.f32.gmra.mxu2 %vm180_vm2, %v2872_v35 }
 0x7b9   :  { %2889 = vmatmul.msk.f32.gmra.mxu3 %vm180_vm2, %v2873_v20 }
 0x7bc   :  { %2881 = vmatmul.msk.f32.gmra.mxu2 %vm180_vm2, %v2873_v20  ;;  %v4570_v20 = vld [vmem:[#allocation9_spill] sm:$0xff] }
 0x7c1   :  { %2890 = vmatmul.msk.f32.gmra.mxu3 %vm180_vm2, %v2874_v61 }
 0x7c4   :  { %2882 = vmatmul.msk.f32.gmra.mxu2 %vm180_vm2, %v2874_v61  ;;  %v1412_v61 = vmul.f32 %v1300_v33, %v4570_v20 }
 0x7c9   :  { %2891 = vmatmul.msk.f32.gmra.mxu3 %vm180_vm2, %v2875_v6 }
 0x7cc   :  { %2883 = vmatmul.msk.f32.gmra.mxu2 %vm180_vm2, %v2875_v6  ;;  %v2250_v6 = vadd.f32 %v4263_v22, %v2015_v9  ;;  %v2252_v22 = vadd.f32 %v4267_v13, %v2017_v26 }
 0x7d1   :  { %2892 = vmatmul.msk.f32.gmra.mxu3 %vm180_vm2, %v2876_v14 }
 0x7d4   :  { %2884 = vmatmul.msk.f32.gmra.mxu2 %vm180_vm2, %v2876_v14  ;;  %v4571_v14 = vld [vmem:[#allocation26_spill] sm:$0xff] }
 0x7d5   :  { %v1735_v29 = vadd.f32 %v4571_v14, %v1412_v61  ;;  %v2477_v61 = vmul.f32 1.442695, %v2464_v49 }
 0x7d7   :  { %v2018_v56 = vadd.f32 %v4125_v42, %v1735_v29  ;;  %v4579_v29 = vld [vmem:[#allocation19_spill] sm:$0xff] }
 0x7d8   :  { %v1415_v26 = vmul.f32 %v4363_v53, %v4579_v29 }
 0x7d9   :  { %v2253_v31 = vadd.f32 %v4265_v12, %v2018_v56  ;;  %v1736_v12 = vadd.f32 %v4577_v3, %v1413_v0 }
 0x7da   :  { %v1738_v0 = vadd.f32 %v4581_v16, %v1415_v26 }
 0x7db   :  { %v2019_v52 = vadd.f32 %v4131_v15, %v1736_v12  ;;  %v2462_v15 = vsub.f32 0.0, %v4548_v11 }
 0x7dd   :  { %v2254_v13 = vadd.f32 %v4271_v54, %v2019_v52  ;;  %v4578_v54 = vld [vmem:[#allocation21_spill] sm:$0xff]  ;;  %v2473_v4 = vmul.f32 1.442695, %v2462_v15 }
 0x7de   :  { %v2460_v20 = vsub.f32 0.0, %v4578_v54 }
 0x7e0   :  { %v2469_v2 = vmul.f32 1.442695, %v2460_v20 }
 0x81c   :  { %v2411_v40 = vpop.f32.mrf.mxu3 }
 0x81d   :  { %v4373_v17 = vadd.f32 %v2411_v40, %v2249_v37  ;;  %v4575_v37 = vld [vmem:[#allocation28_spill] sm:$0xff] }
 0x81e   :  { %v1737_v28 = vadd.f32 %v4575_v37, %v1414_v46 }
 0x81f   :  { %v2370_v23 = vpop.f32.mrf.mxu2 }
 0x820   :  { %v4378_v58 = vadd.f32 %v2370_v23, %v2248_v32  ;;  %v2020_v42 = vadd.f32 %v4129_v21, %v1737_v28  ;;  %v2466_v21 = vsub.f32 0.0, %v4558_v57 }
 0x822   :  { %v2255_v39 = vadd.f32 %v4269_v18, %v2020_v42  ;;  %v2465_v18 = vsub.f32 0.0, %v4560_v60  ;;  %v2481_v9 = vmul.f32 1.442695, %v2466_v21 }
 0x824   :  { %v2414_v35 = vpop.f32.mrf.mxu3  ;;  %v2479_v14 = vmul.f32 1.442695, %v2465_v18  ;;  %3132 = vpow2.f32 %v2481_v9 }
 0x825   :  { %v4385_v30 = vadd.f32 %v2414_v35, %v2251_v19  ;;  %v2463_v35 = vsub.f32 0.0, %v4556_v43  ;;  %3134 = vpow2.f32 %v2477_v61  ;;  %v1416_v43 = vmul.f32 %v4363_v53, %v4578_v54 }
 0x826   :  { %3136 = vpow2.f32 %v2479_v14 }
 0x827   :  { %v2373_v25 = vpop.f32.mrf.mxu2  ;;  %v2475_v51 = vmul.f32 1.442695, %v2463_v35  ;;  %3138 = vpow2.f32 %v2473_v4  ;;  %v2502_v4 = vld [vmem:[%s4482_s6 + $0x18] sm:$0xff] }
 0x828   :  { %v4390_v45 = vadd.f32 %v2373_v25, %v2250_v6  ;;  %v2461_v6 = vsub.f32 0.0, %v4551_v63  ;;  %v2459_v25 = vsub.f32 0.0, %v4579_v29  ;;  %v4580_v63 = vld [vmem:[#allocation30_spill] sm:$0xff] }
 0x829   :  { %3140 = vpow2.f32 %v2475_v51  ;;  %v1739_v62 = vadd.f32 %v4580_v63, %v1416_v43 }
 0x82a   :  { %v2471_v60 = vmul.f32 1.442695, %v2461_v6  ;;  %v2467_v11 = vmul.f32 1.442695, %v2459_v25  ;;  %v3133_v50 = vpop.eup %3132  ;;  %3142 = vpow2.f32 %v2469_v2  ;;  %v2501_v25 = vld [vmem:[%s4482_s6 + $0x10] sm:$0xff] }
 0x82b   :  { %v2022_v46 = vadd.f32 %v4133_v48, %v1739_v62  ;;  %v2490_v28 = vsub.f32 1.0, %v3133_v50 }
 0x82c   :  { %v2417_v55 = vpop.f32.mrf.mxu3  ;;  %3144 = vpow2.f32 %v2471_v60 }
 0x82d   :  { %v4397_v27 = vadd.f32 %v2417_v55, %v2253_v31  ;;  %v3135_v31 = vpop.eup %3134  ;;  %3146 = vpow2.f32 %v2467_v11  ;;  %v2257_v3 = vadd.f32 %v4273_v10, %v2022_v46  ;;  %v4582_v10 = vld [vmem:[#allocation38_spill] sm:$0xff]  ;;  %v2581_v46 = vld [vmem:[%s4478_s2] sm:$0x3f] }
 0x82e   :  { %v3137_v34 = vpop.eup %3136 }
 0x82f   :  { %v2376_v40 = vpop.f32.mrf.mxu2 }
 0x830   :  { %v4402_v32 = vadd.f32 %v2376_v40, %v2252_v22  ;;  %v3139_v40 = vpop.eup %3138 }
 0x831   :  { %v3141_v42 = vpop.eup %3140  ;;  %v2486_v49 = vsub.f32 1.0, %v3139_v40 }
 0x832   :  { %v2487_v35 = vsub.f32 1.0, %v3141_v42 }
 0x834   :  { %v2420_v23 = vpop.f32.mrf.mxu3 }
 0x835   :  { %v4408_v47 = vadd.f32 %v2420_v23, %v2255_v39  ;;  %v2488_v39 = vsub.f32 1.0, %v3135_v31  ;;  %v3143_v23 = vpop.eup %3142 }
 0x836   :  { %v2484_v20 = vsub.f32 1.0, %v3143_v23 }
 0x837   :  { %v2379_v8 = vpop.f32.mrf.mxu2 }
 0x838   :  { %v4411_v59 = vadd.f32 %v2379_v8, %v2254_v13  ;;  %v2021_v13 = vadd.f32 %v4135_v38, %v1738_v0  ;;  %v3145_v8 = vpop.eup %3144 }
 0x839   :  { %v3147_v15 = vpop.eup %3146 }
 0x83a   :  { %v2256_v9 = vadd.f32 %v4582_v10, %v2021_v13  ;;  %v2483_v14 = vsub.f32 1.0, %v3147_v15 }
 0x83c   :  { %v2423_v33 = vpop.f32.mrf.mxu3 }
 0x83d   :  { %v2444_v21 = vadd.f32 %v2423_v33, %v2257_v3  ;;  %v2499_v33 = vld [vmem:[%s4482_s6] sm:$0xff] }
 0x83f   :  { %v4413_v36 = vpop.f32.mrf.mxu2  ;;  %v2492_v6 = vmul.f32 %v2484_v20, %v2444_v21 }
 0x840   :  { %v2443_v38 = vadd.f32 %v4413_v36, %v2256_v9  ;;  %v2500_v36 = vld [vmem:[%s4482_s6 + $0x8] sm:$0xff] }
 0x844   :  { %v2426_v5 = vpop.f32.mrf.mxu3 }
 0x845   :  { %v2446_v12 = vadd.f32 %v2426_v5, %v4282_v7  ;;  %v4583_v7 = vld [vmem:[#allocation39_spill] sm:$0xff] }
 0x847   :  { %v2385_v19 = vpop.f32.mrf.mxu2  ;;  %v2494_v61 = vmul.f32 %v2486_v49, %v2446_v12 }
 0x848   :  { %v2445_v5 = vadd.f32 %v2385_v19, %v4583_v7  ;;  %v2491_v19 = vmul.f32 %v2483_v14, %v2443_v38 }
 0x84c   :  { %v2429_v57 = vpop.f32.mrf.mxu3 }
 0x84d   :  { %v2448_v22 = vadd.f32 %v2429_v57, %v4292_v24 }
 0x84f   :  { %v2388_v56 = vpop.f32.mrf.mxu2  ;;  %v2496_v18 = vmul.f32 %v2488_v39, %v2448_v22 }
 0x850   :  { %v2447_v48 = vadd.f32 %v2388_v56, %v4296_v41  ;;  %v2485_v41 = vsub.f32 1.0, %v3145_v8 }
 0x852   :  { %v2493_v29 = vmul.f32 %v2485_v41, %v2445_v5 }
 0x854   :  { %v2432_v55 = vpop.f32.mrf.mxu3 }
 0x855   :  { %v2450_v37 = vadd.f32 %v2432_v55, %v4302_v1  ;;  %v2489_v1 = vsub.f32 1.0, %v3137_v34 }
 0x857   :  { %v2498_v53 = vmul.f32 %v2490_v28, %v2450_v37  ;;  %v2391_v52 = vpop.f32.mrf.mxu2 }
 0x858   :  { %v2449_v24 = vadd.f32 %v2391_v52, %v4305_v44  ;;  %v2495_v44 = vmul.f32 %v2487_v35, %v2447_v48 }
 0x859   :  { %2556 = vmatpush.msrb.mxu3 %v2498_v53 }
 0x85a   :  { %v2497_v54 = vmul.f32 %v2489_v1, %v2449_v24 }
 0x85b   :  { %2557 = vmatpush.msrb.mxu3 %v2496_v18 }
 0x85c   :  { %2527 = vmatpush.msrb.mxu2 %v2497_v54 }
 0x85d   :  { %2558 = vmatpush.msrb.mxu3 %v2494_v61 }
 0x85e   :  { %2528 = vmatpush.msrb.mxu2 %v2495_v44 }
 0x85f   :  { %2559 = vmatpush.msrb.mxu3 %v2492_v6 }
 0x860   :  { %2897 = vmatmul.msk.f32.vlgmr.msrb.gmra.mxu3 %vm180_vm2, %v2499_v33  ;;  %2529 = vmatpush.msrb.mxu2 %v2493_v29 }
 0x862   :  { %2530 = vmatpush.msrb.mxu2 %v2491_v19 }
 0x863   :  { %2893 = vmatmul.msk.f32.vlgmr.msrb.gmra.mxu2 %vm180_vm2, %v2499_v33 }
 0x868   :  { %2898 = vmatmul.msk.f32.gmra.mxu3 %vm180_vm2, %v2500_v36 }
 0x86b   :  { %2894 = vmatmul.msk.f32.gmra.mxu2 %vm180_vm2, %v2500_v36 }
 0x870   :  { %2899 = vmatmul.msk.f32.gmra.mxu3 %vm180_vm2, %v2501_v25 }
 0x873   :  { %2895 = vmatmul.msk.f32.gmra.mxu2 %vm180_vm2, %v2501_v25 }
 0x878   :  { %2900 = vmatmul.msk.f32.gmra.mxu3 %vm180_vm2, %v2502_v4 }
 0x87b   :  { %2896 = vmatmul.msk.f32.gmra.mxu2 %vm180_vm2, %v2502_v4 }
 0x8e3   :  { %v2561_v57 = vpop.f32.mrf.mxu3 }
 0x8e4   :  { %v2574_v34 = vadd.f32 %v2561_v57, %v4373_v17 }
 0x8e6   :  { %v2532_v51 = vpop.f32.mrf.mxu2 }
 0x8eb   :  { %v2564_v2 = vpop.f32.mrf.mxu3 }
 0x8ec   :  { %v2576_v26 = vadd.f32 %v2564_v2, %v4385_v30 }
 0x8ee   :  { %v2535_v60 = vpop.f32.mrf.mxu2 }
 0x8f3   :  { %v2567_v56 = vpop.f32.mrf.mxu3 }
 0x8f4   :  { %v2578_v63 = vadd.f32 %v2567_v56, %v4397_v27  ;;  %v2573_v27 = vadd.f32 %v2532_v51, %v4378_v58 }
 0x8f6   :  { %v2538_v11 = vpop.f32.mrf.mxu2 }
 0x8f7   :  { %v2577_v55 = vadd.f32 %v2538_v11, %v4402_v32 }
 0x8fb   :  { %v2570_v43 = vpop.f32.mrf.mxu3 }
 0x8fc   :  { %v2580_v50 = vadd.f32 %v2570_v43, %v4408_v47  ;;  %v2575_v47 = vadd.f32 %v2535_v60, %v4390_v45 }
 0x8fe   :  { %2617 = vmatpush.msra.mxu1 %v2580_v50  ;;  %v2541_v62 = vpop.f32.mrf.mxu2 }
 0x8ff   :  { %v2579_v31 = vadd.f32 %v2541_v62, %v4411_v59 }
 0x900   :  { %2618 = vmatpush.msra.mxu1 %v2578_v63 }
 0x901   :  { %2597 = vmatpush.msra.mxu0 %v2579_v31 }
 0x902   :  { %2619 = vmatpush.msra.mxu1 %v2576_v26 }
 0x903   :  { %2598 = vmatpush.msra.mxu0 %v2577_v55 }
 0x904   :  { %2620 = vmatpush.msra.mxu1 %v2574_v34 }
 0x905   :  { %2599 = vmatpush.msra.mxu0 %v2575_v47  ;;  %2902 = vmatmul.msk.f32.vlgmr.msra.gmra.mxu1 %vm180_vm2, %v2581_v46 }
 0x907   :  { %2600 = vmatpush.msra.mxu0 %v2573_v27 }
 0x908   :  { %2901 = vmatmul.msk.f32.vlgmr.msra.gmra.mxu0 %vm180_vm2, %v2581_v46 }
 0x982   :  { %v2622_v17 = vpop.f32.mrf.mxu1 }
 0x983   :  { %2626 = vst [vmem:[#allocation3 + $0x8] sm:$0x3f] %v2622_v17 }
 0x985   :  { %v2602_v30 = vpop.f32.mrf.mxu0 }
 0x986   :  { %2625 = vst [vmem:[#allocation3] sm:$0x3f] %v2602_v30 }
 0x987   :  { %2637 = dma.vmem_to_hbm [thread:$0]  %s2633_s10, 256, %s2635_s0, [#allocation4]  }
 0x988   :  { %3172 = dma.done.wait [#allocation4], 256  }
 0x989   :  { %3173 = vsyncadd [#allocation4], 4294967040 }
 0x98a   :  { %2642 = vsyncpa [#allocation4], 1 }

</bundles_post_ra>
